<compile_context>
chip_gen: v7x
topology: tpu7x:2x2x1
jax: 0.10.0
libtpu: 0.0.40
codegen_flags: <defaults>
</compile_context>

<pallas_src>
import numpy as np

import jax
import jax.numpy as jnp
from jax.experimental import pallas as pl
from jax.experimental.pallas import tpu as pltpu

# ----------------------------- static geometry ------------------------------
BT = 8                 # images per grid step (batch tile)
LANE = 128
C1P = 8                # conv1 output channels padded 6 -> 8
C2 = 16                # conv2 output channels (exactly 16)
N1 = 28 * C1P          # 224: conv1 banded-matmul output lanes (w, c)
P1 = 14 * C1P          # 112: pool1 output lanes (pw, c)  == conv2 contraction K
N2 = 10 * C2           # 160: conv2 banded-matmul output lanes (w, co)
P2 = 5 * C2            #  80: pool2 output lanes (pw, co)

MATMUL_DTYPE = jnp.float32     # switch to jnp.bfloat16 on v6e/v7x for 2x+ MXU
_VMEM_LIMIT = 32 * 1024 * 1024


# ------------------------------ fused kernel --------------------------------

def _lenet_kernel(x_ref, w1_ref, seo1_ref, hp1_ref, b1_ref,
                  w2_ref, seo2_ref, hp2_ref, b2_ref,
                  fc1w_ref, fc1b_ref, fc2w_ref, fc2b_ref, fc3w_ref, fc3b_ref,
                  o_ref):
    f32 = jnp.float32
    bt = x_ref.shape[0]
    md = MATMUL_DTYPE

    x3 = x_ref[...].astype(md)                                    # [BT,32,32]

    # ---------------- conv1 (banded matmuls) + 2x2 pool + bias + ReLU -------
    # Row-gather: for kernel-row i, rows 0..13 <- x[b, 2t+i, :]   (even rows)
    #                                rows 16..29 <- x[b, 2t+1+i,:] (odd rows)
    v1 = jnp.zeros((bt * 32, N1), f32)
    for i in range(5):
        sel = jnp.broadcast_to(seo1_ref[i], (bt, 32, 32)).astype(md)
        xs = jnp.einsum('btr,brp->btp', sel, x3,
                        preferred_element_type=f32)               # [BT,32,32]
        xs = xs.reshape(bt * 32, 32).astype(md)                   # free merge
        v1 = v1 + jnp.dot(xs, w1_ref[i].astype(md),
                          preferred_element_type=f32)             # [BT*32,224]
    v1 = v1.reshape(bt, 32, N1)
    vm1 = jnp.maximum(v1[:, 0:16, :], v1[:, 16:32, :])            # vertical pool
    vm1 = vm1.reshape(bt * 16, N1).astype(md)
    he1 = jnp.dot(vm1, hp1_ref[0].astype(md), preferred_element_type=f32)
    ho1 = jnp.dot(vm1, hp1_ref[1].astype(md), preferred_element_type=f32)
    # bias+ReLU after the pool is valid by monotonicity.
    a1 = jnp.maximum(jnp.maximum(he1, ho1) + b1_ref[0, :], 0.0)   # [BT*16,112]
    a1 = a1.reshape(bt, 16, P1).astype(md)                        # rows 14,15 junk

    # ---------------- conv2 (banded matmuls) + 2x2 pool + bias + ReLU -------
    v2 = jnp.zeros((bt * 16, N2), f32)
    for i in range(5):
        sel = jnp.broadcast_to(seo2_ref[i], (bt, 16, 16)).astype(md)
        asel = jnp.einsum('btr,brn->btn', sel, a1,
                          preferred_element_type=f32)             # [BT,16,112]
        asel = asel.reshape(bt * 16, P1).astype(md)
        v2 = v2 + jnp.dot(asel, w2_ref[i].astype(md),
                          preferred_element_type=f32)             # [BT*16,160]
    v2 = v2.reshape(bt, 16, N2)
    vm2 = jnp.maximum(v2[:, 0:8, :], v2[:, 8:16, :])              # vertical pool
    vm2 = vm2.reshape(bt * 8, N2).astype(md)
    he2 = jnp.dot(vm2, hp2_ref[0].astype(md), preferred_element_type=f32)
    ho2 = jnp.dot(vm2, hp2_ref[1].astype(md), preferred_element_type=f32)
    a2 = jnp.maximum(jnp.maximum(he2, ho2) + b2_ref[0, :], 0.0)   # [BT*8,80]
    a2 = a2.reshape(bt, 8, P2).astype(md)                         # rows 5..7 junk

    # ---------------- fc1 + ReLU + fc2 + ReLU + fc3 --------------------------
    h = jnp.zeros((bt, LANE), f32)
    for ph in range(5):   # flatten folded into fc1 weight blocks (K = 5 x 80)
        h = h + jnp.dot(a2[:, ph, :], fc1w_ref[ph].astype(md),
                        preferred_element_type=f32)
    h = jnp.maximum(h + fc1b_ref[0, :], 0.0).astype(md)
    h = jnp.dot(h, fc2w_ref[...].astype(md), preferred_element_type=f32)
    h = jnp.maximum(h + fc2b_ref[0, :], 0.0).astype(md)
    out = jnp.dot(h, fc3w_ref[...].astype(md), preferred_element_type=f32)
    out = out + fc3b_ref[0, :]
    o_ref[...] = out.astype(o_ref.dtype)                          # [BT,128]


def _lenet_pallas(xp, q):
    """xp: [Bp, 32, 32] with Bp a multiple of BT -> [Bp, 128] padded logits."""
    bp = xp.shape[0]

    def const_spec(shape):
        return pl.BlockSpec(shape, lambda i, _s=len(shape): (0,) * _s)

    return pl.pallas_call(
        _lenet_kernel,
        out_shape=jax.ShapeDtypeStruct((bp, LANE), jnp.float32),
        grid=(bp // BT,),
        in_specs=[
            pl.BlockSpec((BT, 32, 32), lambda i: (i, 0, 0)),   # images
            const_spec((5, 32, N1)),     # conv1 banded weights
            const_spec((5, 32, 32)),     # conv1 row-gather one-hots
            const_spec((2, N1, P1)),     # conv1 horizontal-pool selections
            const_spec((1, P1)),         # conv1 bias (tiled over pw)
            const_spec((5, P1, N2)),     # conv2 banded weights
            const_spec((5, 16, 16)),     # conv2 row-gather one-hots
            const_spec((2, N2, P2)),     # conv2 horizontal-pool selections
            const_spec((1, P2)),         # conv2 bias (tiled over pw)
            const_spec((5, P2, LANE)),   # fc1 weight blocks (flatten folded in)
            const_spec((1, LANE)),       # fc1 bias
            const_spec((LANE, LANE)),    # fc2 weight
            const_spec((1, LANE)),       # fc2 bias
            const_spec((LANE, LANE)),    # fc3 weight
            const_spec((1, LANE)),       # fc3 bias
        ],
        out_specs=pl.BlockSpec((BT, LANE), lambda i: (i, 0)),
        compiler_params=pltpu.CompilerParams(
            dimension_semantics=("parallel",),      # shard batch tiles across TCs
            vmem_limit_bytes=_VMEM_LIMIT),
    )(xp, q["w1"], q["seo1"], q["hp1"], q["b1"],
      q["w2"], q["seo2"], q["hp2"], q["b2"],
      q["fc1w"], q["fc1b"], q["fc2w"], q["fc2b"], q["fc3w"], q["fc3b"])


def forward(q, x):
    """x: [B, 1, 32, 32] float32 (NCHW, as in PyTorch) -> [B, 10] logits."""
    B, C, H, W = x.shape
    assert C == 1 and H == 32 and W == 32, "LeNet geometry requires 1x32x32"
    xh = x.reshape(B, 32, 32)                      # C==1 -> free reshape
    bp = ((B + BT - 1) // BT) * BT
    if bp != B:
        xh = jnp.pad(xh, ((0, bp - B), (0, 0), (0, 0)))
    out = _lenet_pallas(xh, q)                     # [bp, 128]
    return out[:B, :10]


# --------------------------- parameter preparation --------------------------

def init_params(key):
    """PyTorch-shaped parameters with the uniform(-1/sqrt(fan_in)) scheme."""
    def uinit(k, shape, fan_in):
        bound = 1.0 / jnp.sqrt(jnp.float32(fan_in))
        return jax.random.uniform(k, shape, jnp.float32, -bound, bound)

    ks = jax.random.split(key, 10)
    return {
        "conv1_w": uinit(ks[0], (6, 1, 5, 5), 1 * 5 * 5),
        "conv1_b": uinit(ks[1], (6,), 1 * 5 * 5),
        "conv2_w": uinit(ks[2], (16, 6, 5, 5), 6 * 5 * 5),
        "conv2_b": uinit(ks[3], (16,), 6 * 5 * 5),
        "fc1_w": uinit(ks[4], (120, 400), 400),
        "fc1_b": uinit(ks[5], (120,), 400),
        "fc2_w": uinit(ks[6], (84, 120), 120),
        "fc2_b": uinit(ks[7], (84,), 120),
        "fc3_w": uinit(ks[8], (10, 84), 84),
        "fc3_b": uinit(ks[9], (10,), 84),
    }


def prepare_params(p):
    """One-time host-side repack of PyTorch-layout params into kernel layouts:
    banded conv weights, one-hot row/lane selection matrices, tiled biases and
    flatten-order-folded fc weights."""
    def npf(a):
        return np.asarray(a, dtype=np.float32)

    k1, b1 = npf(p["conv1_w"]), npf(p["conv1_b"])
    k2, b2 = npf(p["conv2_w"]), npf(p["conv2_b"])
    f1w, f1b = npf(p["fc1_w"]), npf(p["fc1_b"])
    f2w, f2b = npf(p["fc2_w"]), npf(p["fc2_b"])
    f3w, f3b = npf(p["fc3_w"]), npf(p["fc3_b"])

    # conv1 banded weights: w1[i, p, w*8+c] = k1[c, 0, i, p-w]
    w1 = np.zeros((5, 32, N1), np.float32)
    for i in range(5):
        for w in range(28):
            for j in range(5):
                for c in range(6):
                    w1[i, w + j, w * C1P + c] = k1[c, 0, i, j]

    # conv1 row-gather: rows 0..13 pick x[2t+i], rows 16..29 pick x[2t+1+i]
    seo1 = np.zeros((5, 32, 32), np.float32)
    for i in range(5):
        for t in range(14):
            seo1[i, t, 2 * t + i] = 1.0
            seo1[i, 16 + t, 2 * t + 1 + i] = 1.0

    # conv1 horizontal 2x2-pool lane selections: (w, c) -> (pw, c)
    hp1 = np.zeros((2, N1, P1), np.float32)
    for t in range(14):
        for c in range(C1P):
            hp1[0, (2 * t) * C1P + c, t * C1P + c] = 1.0
            hp1[1, (2 * t + 1) * C1P + c, t * C1P + c] = 1.0
    b1t = np.zeros((1, P1), np.float32)
    for t in range(14):
        b1t[0, t * C1P:t * C1P + 6] = b1

    # conv2 banded weights: w2[i, (w+j)*8+c, w*16+co] = k2[co, c, i, j]
    w2 = np.zeros((5, P1, N2), np.float32)
    for i in range(5):
        for w in range(10):
            for j in range(5):
                for c in range(6):
                    for co in range(16):
                        w2[i, (w + j) * C1P + c, w * C2 + co] = k2[co, c, i, j]

    # conv2 row-gather over the 16-row a1 block (rows 14,15 are junk, never hit)
    seo2 = np.zeros((5, 16, 16), np.float32)
    for i in range(5):
        for t in range(5):
            seo2[i, t, 2 * t + i] = 1.0
            seo2[i, 8 + t, 2 * t + 1 + i] = 1.0

    # conv2 horizontal 2x2-pool lane selections: (w, co) -> (pw, co)
    hp2 = np.zeros((2, N2, P2), np.float32)
    for t in range(5):
        for co in range(C2):
            hp2[0, (2 * t) * C2 + co, t * C2 + co] = 1.0
            hp2[1, (2 * t + 1) * C2 + co, t * C2 + co] = 1.0
    b2t = np.zeros((1, P2), np.float32)
    for t in range(5):
        b2t[0, t * C2:(t + 1) * C2] = b2

    # fc1: fold the PyTorch NCHW .view(-1, 400) order (c*25 + h*5 + w) into
    # five [80, 128] blocks matching the kernel's (ph, (pw, co)) activation.
    fc1w = np.zeros((5, P2, LANE), np.float32)
    for ph in range(5):
        for pw in range(5):
            for co in range(16):
                fc1w[ph, pw * C2 + co, :120] = f1w[:, co * 25 + ph * 5 + pw]
    fc1b = np.zeros((1, LANE), np.float32); fc1b[0, :120] = f1b
    fc2w = np.zeros((LANE, LANE), np.float32); fc2w[:120, :84] = f2w.T
    fc2b = np.zeros((1, LANE), np.float32); fc2b[0, :84] = f2b
    fc3w = np.zeros((LANE, LANE), np.float32); fc3w[:84, :10] = f3w.T
    fc3b = np.zeros((1, LANE), np.float32); fc3b[0, :10] = f3b

    raw = {"w1": w1, "seo1": seo1, "hp1": hp1, "b1": b1t,
           "w2": w2, "seo2": seo2, "hp2": hp2, "b2": b2t,
           "fc1w": fc1w, "fc1b": fc1b, "fc2w": fc2w, "fc2b": fc2b,
           "fc3w": fc3w, "fc3b": fc3b}
    return {k: jnp.asarray(v) for k, v in raw.items()}


# ------------------------- pure-JAX reference (check) ------------------------

def reference_forward(p, x):
    hp = jax.lax.Precision.HIGHEST

    def conv(x, w, b):
        y = jax.lax.conv_general_dilated(
            x, w, window_strides=(1, 1), padding="VALID",
            dimension_numbers=("NCHW", "OIHW", "NCHW"), precision=hp)
        return jax.nn.relu(y + b[None, :, None, None])

    def pool(x):
        B, C, H, W = x.shape
        return x.reshape(B, C, H // 2, 2, W // 2, 2).max(axis=(3, 5))

    x = pool(conv(x, p["conv1_w"], p["conv1_b"]))
    x = pool(conv(x, p["conv2_w"], p["conv2_b"]))
    B = x.shape[0]
    x = x.reshape(B, -1)
    x = jax.nn.relu(jnp.dot(x, p["fc1_w"].T, precision=hp) + p["fc1_b"])
    x = jax.nn.relu(jnp.dot(x, p["fc2_w"].T, precision=hp) + p["fc2_b"])
    return jnp.dot(x, p["fc3_w"].T, precision=hp) + p["fc3_b"]


if __name__ == "__main__":
    key = jax.random.PRNGKey(0)
    pkey, xkey = jax.random.split(key)
    params = init_params(pkey)
    prepped = prepare_params(params)

    # LeNet geometry needs 32x32 single-channel input (16*5*5 flatten).
    # B=10 exercises both batch padding (10 -> 16) and a multi-step parallel grid.
    x = jax.random.normal(xkey, (10, 1, 32, 32), dtype=jnp.float32)

    out = jax.block_until_ready(jax.jit(forward)(prepped, x))
    assert out.shape == (10, 10), out.shape
    assert bool(jnp.all(jnp.isfinite(out)))

    ref = jax.block_until_ready(jax.jit(reference_forward)(params, x))
    assert bool(jnp.allclose(out, ref, atol=5e-3, rtol=5e-3)), (
        float(jnp.max(jnp.abs(out - ref))))

    print("KERNEL_OK")
</pallas_src>

<mosaic_0001>
module attributes {stable_mosaic.version = 11 : i64} {
  func.func @_lenet_kernel(%arg0: i32, %arg1: memref<8x32x32xf32, #tpu.memory_space<vmem>>, %arg2: memref<5x32x224xf32, #tpu.memory_space<vmem>>, %arg3: memref<5x32x32xf32, #tpu.memory_space<vmem>>, %arg4: memref<2x224x112xf32, #tpu.memory_space<vmem>>, %arg5: memref<1x112xf32, #tpu.memory_space<vmem>>, %arg6: memref<5x112x160xf32, #tpu.memory_space<vmem>>, %arg7: memref<5x16x16xf32, #tpu.memory_space<vmem>>, %arg8: memref<2x160x80xf32, #tpu.memory_space<vmem>>, %arg9: memref<1x80xf32, #tpu.memory_space<vmem>>, %arg10: memref<5x80x128xf32, #tpu.memory_space<vmem>>, %arg11: memref<1x128xf32, #tpu.memory_space<vmem>>, %arg12: memref<128x128xf32, #tpu.memory_space<vmem>>, %arg13: memref<1x128xf32, #tpu.memory_space<vmem>>, %arg14: memref<128x128xf32, #tpu.memory_space<vmem>>, %arg15: memref<1x128xf32, #tpu.memory_space<vmem>>, %arg16: memref<8x128xf32, #tpu.memory_space<vmem>>) attributes {dimension_semantics = [#tpu.dimension_semantics<parallel>], iteration_bounds = array<i64: 2>, scalar_prefetch = 0 : i64, scratch_operands = 0 : i64, tpu.core_type = #tpu.core_type<tc>, window_params = [{transform_indices = @transform_0, window_bounds = array<i64: 8, 32, 32>}, {pipeline_mode = #tpu.pipeline_mode<synchronous>, transform_indices = @transform_1, window_bounds = array<i64: 5, 32, 224>}, {pipeline_mode = #tpu.pipeline_mode<synchronous>, transform_indices = @transform_2, window_bounds = array<i64: 5, 32, 32>}, {pipeline_mode = #tpu.pipeline_mode<synchronous>, transform_indices = @transform_3, window_bounds = array<i64: 2, 224, 112>}, {pipeline_mode = #tpu.pipeline_mode<synchronous>, transform_indices = @transform_4, window_bounds = array<i64: 1, 112>}, {pipeline_mode = #tpu.pipeline_mode<synchronous>, transform_indices = @transform_5, window_bounds = array<i64: 5, 112, 160>}, {pipeline_mode = #tpu.pipeline_mode<synchronous>, transform_indices = @transform_6, window_bounds = array<i64: 5, 16, 16>}, {pipeline_mode = #tpu.pipeline_mode<synchronous>, transform_indices = @transform_7, window_bounds = array<i64: 2, 160, 80>}, {pipeline_mode = #tpu.pipeline_mode<synchronous>, transform_indices = @transform_8, window_bounds = array<i64: 1, 80>}, {pipeline_mode = #tpu.pipeline_mode<synchronous>, transform_indices = @transform_9, window_bounds = array<i64: 5, 80, 128>}, {pipeline_mode = #tpu.pipeline_mode<synchronous>, transform_indices = @transform_10, window_bounds = array<i64: 1, 128>}, {pipeline_mode = #tpu.pipeline_mode<synchronous>, transform_indices = @transform_11, window_bounds = array<i64: 128, 128>}, {pipeline_mode = #tpu.pipeline_mode<synchronous>, transform_indices = @transform_12, window_bounds = array<i64: 1, 128>}, {pipeline_mode = #tpu.pipeline_mode<synchronous>, transform_indices = @transform_13, window_bounds = array<i64: 128, 128>}, {pipeline_mode = #tpu.pipeline_mode<synchronous>, transform_indices = @transform_14, window_bounds = array<i64: 1, 128>}, {transform_indices = @transform_15, window_bounds = array<i64: 8, 128>}]} {
    %c0 = arith.constant 0 : index
    %c0_0 = arith.constant 0 : index
    %c0_1 = arith.constant 0 : index
    %0 = vector.load %arg1[%c0, %c0_0, %c0_1] : memref<8x32x32xf32, #tpu.memory_space<vmem>>, vector<8x32x32xf32>
    %cst = arith.constant 0.000000e+00 : f32
    %1 = vector.broadcast %cst : f32 to vector<256x224xf32>
    %c0_2 = arith.constant 0 : index
    %c0_3 = arith.constant 0 : index
    %c0_4 = arith.constant 0 : index
    %2 = vector.load %arg3[%c0_2, %c0_3, %c0_4] : memref<5x32x32xf32, #tpu.memory_space<vmem>>, vector<1x32x32xf32>
    %3 = vector.shape_cast %2 : vector<1x32x32xf32> to vector<32x32xf32>
    %4 = vector.shape_cast %3 : vector<32x32xf32> to vector<1x32x32xf32>
    %5 = vector.broadcast %4 : vector<1x32x32xf32> to vector<8x32x32xf32>
    "tpu.trace_start"() <{level = 10 : i32, message = "btr,brp->btp"}> : () -> ()
    %cst_5 = arith.constant dense<0.000000e+00> : vector<8x32x32xf32>
    %6 = tpu.matmul %5, %0, %cst_5 {dimension_numbers = #tpu.dot_dimension_numbers<[2], [1], [1], [2], [0, 0, 0, 1, 1, 2], [0], [0]>} : vector<8x32x32xf32>, vector<8x32x32xf32>, vector<8x32x32xf32> -> vector<8x32x32xf32>
    "tpu.trace_stop"() : () -> ()
    %7 = vector.shape_cast %6 : vector<8x32x32xf32> to vector<256x32xf32>
    %c0_6 = arith.constant 0 : index
    %c0_7 = arith.constant 0 : index
    %c0_8 = arith.constant 0 : index
    %8 = vector.load %arg2[%c0_6, %c0_7, %c0_8] : memref<5x32x224xf32, #tpu.memory_space<vmem>>, vector<1x32x224xf32>
    %9 = vector.shape_cast %8 : vector<1x32x224xf32> to vector<32x224xf32>
    %cst_9 = arith.constant dense<0.000000e+00> : vector<256x224xf32>
    %10 = tpu.matmul %7, %9, %cst_9 {dimension_numbers = #tpu.dot_dimension_numbers<[1], [0], [0], [1], [0, 0, 1, 1], [], []>} : vector<256x32xf32>, vector<32x224xf32>, vector<256x224xf32> -> vector<256x224xf32>
    %11 = arith.addf %1, %10 : vector<256x224xf32>
    %c1 = arith.constant 1 : index
    %c0_10 = arith.constant 0 : index
    %c0_11 = arith.constant 0 : index
    %12 = vector.load %arg3[%c1, %c0_10, %c0_11] : memref<5x32x32xf32, #tpu.memory_space<vmem>>, vector<1x32x32xf32>
    %13 = vector.shape_cast %12 : vector<1x32x32xf32> to vector<32x32xf32>
    %14 = vector.shape_cast %13 : vector<32x32xf32> to vector<1x32x32xf32>
    %15 = vector.broadcast %14 : vector<1x32x32xf32> to vector<8x32x32xf32>
    "tpu.trace_start"() <{level = 10 : i32, message = "btr,brp->btp"}> : () -> ()
    %cst_12 = arith.constant dense<0.000000e+00> : vector<8x32x32xf32>
    %16 = tpu.matmul %15, %0, %cst_12 {dimension_numbers = #tpu.dot_dimension_numbers<[2], [1], [1], [2], [0, 0, 0, 1, 1, 2], [0], [0]>} : vector<8x32x32xf32>, vector<8x32x32xf32>, vector<8x32x32xf32> -> vector<8x32x32xf32>
    "tpu.trace_stop"() : () -> ()
    %17 = vector.shape_cast %16 : vector<8x32x32xf32> to vector<256x32xf32>
    %c1_13 = arith.constant 1 : index
    %c0_14 = arith.constant 0 : index
    %c0_15 = arith.constant 0 : index
    %18 = vector.load %arg2[%c1_13, %c0_14, %c0_15] : memref<5x32x224xf32, #tpu.memory_space<vmem>>, vector<1x32x224xf32>
    %19 = vector.shape_cast %18 : vector<1x32x224xf32> to vector<32x224xf32>
    %cst_16 = arith.constant dense<0.000000e+00> : vector<256x224xf32>
    %20 = tpu.matmul %17, %19, %cst_16 {dimension_numbers = #tpu.dot_dimension_numbers<[1], [0], [0], [1], [0, 0, 1, 1], [], []>} : vector<256x32xf32>, vector<32x224xf32>, vector<256x224xf32> -> vector<256x224xf32>
    %21 = arith.addf %11, %20 : vector<256x224xf32>
    %c2 = arith.constant 2 : index
    %c0_17 = arith.constant 0 : index
    %c0_18 = arith.constant 0 : index
    %22 = vector.load %arg3[%c2, %c0_17, %c0_18] : memref<5x32x32xf32, #tpu.memory_space<vmem>>, vector<1x32x32xf32>
    %23 = vector.shape_cast %22 : vector<1x32x32xf32> to vector<32x32xf32>
    %24 = vector.shape_cast %23 : vector<32x32xf32> to vector<1x32x32xf32>
    %25 = vector.broadcast %24 : vector<1x32x32xf32> to vector<8x32x32xf32>
    "tpu.trace_start"() <{level = 10 : i32, message = "btr,brp->btp"}> : () -> ()
    %cst_19 = arith.constant dense<0.000000e+00> : vector<8x32x32xf32>
    %26 = tpu.matmul %25, %0, %cst_19 {dimension_numbers = #tpu.dot_dimension_numbers<[2], [1], [1], [2], [0, 0, 0, 1, 1, 2], [0], [0]>} : vector<8x32x32xf32>, vector<8x32x32xf32>, vector<8x32x32xf32> -> vector<8x32x32xf32>
    "tpu.trace_stop"() : () -> ()
    %27 = vector.shape_cast %26 : vector<8x32x32xf32> to vector<256x32xf32>
    %c2_20 = arith.constant 2 : index
    %c0_21 = arith.constant 0 : index
    %c0_22 = arith.constant 0 : index
    %28 = vector.load %arg2[%c2_20, %c0_21, %c0_22] : memref<5x32x224xf32, #tpu.memory_space<vmem>>, vector<1x32x224xf32>
    %29 = vector.shape_cast %28 : vector<1x32x224xf32> to vector<32x224xf32>
    %cst_23 = arith.constant dense<0.000000e+00> : vector<256x224xf32>
    %30 = tpu.matmul %27, %29, %cst_23 {dimension_numbers = #tpu.dot_dimension_numbers<[1], [0], [0], [1], [0, 0, 1, 1], [], []>} : vector<256x32xf32>, vector<32x224xf32>, vector<256x224xf32> -> vector<256x224xf32>
    %31 = arith.addf %21, %30 : vector<256x224xf32>
    %c3 = arith.constant 3 : index
    %c0_24 = arith.constant 0 : index
    %c0_25 = arith.constant 0 : index
    %32 = vector.load %arg3[%c3, %c0_24, %c0_25] : memref<5x32x32xf32, #tpu.memory_space<vmem>>, vector<1x32x32xf32>
    %33 = vector.shape_cast %32 : vector<1x32x32xf32> to vector<32x32xf32>
    %34 = vector.shape_cast %33 : vector<32x32xf32> to vector<1x32x32xf32>
    %35 = vector.broadcast %34 : vector<1x32x32xf32> to vector<8x32x32xf32>
    "tpu.trace_start"() <{level = 10 : i32, message = "btr,brp->btp"}> : () -> ()
    %cst_26 = arith.constant dense<0.000000e+00> : vector<8x32x32xf32>
    %36 = tpu.matmul %35, %0, %cst_26 {dimension_numbers = #tpu.dot_dimension_numbers<[2], [1], [1], [2], [0, 0, 0, 1, 1, 2], [0], [0]>} : vector<8x32x32xf32>, vector<8x32x32xf32>, vector<8x32x32xf32> -> vector<8x32x32xf32>
    "tpu.trace_stop"() : () -> ()
    %37 = vector.shape_cast %36 : vector<8x32x32xf32> to vector<256x32xf32>
    %c3_27 = arith.constant 3 : index
    %c0_28 = arith.constant 0 : index
    %c0_29 = arith.constant 0 : index
    %38 = vector.load %arg2[%c3_27, %c0_28, %c0_29] : memref<5x32x224xf32, #tpu.memory_space<vmem>>, vector<1x32x224xf32>
    %39 = vector.shape_cast %38 : vector<1x32x224xf32> to vector<32x224xf32>
    %cst_30 = arith.constant dense<0.000000e+00> : vector<256x224xf32>
    %40 = tpu.matmul %37, %39, %cst_30 {dimension_numbers = #tpu.dot_dimension_numbers<[1], [0], [0], [1], [0, 0, 1, 1], [], []>} : vector<256x32xf32>, vector<32x224xf32>, vector<256x224xf32> -> vector<256x224xf32>
    %41 = arith.addf %31, %40 : vector<256x224xf32>
    %c4 = arith.constant 4 : index
    %c0_31 = arith.constant 0 : index
    %c0_32 = arith.constant 0 : index
    %42 = vector.load %arg3[%c4, %c0_31, %c0_32] : memref<5x32x32xf32, #tpu.memory_space<vmem>>, vector<1x32x32xf32>
    %43 = vector.shape_cast %42 : vector<1x32x32xf32> to vector<32x32xf32>
    %44 = vector.shape_cast %43 : vector<32x32xf32> to vector<1x32x32xf32>
    %45 = vector.broadcast %44 : vector<1x32x32xf32> to vector<8x32x32xf32>
    "tpu.trace_start"() <{level = 10 : i32, message = "btr,brp->btp"}> : () -> ()
    %cst_33 = arith.constant dense<0.000000e+00> : vector<8x32x32xf32>
    %46 = tpu.matmul %45, %0, %cst_33 {dimension_numbers = #tpu.dot_dimension_numbers<[2], [1], [1], [2], [0, 0, 0, 1, 1, 2], [0], [0]>} : vector<8x32x32xf32>, vector<8x32x32xf32>, vector<8x32x32xf32> -> vector<8x32x32xf32>
    "tpu.trace_stop"() : () -> ()
    %47 = vector.shape_cast %46 : vector<8x32x32xf32> to vector<256x32xf32>
    %c4_34 = arith.constant 4 : index
    %c0_35 = arith.constant 0 : index
    %c0_36 = arith.constant 0 : index
    %48 = vector.load %arg2[%c4_34, %c0_35, %c0_36] : memref<5x32x224xf32, #tpu.memory_space<vmem>>, vector<1x32x224xf32>
    %49 = vector.shape_cast %48 : vector<1x32x224xf32> to vector<32x224xf32>
    %cst_37 = arith.constant dense<0.000000e+00> : vector<256x224xf32>
    %50 = tpu.matmul %47, %49, %cst_37 {dimension_numbers = #tpu.dot_dimension_numbers<[1], [0], [0], [1], [0, 0, 1, 1], [], []>} : vector<256x32xf32>, vector<32x224xf32>, vector<256x224xf32> -> vector<256x224xf32>
    %51 = arith.addf %41, %50 : vector<256x224xf32>
    %52 = vector.shape_cast %51 : vector<256x224xf32> to vector<8x32x224xf32>
    %53 = vector.extract_strided_slice %52 {offsets = [0, 0, 0], sizes = [8, 16, 224], strides = [1, 1, 1]} : vector<8x32x224xf32> to vector<8x16x224xf32>
    %54 = vector.extract_strided_slice %52 {offsets = [0, 16, 0], sizes = [8, 16, 224], strides = [1, 1, 1]} : vector<8x32x224xf32> to vector<8x16x224xf32>
    %55 = arith.maximumf %53, %54 : vector<8x16x224xf32>
    %56 = vector.shape_cast %55 : vector<8x16x224xf32> to vector<128x224xf32>
    %c0_38 = arith.constant 0 : index
    %c0_39 = arith.constant 0 : index
    %c0_40 = arith.constant 0 : index
    %57 = vector.load %arg4[%c0_38, %c0_39, %c0_40] : memref<2x224x112xf32, #tpu.memory_space<vmem>>, vector<1x224x112xf32>
    %58 = vector.shape_cast %57 : vector<1x224x112xf32> to vector<224x112xf32>
    %cst_41 = arith.constant dense<0.000000e+00> : vector<128x112xf32>
    %59 = tpu.matmul %56, %58, %cst_41 {dimension_numbers = #tpu.dot_dimension_numbers<[1], [0], [0], [1], [0, 0, 1, 1], [], []>} : vector<128x224xf32>, vector<224x112xf32>, vector<128x112xf32> -> vector<128x112xf32>
    %c1_42 = arith.constant 1 : index
    %c0_43 = arith.constant 0 : index
    %c0_44 = arith.constant 0 : index
    %60 = vector.load %arg4[%c1_42, %c0_43, %c0_44] : memref<2x224x112xf32, #tpu.memory_space<vmem>>, vector<1x224x112xf32>
    %61 = vector.shape_cast %60 : vector<1x224x112xf32> to vector<224x112xf32>
    %cst_45 = arith.constant dense<0.000000e+00> : vector<128x112xf32>
    %62 = tpu.matmul %56, %61, %cst_45 {dimension_numbers = #tpu.dot_dimension_numbers<[1], [0], [0], [1], [0, 0, 1, 1], [], []>} : vector<128x224xf32>, vector<224x112xf32>, vector<128x112xf32> -> vector<128x112xf32>
    %63 = arith.maximumf %59, %62 : vector<128x112xf32>
    %c0_46 = arith.constant 0 : index
    %c0_47 = arith.constant 0 : index
    %64 = vector.load %arg5[%c0_46, %c0_47] : memref<1x112xf32, #tpu.memory_space<vmem>>, vector<1x112xf32>
    %65 = vector.shape_cast %64 : vector<1x112xf32> to vector<112xf32>
    %66 = vector.shape_cast %65 : vector<112xf32> to vector<1x112xf32>
    %67 = vector.broadcast %66 : vector<1x112xf32> to vector<128x112xf32>
    %68 = arith.addf %63, %67 : vector<128x112xf32>
    %cst_48 = arith.constant 0.000000e+00 : f32
    %69 = vector.broadcast %cst_48 : f32 to vector<128x112xf32>
    %70 = arith.maximumf %68, %69 : vector<128x112xf32>
    %71 = vector.shape_cast %70 : vector<128x112xf32> to vector<8x16x112xf32>
    %cst_49 = arith.constant 0.000000e+00 : f32
    %72 = vector.broadcast %cst_49 : f32 to vector<128x160xf32>
    %c0_50 = arith.constant 0 : index
    %c0_51 = arith.constant 0 : index
    %c0_52 = arith.constant 0 : index
    %73 = vector.load %arg7[%c0_50, %c0_51, %c0_52] : memref<5x16x16xf32, #tpu.memory_space<vmem>>, vector<1x16x16xf32>
    %74 = vector.shape_cast %73 : vector<1x16x16xf32> to vector<16x16xf32>
    %75 = vector.shape_cast %74 : vector<16x16xf32> to vector<1x16x16xf32>
    %76 = vector.broadcast %75 : vector<1x16x16xf32> to vector<8x16x16xf32>
    "tpu.trace_start"() <{level = 10 : i32, message = "btr,brn->btn"}> : () -> ()
    %cst_53 = arith.constant dense<0.000000e+00> : vector<8x16x112xf32>
    %77 = tpu.matmul %76, %71, %cst_53 {dimension_numbers = #tpu.dot_dimension_numbers<[2], [1], [1], [2], [0, 0, 0, 1, 1, 2], [0], [0]>} : vector<8x16x16xf32>, vector<8x16x112xf32>, vector<8x16x112xf32> -> vector<8x16x112xf32>
    "tpu.trace_stop"() : () -> ()
    %78 = vector.shape_cast %77 : vector<8x16x112xf32> to vector<128x112xf32>
    %c0_54 = arith.constant 0 : index
    %c0_55 = arith.constant 0 : index
    %c0_56 = arith.constant 0 : index
    %79 = vector.load %arg6[%c0_54, %c0_55, %c0_56] : memref<5x112x160xf32, #tpu.memory_space<vmem>>, vector<1x112x160xf32>
    %80 = vector.shape_cast %79 : vector<1x112x160xf32> to vector<112x160xf32>
    %cst_57 = arith.constant dense<0.000000e+00> : vector<128x160xf32>
    %81 = tpu.matmul %78, %80, %cst_57 {dimension_numbers = #tpu.dot_dimension_numbers<[1], [0], [0], [1], [0, 0, 1, 1], [], []>} : vector<128x112xf32>, vector<112x160xf32>, vector<128x160xf32> -> vector<128x160xf32>
    %82 = arith.addf %72, %81 : vector<128x160xf32>
    %c1_58 = arith.constant 1 : index
    %c0_59 = arith.constant 0 : index
    %c0_60 = arith.constant 0 : index
    %83 = vector.load %arg7[%c1_58, %c0_59, %c0_60] : memref<5x16x16xf32, #tpu.memory_space<vmem>>, vector<1x16x16xf32>
    %84 = vector.shape_cast %83 : vector<1x16x16xf32> to vector<16x16xf32>
    %85 = vector.shape_cast %84 : vector<16x16xf32> to vector<1x16x16xf32>
    %86 = vector.broadcast %85 : vector<1x16x16xf32> to vector<8x16x16xf32>
    "tpu.trace_start"() <{level = 10 : i32, message = "btr,brn->btn"}> : () -> ()
    %cst_61 = arith.constant dense<0.000000e+00> : vector<8x16x112xf32>
    %87 = tpu.matmul %86, %71, %cst_61 {dimension_numbers = #tpu.dot_dimension_numbers<[2], [1], [1], [2], [0, 0, 0, 1, 1, 2], [0], [0]>} : vector<8x16x16xf32>, vector<8x16x112xf32>, vector<8x16x112xf32> -> vector<8x16x112xf32>
    "tpu.trace_stop"() : () -> ()
    %88 = vector.shape_cast %87 : vector<8x16x112xf32> to vector<128x112xf32>
    %c1_62 = arith.constant 1 : index
    %c0_63 = arith.constant 0 : index
    %c0_64 = arith.constant 0 : index
    %89 = vector.load %arg6[%c1_62, %c0_63, %c0_64] : memref<5x112x160xf32, #tpu.memory_space<vmem>>, vector<1x112x160xf32>
    %90 = vector.shape_cast %89 : vector<1x112x160xf32> to vector<112x160xf32>
    %cst_65 = arith.constant dense<0.000000e+00> : vector<128x160xf32>
    %91 = tpu.matmul %88, %90, %cst_65 {dimension_numbers = #tpu.dot_dimension_numbers<[1], [0], [0], [1], [0, 0, 1, 1], [], []>} : vector<128x112xf32>, vector<112x160xf32>, vector<128x160xf32> -> vector<128x160xf32>
    %92 = arith.addf %82, %91 : vector<128x160xf32>
    %c2_66 = arith.constant 2 : index
    %c0_67 = arith.constant 0 : index
    %c0_68 = arith.constant 0 : index
    %93 = vector.load %arg7[%c2_66, %c0_67, %c0_68] : memref<5x16x16xf32, #tpu.memory_space<vmem>>, vector<1x16x16xf32>
    %94 = vector.shape_cast %93 : vector<1x16x16xf32> to vector<16x16xf32>
    %95 = vector.shape_cast %94 : vector<16x16xf32> to vector<1x16x16xf32>
    %96 = vector.broadcast %95 : vector<1x16x16xf32> to vector<8x16x16xf32>
    "tpu.trace_start"() <{level = 10 : i32, message = "btr,brn->btn"}> : () -> ()
    %cst_69 = arith.constant dense<0.000000e+00> : vector<8x16x112xf32>
    %97 = tpu.matmul %96, %71, %cst_69 {dimension_numbers = #tpu.dot_dimension_numbers<[2], [1], [1], [2], [0, 0, 0, 1, 1, 2], [0], [0]>} : vector<8x16x16xf32>, vector<8x16x112xf32>, vector<8x16x112xf32> -> vector<8x16x112xf32>
    "tpu.trace_stop"() : () -> ()
    %98 = vector.shape_cast %97 : vector<8x16x112xf32> to vector<128x112xf32>
    %c2_70 = arith.constant 2 : index
    %c0_71 = arith.constant 0 : index
    %c0_72 = arith.constant 0 : index
    %99 = vector.load %arg6[%c2_70, %c0_71, %c0_72] : memref<5x112x160xf32, #tpu.memory_space<vmem>>, vector<1x112x160xf32>
    %100 = vector.shape_cast %99 : vector<1x112x160xf32> to vector<112x160xf32>
    %cst_73 = arith.constant dense<0.000000e+00> : vector<128x160xf32>
    %101 = tpu.matmul %98, %100, %cst_73 {dimension_numbers = #tpu.dot_dimension_numbers<[1], [0], [0], [1], [0, 0, 1, 1], [], []>} : vector<128x112xf32>, vector<112x160xf32>, vector<128x160xf32> -> vector<128x160xf32>
    %102 = arith.addf %92, %101 : vector<128x160xf32>
    %c3_74 = arith.constant 3 : index
    %c0_75 = arith.constant 0 : index
    %c0_76 = arith.constant 0 : index
    %103 = vector.load %arg7[%c3_74, %c0_75, %c0_76] : memref<5x16x16xf32, #tpu.memory_space<vmem>>, vector<1x16x16xf32>
    %104 = vector.shape_cast %103 : vector<1x16x16xf32> to vector<16x16xf32>
    %105 = vector.shape_cast %104 : vector<16x16xf32> to vector<1x16x16xf32>
    %106 = vector.broadcast %105 : vector<1x16x16xf32> to vector<8x16x16xf32>
    "tpu.trace_start"() <{level = 10 : i32, message = "btr,brn->btn"}> : () -> ()
    %cst_77 = arith.constant dense<0.000000e+00> : vector<8x16x112xf32>
    %107 = tpu.matmul %106, %71, %cst_77 {dimension_numbers = #tpu.dot_dimension_numbers<[2], [1], [1], [2], [0, 0, 0, 1, 1, 2], [0], [0]>} : vector<8x16x16xf32>, vector<8x16x112xf32>, vector<8x16x112xf32> -> vector<8x16x112xf32>
    "tpu.trace_stop"() : () -> ()
    %108 = vector.shape_cast %107 : vector<8x16x112xf32> to vector<128x112xf32>
    %c3_78 = arith.constant 3 : index
    %c0_79 = arith.constant 0 : index
    %c0_80 = arith.constant 0 : index
    %109 = vector.load %arg6[%c3_78, %c0_79, %c0_80] : memref<5x112x160xf32, #tpu.memory_space<vmem>>, vector<1x112x160xf32>
    %110 = vector.shape_cast %109 : vector<1x112x160xf32> to vector<112x160xf32>
    %cst_81 = arith.constant dense<0.000000e+00> : vector<128x160xf32>
    %111 = tpu.matmul %108, %110, %cst_81 {dimension_numbers = #tpu.dot_dimension_numbers<[1], [0], [0], [1], [0, 0, 1, 1], [], []>} : vector<128x112xf32>, vector<112x160xf32>, vector<128x160xf32> -> vector<128x160xf32>
    %112 = arith.addf %102, %111 : vector<128x160xf32>
    %c4_82 = arith.constant 4 : index
    %c0_83 = arith.constant 0 : index
    %c0_84 = arith.constant 0 : index
    %113 = vector.load %arg7[%c4_82, %c0_83, %c0_84] : memref<5x16x16xf32, #tpu.memory_space<vmem>>, vector<1x16x16xf32>
    %114 = vector.shape_cast %113 : vector<1x16x16xf32> to vector<16x16xf32>
    %115 = vector.shape_cast %114 : vector<16x16xf32> to vector<1x16x16xf32>
    %116 = vector.broadcast %115 : vector<1x16x16xf32> to vector<8x16x16xf32>
    "tpu.trace_start"() <{level = 10 : i32, message = "btr,brn->btn"}> : () -> ()
    %cst_85 = arith.constant dense<0.000000e+00> : vector<8x16x112xf32>
    %117 = tpu.matmul %116, %71, %cst_85 {dimension_numbers = #tpu.dot_dimension_numbers<[2], [1], [1], [2], [0, 0, 0, 1, 1, 2], [0], [0]>} : vector<8x16x16xf32>, vector<8x16x112xf32>, vector<8x16x112xf32> -> vector<8x16x112xf32>
    "tpu.trace_stop"() : () -> ()
    %118 = vector.shape_cast %117 : vector<8x16x112xf32> to vector<128x112xf32>
    %c4_86 = arith.constant 4 : index
    %c0_87 = arith.constant 0 : index
    %c0_88 = arith.constant 0 : index
    %119 = vector.load %arg6[%c4_86, %c0_87, %c0_88] : memref<5x112x160xf32, #tpu.memory_space<vmem>>, vector<1x112x160xf32>
    %120 = vector.shape_cast %119 : vector<1x112x160xf32> to vector<112x160xf32>
    %cst_89 = arith.constant dense<0.000000e+00> : vector<128x160xf32>
    %121 = tpu.matmul %118, %120, %cst_89 {dimension_numbers = #tpu.dot_dimension_numbers<[1], [0], [0], [1], [0, 0, 1, 1], [], []>} : vector<128x112xf32>, vector<112x160xf32>, vector<128x160xf32> -> vector<128x160xf32>
    %122 = arith.addf %112, %121 : vector<128x160xf32>
    %123 = vector.shape_cast %122 : vector<128x160xf32> to vector<8x16x160xf32>
    %124 = vector.extract_strided_slice %123 {offsets = [0, 0, 0], sizes = [8, 8, 160], strides = [1, 1, 1]} : vector<8x16x160xf32> to vector<8x8x160xf32>
    %125 = vector.extract_strided_slice %123 {offsets = [0, 8, 0], sizes = [8, 8, 160], strides = [1, 1, 1]} : vector<8x16x160xf32> to vector<8x8x160xf32>
    %126 = arith.maximumf %124, %125 : vector<8x8x160xf32>
    %127 = vector.shape_cast %126 : vector<8x8x160xf32> to vector<64x160xf32>
    %c0_90 = arith.constant 0 : index
    %c0_91 = arith.constant 0 : index
    %c0_92 = arith.constant 0 : index
    %128 = vector.load %arg8[%c0_90, %c0_91, %c0_92] : memref<2x160x80xf32, #tpu.memory_space<vmem>>, vector<1x160x80xf32>
    %129 = vector.shape_cast %128 : vector<1x160x80xf32> to vector<160x80xf32>
    %cst_93 = arith.constant dense<0.000000e+00> : vector<64x80xf32>
    %130 = tpu.matmul %127, %129, %cst_93 {dimension_numbers = #tpu.dot_dimension_numbers<[1], [0], [0], [1], [0, 0, 1, 1], [], []>} : vector<64x160xf32>, vector<160x80xf32>, vector<64x80xf32> -> vector<64x80xf32>
    %c1_94 = arith.constant 1 : index
    %c0_95 = arith.constant 0 : index
    %c0_96 = arith.constant 0 : index
    %131 = vector.load %arg8[%c1_94, %c0_95, %c0_96] : memref<2x160x80xf32, #tpu.memory_space<vmem>>, vector<1x160x80xf32>
    %132 = vector.shape_cast %131 : vector<1x160x80xf32> to vector<160x80xf32>
    %cst_97 = arith.constant dense<0.000000e+00> : vector<64x80xf32>
    %133 = tpu.matmul %127, %132, %cst_97 {dimension_numbers = #tpu.dot_dimension_numbers<[1], [0], [0], [1], [0, 0, 1, 1], [], []>} : vector<64x160xf32>, vector<160x80xf32>, vector<64x80xf32> -> vector<64x80xf32>
    %134 = arith.maximumf %130, %133 : vector<64x80xf32>
    %c0_98 = arith.constant 0 : index
    %c0_99 = arith.constant 0 : index
    %135 = vector.load %arg9[%c0_98, %c0_99] : memref<1x80xf32, #tpu.memory_space<vmem>>, vector<1x80xf32>
    %136 = vector.shape_cast %135 : vector<1x80xf32> to vector<80xf32>
    %137 = vector.shape_cast %136 : vector<80xf32> to vector<1x80xf32>
    %138 = vector.broadcast %137 : vector<1x80xf32> to vector<64x80xf32>
    %139 = arith.addf %134, %138 : vector<64x80xf32>
    %cst_100 = arith.constant 0.000000e+00 : f32
    %140 = vector.broadcast %cst_100 : f32 to vector<64x80xf32>
    %141 = arith.maximumf %139, %140 : vector<64x80xf32>
    %142 = vector.shape_cast %141 : vector<64x80xf32> to vector<8x8x80xf32>
    %cst_101 = arith.constant 0.000000e+00 : f32
    %143 = vector.broadcast %cst_101 : f32 to vector<8x128xf32>
    %144 = vector.extract_strided_slice %142 {offsets = [0, 0, 0], sizes = [8, 1, 80], strides = [1, 1, 1]} : vector<8x8x80xf32> to vector<8x1x80xf32>
    %145 = vector.shape_cast %144 : vector<8x1x80xf32> to vector<8x80xf32>
    %c0_102 = arith.constant 0 : index
    %c0_103 = arith.constant 0 : index
    %c0_104 = arith.constant 0 : index
    %146 = vector.load %arg10[%c0_102, %c0_103, %c0_104] : memref<5x80x128xf32, #tpu.memory_space<vmem>>, vector<1x80x128xf32>
    %147 = vector.shape_cast %146 : vector<1x80x128xf32> to vector<80x128xf32>
    %cst_105 = arith.constant dense<0.000000e+00> : vector<8x128xf32>
    %148 = tpu.matmul %145, %147, %cst_105 {dimension_numbers = #tpu.dot_dimension_numbers<[1], [0], [0], [1], [0, 0, 1, 1], [], []>} : vector<8x80xf32>, vector<80x128xf32>, vector<8x128xf32> -> vector<8x128xf32>
    %149 = arith.addf %143, %148 : vector<8x128xf32>
    %150 = vector.extract_strided_slice %142 {offsets = [0, 1, 0], sizes = [8, 1, 80], strides = [1, 1, 1]} : vector<8x8x80xf32> to vector<8x1x80xf32>
    %151 = vector.shape_cast %150 : vector<8x1x80xf32> to vector<8x80xf32>
    %c1_106 = arith.constant 1 : index
    %c0_107 = arith.constant 0 : index
    %c0_108 = arith.constant 0 : index
    %152 = vector.load %arg10[%c1_106, %c0_107, %c0_108] : memref<5x80x128xf32, #tpu.memory_space<vmem>>, vector<1x80x128xf32>
    %153 = vector.shape_cast %152 : vector<1x80x128xf32> to vector<80x128xf32>
    %cst_109 = arith.constant dense<0.000000e+00> : vector<8x128xf32>
    %154 = tpu.matmul %151, %153, %cst_109 {dimension_numbers = #tpu.dot_dimension_numbers<[1], [0], [0], [1], [0, 0, 1, 1], [], []>} : vector<8x80xf32>, vector<80x128xf32>, vector<8x128xf32> -> vector<8x128xf32>
    %155 = arith.addf %149, %154 : vector<8x128xf32>
    %156 = vector.extract_strided_slice %142 {offsets = [0, 2, 0], sizes = [8, 1, 80], strides = [1, 1, 1]} : vector<8x8x80xf32> to vector<8x1x80xf32>
    %157 = vector.shape_cast %156 : vector<8x1x80xf32> to vector<8x80xf32>
    %c2_110 = arith.constant 2 : index
    %c0_111 = arith.constant 0 : index
    %c0_112 = arith.constant 0 : index
    %158 = vector.load %arg10[%c2_110, %c0_111, %c0_112] : memref<5x80x128xf32, #tpu.memory_space<vmem>>, vector<1x80x128xf32>
    %159 = vector.shape_cast %158 : vector<1x80x128xf32> to vector<80x128xf32>
    %cst_113 = arith.constant dense<0.000000e+00> : vector<8x128xf32>
    %160 = tpu.matmul %157, %159, %cst_113 {dimension_numbers = #tpu.dot_dimension_numbers<[1], [0], [0], [1], [0, 0, 1, 1], [], []>} : vector<8x80xf32>, vector<80x128xf32>, vector<8x128xf32> -> vector<8x128xf32>
    %161 = arith.addf %155, %160 : vector<8x128xf32>
    %162 = vector.extract_strided_slice %142 {offsets = [0, 3, 0], sizes = [8, 1, 80], strides = [1, 1, 1]} : vector<8x8x80xf32> to vector<8x1x80xf32>
    %163 = vector.shape_cast %162 : vector<8x1x80xf32> to vector<8x80xf32>
    %c3_114 = arith.constant 3 : index
    %c0_115 = arith.constant 0 : index
    %c0_116 = arith.constant 0 : index
    %164 = vector.load %arg10[%c3_114, %c0_115, %c0_116] : memref<5x80x128xf32, #tpu.memory_space<vmem>>, vector<1x80x128xf32>
    %165 = vector.shape_cast %164 : vector<1x80x128xf32> to vector<80x128xf32>
    %cst_117 = arith.constant dense<0.000000e+00> : vector<8x128xf32>
    %166 = tpu.matmul %163, %165, %cst_117 {dimension_numbers = #tpu.dot_dimension_numbers<[1], [0], [0], [1], [0, 0, 1, 1], [], []>} : vector<8x80xf32>, vector<80x128xf32>, vector<8x128xf32> -> vector<8x128xf32>
    %167 = arith.addf %161, %166 : vector<8x128xf32>
    %168 = vector.extract_strided_slice %142 {offsets = [0, 4, 0], sizes = [8, 1, 80], strides = [1, 1, 1]} : vector<8x8x80xf32> to vector<8x1x80xf32>
    %169 = vector.shape_cast %168 : vector<8x1x80xf32> to vector<8x80xf32>
    %c4_118 = arith.constant 4 : index
    %c0_119 = arith.constant 0 : index
    %c0_120 = arith.constant 0 : index
    %170 = vector.load %arg10[%c4_118, %c0_119, %c0_120] : memref<5x80x128xf32, #tpu.memory_space<vmem>>, vector<1x80x128xf32>
    %171 = vector.shape_cast %170 : vector<1x80x128xf32> to vector<80x128xf32>
    %cst_121 = arith.constant dense<0.000000e+00> : vector<8x128xf32>
    %172 = tpu.matmul %169, %171, %cst_121 {dimension_numbers = #tpu.dot_dimension_numbers<[1], [0], [0], [1], [0, 0, 1, 1], [], []>} : vector<8x80xf32>, vector<80x128xf32>, vector<8x128xf32> -> vector<8x128xf32>
    %173 = arith.addf %167, %172 : vector<8x128xf32>
    %c0_122 = arith.constant 0 : index
    %c0_123 = arith.constant 0 : index
    %174 = vector.load %arg11[%c0_122, %c0_123] : memref<1x128xf32, #tpu.memory_space<vmem>>, vector<1x128xf32>
    %175 = vector.shape_cast %174 : vector<1x128xf32> to vector<128xf32>
    %176 = vector.shape_cast %175 : vector<128xf32> to vector<1x128xf32>
    %177 = vector.broadcast %176 : vector<1x128xf32> to vector<8x128xf32>
    %178 = arith.addf %173, %177 : vector<8x128xf32>
    %cst_124 = arith.constant 0.000000e+00 : f32
    %179 = vector.broadcast %cst_124 : f32 to vector<8x128xf32>
    %180 = arith.maximumf %178, %179 : vector<8x128xf32>
    %c0_125 = arith.constant 0 : index
    %c0_126 = arith.constant 0 : index
    %181 = vector.load %arg12[%c0_125, %c0_126] : memref<128x128xf32, #tpu.memory_space<vmem>>, vector<128x128xf32>
    %cst_127 = arith.constant dense<0.000000e+00> : vector<8x128xf32>
    %182 = tpu.matmul %180, %181, %cst_127 {dimension_numbers = #tpu.dot_dimension_numbers<[1], [0], [0], [1], [0, 0, 1, 1], [], []>} : vector<8x128xf32>, vector<128x128xf32>, vector<8x128xf32> -> vector<8x128xf32>
    %c0_128 = arith.constant 0 : index
    %c0_129 = arith.constant 0 : index
    %183 = vector.load %arg13[%c0_128, %c0_129] : memref<1x128xf32, #tpu.memory_space<vmem>>, vector<1x128xf32>
    %184 = vector.shape_cast %183 : vector<1x128xf32> to vector<128xf32>
    %185 = vector.shape_cast %184 : vector<128xf32> to vector<1x128xf32>
    %186 = vector.broadcast %185 : vector<1x128xf32> to vector<8x128xf32>
    %187 = arith.addf %182, %186 : vector<8x128xf32>
    %cst_130 = arith.constant 0.000000e+00 : f32
    %188 = vector.broadcast %cst_130 : f32 to vector<8x128xf32>
    %189 = arith.maximumf %187, %188 : vector<8x128xf32>
    %c0_131 = arith.constant 0 : index
    %c0_132 = arith.constant 0 : index
    %190 = vector.load %arg14[%c0_131, %c0_132] : memref<128x128xf32, #tpu.memory_space<vmem>>, vector<128x128xf32>
    %cst_133 = arith.constant dense<0.000000e+00> : vector<8x128xf32>
    %191 = tpu.matmul %189, %190, %cst_133 {dimension_numbers = #tpu.dot_dimension_numbers<[1], [0], [0], [1], [0, 0, 1, 1], [], []>} : vector<8x128xf32>, vector<128x128xf32>, vector<8x128xf32> -> vector<8x128xf32>
    %c0_134 = arith.constant 0 : index
    %c0_135 = arith.constant 0 : index
    %192 = vector.load %arg15[%c0_134, %c0_135] : memref<1x128xf32, #tpu.memory_space<vmem>>, vector<1x128xf32>
    %193 = vector.shape_cast %192 : vector<1x128xf32> to vector<128xf32>
    %194 = vector.shape_cast %193 : vector<128xf32> to vector<1x128xf32>
    %195 = vector.broadcast %194 : vector<1x128xf32> to vector<8x128xf32>
    %196 = arith.addf %191, %195 : vector<8x128xf32>
    %c0_136 = arith.constant 0 : index
    %c0_137 = arith.constant 0 : index
    %197 = vector.load %arg16[%c0_136, %c0_137] : memref<8x128xf32, #tpu.memory_space<vmem>>, vector<8x128xf32>
    tpu.vector_store %arg16[%c0_136, %c0_137], %196 {strides = array<i32>} : memref<8x128xf32, #tpu.memory_space<vmem>>, vector<8x128xf32>,
    return
  }
  func.func @transform_0(%arg0: i32) -> (i32, i32, i32) {
    %c0_i32 = arith.constant 0 : i32
    %c0_i32_0 = arith.constant 0 : i32
    %c0_i32_1 = arith.constant 0 : i32
    return %arg0, %c0_i32, %c0_i32_0 : i32, i32, i32
  }
  func.func @transform_1(%arg0: i32) -> (i32, i32, i32) {
    %c0_i32 = arith.constant 0 : i32
    %c0_i32_0 = arith.constant 0 : i32
    %c0_i32_1 = arith.constant 0 : i32
    %c0_i32_2 = arith.constant 0 : i32
    return %c0_i32, %c0_i32_0, %c0_i32_1 : i32, i32, i32
  }
  func.func @transform_2(%arg0: i32) -> (i32, i32, i32) {
    %c0_i32 = arith.constant 0 : i32
    %c0_i32_0 = arith.constant 0 : i32
    %c0_i32_1 = arith.constant 0 : i32
    %c0_i32_2 = arith.constant 0 : i32
    return %c0_i32, %c0_i32_0, %c0_i32_1 : i32, i32, i32
  }
  func.func @transform_3(%arg0: i32) -> (i32, i32, i32) {
    %c0_i32 = arith.constant 0 : i32
    %c0_i32_0 = arith.constant 0 : i32
    %c0_i32_1 = arith.constant 0 : i32
    %c0_i32_2 = arith.constant 0 : i32
    return %c0_i32, %c0_i32_0, %c0_i32_1 : i32, i32, i32
  }
  func.func @transform_4(%arg0: i32) -> (i32, i32) {
    %c0_i32 = arith.constant 0 : i32
    %c0_i32_0 = arith.constant 0 : i32
    %c0_i32_1 = arith.constant 0 : i32
    return %c0_i32, %c0_i32_0 : i32, i32
  }
  func.func @transform_5(%arg0: i32) -> (i32, i32, i32) {
    %c0_i32 = arith.constant 0 : i32
    %c0_i32_0 = arith.constant 0 : i32
    %c0_i32_1 = arith.constant 0 : i32
    %c0_i32_2 = arith.constant 0 : i32
    return %c0_i32, %c0_i32_0, %c0_i32_1 : i32, i32, i32
  }
  func.func @transform_6(%arg0: i32) -> (i32, i32, i32) {
    %c0_i32 = arith.constant 0 : i32
    %c0_i32_0 = arith.constant 0 : i32
    %c0_i32_1 = arith.constant 0 : i32
    %c0_i32_2 = arith.constant 0 : i32
    return %c0_i32, %c0_i32_0, %c0_i32_1 : i32, i32, i32
  }
  func.func @transform_7(%arg0: i32) -> (i32, i32, i32) {
    %c0_i32 = arith.constant 0 : i32
    %c0_i32_0 = arith.constant 0 : i32
    %c0_i32_1 = arith.constant 0 : i32
    %c0_i32_2 = arith.constant 0 : i32
    return %c0_i32, %c0_i32_0, %c0_i32_1 : i32, i32, i32
  }
  func.func @transform_8(%arg0: i32) -> (i32, i32) {
    %c0_i32 = arith.constant 0 : i32
    %c0_i32_0 = arith.constant 0 : i32
    %c0_i32_1 = arith.constant 0 : i32
    return %c0_i32, %c0_i32_0 : i32, i32
  }
  func.func @transform_9(%arg0: i32) -> (i32, i32, i32) {
    %c0_i32 = arith.constant 0 : i32
    %c0_i32_0 = arith.constant 0 : i32
    %c0_i32_1 = arith.constant 0 : i32
    %c0_i32_2 = arith.constant 0 : i32
    return %c0_i32, %c0_i32_0, %c0_i32_1 : i32, i32, i32
  }
  func.func @transform_10(%arg0: i32) -> (i32, i32) {
    %c0_i32 = arith.constant 0 : i32
    %c0_i32_0 = arith.constant 0 : i32
    %c0_i32_1 = arith.constant 0 : i32
    return %c0_i32, %c0_i32_0 : i32, i32
  }
  func.func @transform_11(%arg0: i32) -> (i32, i32) {
    %c0_i32 = arith.constant 0 : i32
    %c0_i32_0 = arith.constant 0 : i32
    %c0_i32_1 = arith.constant 0 : i32
    return %c0_i32, %c0_i32_0 : i32, i32
  }
  func.func @transform_12(%arg0: i32) -> (i32, i32) {
    %c0_i32 = arith.constant 0 : i32
    %c0_i32_0 = arith.constant 0 : i32
    %c0_i32_1 = arith.constant 0 : i32
    return %c0_i32, %c0_i32_0 : i32, i32
  }
  func.func @transform_13(%arg0: i32) -> (i32, i32) {
    %c0_i32 = arith.constant 0 : i32
    %c0_i32_0 = arith.constant 0 : i32
    %c0_i32_1 = arith.constant 0 : i32
    return %c0_i32, %c0_i32_0 : i32, i32
  }
  func.func @transform_14(%arg0: i32) -> (i32, i32) {
    %c0_i32 = arith.constant 0 : i32
    %c0_i32_0 = arith.constant 0 : i32
    %c0_i32_1 = arith.constant 0 : i32
    return %c0_i32, %c0_i32_0 : i32, i32
  }
  func.func @transform_15(%arg0: i32) -> (i32, i32) {
    %c0_i32 = arith.constant 0 : i32
    %c0_i32_0 = arith.constant 0 : i32
    return %arg0, %c0_i32 : i32, i32
  }
}

</mosaic_0001>

<bundles_post_ra>
// kernel: forward.1
= control target key start
LH: loop header
LB: loop body
LE: loop exit
PB: predicated region body
PF: predicated region fallthrough
CT: control target
= control target key end

     0   :  { %s19352_s0 = inlined_call_operand.vmem [shape: f32[16,32,32], index: 0, kind: input, shape index: {}]   ;;  %s19353_s1 = inlined_call_operand.vmem [shape: f32[5,32,224], index: 1, kind: input, shape index: {}]   ;;  %s19354_s2 = inlined_call_operand.vmem [shape: f32[5,32,32], index: 2, kind: input, shape index: {}]   ;;  %s19355_s3 = inlined_call_operand.vmem [shape: f32[2,224,112], index: 3, kind: input, shape index: {}]   ;;  %s19356_s4 = inlined_call_operand.vmem [shape: f32[1,112], index: 4, kind: input, shape index: {}]   ;;  %s19357_s5 = inlined_call_operand.vmem [shape: f32[5,112,160], index: 5, kind: input, shape index: {}]   ;;  %s19358_s6 = inlined_call_operand.vmem [shape: f32[5,16,16], index: 6, kind: input, shape index: {}]   ;;  %s19359_s7 = inlined_call_operand.vmem [shape: f32[2,160,80], index: 7, kind: input, shape index: {}]   ;;  %s19360_s8 = inlined_call_operand.vmem [shape: f32[1,80], index: 8, kind: input, shape index: {}]   ;;  %s19361_s9 = inlined_call_operand.vmem [shape: f32[5,80,128], index: 9, kind: input, shape index: {}]   ;;  %s19362_s10 = inlined_call_operand.vmem [shape: f32[1,128], index: 10, kind: input, shape index: {}]   ;;  %s19363_s11 = inlined_call_operand.vmem [shape: f32[128,128], index: 11, kind: input, shape index: {}]   ;;  %s19364_s12 = inlined_call_operand.vmem [shape: f32[1,128], index: 12, kind: input, shape index: {}]   ;;  %s19365_s13 = inlined_call_operand.vmem [shape: f32[128,128], index: 13, kind: input, shape index: {}]   ;;  %s19366_s14 = inlined_call_operand.vmem [shape: f32[1,128], index: 14, kind: input, shape index: {}]   ;;  %s19367_s15 = inlined_call_operand.hbm [shape: f32[16,128], index: 15, kind: output, shape index: {}]  }
   0x1   :  { %19371 = sst [smem:[#allocation21_spill]] %s19352_s0 }
   0x2   :  { %19372 = sst [smem:[#allocation22_spill]] %s19353_s1 }
   0x3   :  { %20 = vsyncpa [#allocation3], 0 }
   0x4   :  { %22 = vsyncpa [#allocation3 + $0x1], 0  ;;  %s15827_s18 = smov 0   ;;  %s15829_s19 = smov 0  }
   0x5   :  { %s15831_s20 = smov 0   ;;  %s15833_s21 = smov 0  }
   0x6 LB: > { %19373 = sst [smem:[#allocation5_spill]] %s15737_s20  ;;  %s15848_s22 = sadd.s32 4294967295, %s15741_s21   ;;  %s15741_s21 = sphi %s15833_s21, %s19406_s21   ;;  %s15737_s20 = sphi %s15831_s20, %s19408_s20   ;;  %s15733_s19 = sphi %s15829_s19, %s19410_s19   ;;  %s15729_s18 = sphi %s15827_s18, %s19409_s18  }
   0x7   : > { %s11925_s23 = sadd.s32 4294967294, %s15741_s21   ;;  %s15852_s24 = sadd.s32 1, %s15741_s21  }
   0x8   : > { %19374 = sst [smem:[#allocation6_spill]] %s15852_s24  ;;  %s355_s25 = sadd.s32 1, %s15737_s20 }
   0x9   : > { %s352_s26 = ssub.s32 %s15741_s21, %s15852_s24  ;;  %p365_p0 = scmp.ne.s32.totalorder %s15737_s20, %s15733_s19 }
   0xa   : > { %p353_p1 = scmp.eq.s32.totalorder %s352_s26, 0  ;;  %p366_p2 = scmp.eq.s32.totalorder %s15848_s22, 1 }
   0xb   : > { %p371_p3 = scmp.ne.s32.totalorder %s15733_s19, %s15729_s18  ;;  %p372_p4 = scmp.eq.s32.totalorder %s11925_s23, 1 }
   0xc   : > { %s15863_s27 = scalar_select %p353_p1, %s15737_s20, %s355_s25  }
   0xd   : > { %p15865_p5 = por %p366_p2, %p365_p0  ;;  %p15869_p6 = por %p372_p4, %p371_p3 }
   0xe   : > { %19375 = sst [smem:[#allocation7_spill]] %s15863_s27  ;;  %p11928_p7 = scmp.ge.s32.totalorder %s15741_s21, 1 }
   0xf   : > { %p442_p8 = scmp.lt.s32.totalorder %s15741_s21, 3 }
  0x11   : > { %p443_p9 = pnand %p11928_p7, %p442_p8 }
  0x13   : > { %446 = sbr.rel (%p443_p9) target bundleno = 3348 (0xd14), region = 80 }
  0x1a   : > { %s11930_s30 = sshll.u32 %s15848_s22, 3  ;;  %v15879_v0 = vld [vmem:[%s19354_s2] sm:$0xff]  ;;  %vm534_vm0 = vcmask 261120   ;;  %s19378_s0 = sld [smem:[#allocation21_spill]]  ;;  %v15923_v20 = vld [vmem:[%s19354_s2 + $0x8] sm:$0xff]  ;;  %v15930_v21 = vld [vmem:[%s19354_s2 + $0x10] sm:$0xff] }
  0x1b   : > { %p492_p10 = scmp.lt.s32.totalorder %s11930_s30, 15  ;;  %13309 = vmatprep.mubr.msk.f32.mxu0 %vm534_vm0, %v15879_v0  ;;  %13323 = vmatprep.mubr.msk.f32.mxu1 %vm534_vm0, %v15879_v0  ;;  %v15949_v28 = vld [vmem:[%s19354_s2 + $0x18] sm:$0xff]  ;;  %v16057_v52 = vld [vmem:[%s19354_s2 + $0x20] sm:$0xff]  ;;  %v11966_v53 = vld [vmem:[%s19354_s2 + $0x28] sm:$0xff]  ;;  %s19379_s1 = sld [smem:[#allocation22_spill]]  ;;  %vm6076_vm1 = vcmask 785408  }
  0x1c   : > { %v11967_v54 = vld [vmem:[%s19354_s2 + $0x30] sm:$0xff]  ;;  %v11968_v55 = vld [vmem:[%s19354_s2 + $0x38] sm:$0xff]  ;;  %vm6501_vm2 = vcmask 130048   ;;  %vm7774_vm3 = vcmask 916480   ;;  %vm15745_vm4 = vmmov 0   ;;  %vm11182_vm5 = vcmask 1041409  }
  0x1d   : > { %s19412_s30 = smov (!%p492_p10, %s11930_s30), 15  ;;  %vm11185_vm6 = vcmask 1042434   ;;  %vm11188_vm7 = vcmask 1043459   ;;  %vm11191_vm8 = vcmask 1044484   ;;  %vm11194_vm9 = vcmask 1045509   ;;  %s488_s24 = sand.u32 1, %s15733_s19  }
  0x1e   : > { %s12731_s23 = sshll.u32 %s19412_s30, 5  ;;  %vm11197_vm10 = vcmask 1046534   ;;  %vm11200_vm11 = vcmask 1047559   ;;  %vm11202_vm12 = vcmask 654336   ;;  %s12728_s17 = sshll.u32 %s15848_s22, 7 }
  0x1f   : > { %s19310_s20 = scalar_lea.hbm %s19367_s15, %s12728_s17  ;;  %s15746_s22 = smov [#allocation2]  }
  0x20   : > { %s15888_s27 = scalar_lea.vmem %s19378_s0, %s12731_s23 }
  0x21   : > { %v498_v1 = vld [vmem:[%s15888_s27] sm:$0xff]  ;;  %v499_v2 = vld [vmem:[%s15888_s27 + $0x8] sm:$0xff]  ;;  %v500_v3 = vld [vmem:[%s15888_s27 + $0x10] sm:$0xff] }
  0x22   : > { %v15893_v4 = vpack.c.bf16 %v499_v2, %v498_v1  ;;  %v501_v5 = vld [vmem:[%s15888_s27 + $0x18] sm:$0xff]  ;;  %v506_v7 = vld [vmem:[%s15888_s27 + $0x40] sm:$0xff]  ;;  %v507_v8 = vld [vmem:[%s15888_s27 + $0x48] sm:$0xff] }
  0x23   : > { %v15896_v6 = vpack.c.bf16 %v501_v5, %v500_v3  ;;  %v502_v9 = vld [vmem:[%s15888_s27 + $0x20] sm:$0xff]  ;;  %v503_v10 = vld [vmem:[%s15888_s27 + $0x28] sm:$0xff]  ;;  %v504_v12 = vld [vmem:[%s15888_s27 + $0x30] sm:$0xff]  ;;  %v15909_v14 = vpack.c.bf16 %v507_v8, %v506_v7  ;;  %v15743_v5 = vmov 0.0  }
  0x24   : > { %14327 = vmatprep.subr.bf16.mxu0 %v15893_v4  ;;  %v15904_v11 = vpack.c.bf16 %v503_v10, %v502_v9  ;;  %v505_v13 = vld [vmem:[%s15888_s27 + $0x38] sm:$0xff]  ;;  %v508_v15 = vld [vmem:[%s15888_s27 + $0x50] sm:$0xff]  ;;  %v510_v18 = vld [vmem:[%s15888_s27 + $0x60] sm:$0xff] }
  0x25   : > { %14329 = vmatpush3.bf16.msra.mxu0 %v15893_v4  ;;  %v15912_v16 = vpack.c.bf16 %v505_v13, %v504_v12  ;;  %v509_v17 = vld [vmem:[%s15888_s27 + $0x58] sm:$0xff]  ;;  %v511_v19 = vld [vmem:[%s15888_s27 + $0x68] sm:$0xff]  ;;  %v514_v24 = vld [vmem:[%s15888_s27 + $0x80] sm:$0xff] }
  0x26   : > { %14331 = vmatprep.subr.bf16.mxu0 %v15896_v6  ;;  %14335 = vmatprep.subr.bf16.mxu1 %v15904_v11  ;;  %v15932_v22 = vpack.c.bf16 %v509_v17, %v508_v15  ;;  %v15934_v23 = vpack.c.bf16 %v511_v19, %v510_v18  ;;  %v515_v25 = vld [vmem:[%s15888_s27 + $0x88] sm:$0xff]  ;;  %v512_v26 = vld [vmem:[%s15888_s27 + $0x70] sm:$0xff]  ;;  %v513_v27 = vld [vmem:[%s15888_s27 + $0x78] sm:$0xff] }
  0x27   : > { %14337 = vmatpush3.bf16.msra.mxu1 %v15904_v11  ;;  %v15952_v29 = vpack.c.bf16 %v515_v25, %v514_v24  ;;  %v516_v30 = vld [vmem:[%s15888_s27 + $0x90] sm:$0xff]  ;;  %v517_v31 = vld [vmem:[%s15888_s27 + $0x98] sm:$0xff]  ;;  %v15959_v32 = vpack.c.bf16 %v513_v27, %v512_v26  ;;  %v518_v33 = vld [vmem:[%s15888_s27 + $0xa0] sm:$0xff] }
  0x28   : > { %14339 = vmatprep.subr.bf16.mxu1 %v15912_v16  ;;  %v519_v34 = vld [vmem:[%s15888_s27 + $0xa8] sm:$0xff]  ;;  %v15970_v35 = vpack.c.bf16 %v517_v31, %v516_v30  ;;  %v522_v36 = vld [vmem:[%s15888_s27 + $0xc0] sm:$0xff]  ;;  %v520_v39 = vld [vmem:[%s15888_s27 + $0xb0] sm:$0xff] }
  0x29   : > { %14333 = vmatpush3.bf16.msra.mxu0 %v15896_v6  ;;  %v523_v37 = vld [vmem:[%s15888_s27 + $0xc8] sm:$0xff]  ;;  %v15979_v38 = vpack.c.bf16 %v519_v34, %v518_v33  ;;  %v521_v40 = vld [vmem:[%s15888_s27 + $0xb8] sm:$0xff]  ;;  %v524_v42 = vld [vmem:[%s15888_s27 + $0xd0] sm:$0xff] }
  0x2a   : > { %14343 = vmatprep.subr.bf16.mxu0 %v15909_v14  ;;  %v15990_v41 = vpack.c.bf16 %v523_v37, %v522_v36  ;;  %v525_v43 = vld [vmem:[%s15888_s27 + $0xd8] sm:$0xff]  ;;  %v15999_v44 = vpack.c.bf16 %v521_v40, %v520_v39  ;;  %v526_v45 = vld [vmem:[%s15888_s27 + $0xe0] sm:$0xff]  ;;  %v527_v46 = vld [vmem:[%s15888_s27 + $0xe8] sm:$0xff] }
  0x2b   : > { %14341 = vmatpush3.bf16.msra.mxu1 %v15912_v16  ;;  %v16010_v47 = vpack.c.bf16 %v525_v43, %v524_v42  ;;  %v16017_v48 = vpack.c.bf16 %v527_v46, %v526_v45  ;;  %v528_v49 = vld [vmem:[%s15888_s27 + $0xf0] sm:$0xff]  ;;  %v529_v50 = vld [vmem:[%s15888_s27 + $0xf8] sm:$0xff]  ;;  %v12002_v56 = vld [vmem:[%s19379_s1 + $0x48] sm:$0xff]  ;;  %s11929_s27 = sshll.u32 %s488_s24, 3 }
  0x2c   : > { %13310 = vmatmul.mubr.msk.f32.vlgmr.msra.gmra.mrb[0].mxu0 %vm534_vm0, %v15923_v20  ;;  %14351 = vmatprep.subr.bf16.mxu1 %v15934_v23  ;;  %v16033_v51 = vpack.c.bf16 %v529_v50, %v528_v49  ;;  %v12004_v57 = vld [vmem:[%s19379_s1 + $0x58] sm:$0xff]  ;;  %v12001_v59 = vld [vmem:[%s19379_s1 + $0x40] sm:$0xff]  ;;  %v12003_v60 = vld [vmem:[%s19379_s1 + $0x50] sm:$0xff]  ;;  %s490_s23 = scalar_lea.vmem [#allocation2], %s11929_s27  ;;  %s15683_s27 = sshll.u32 %s15746_s22, 4  ;;  %s15684_s27 = int_to_ptr.vmem [resolvable:$false] %s15683_s27 }
  0x2d   : > { %14345 = vmatpush3.bf16.msra.mxu0 %v15909_v14  ;;  %13312 = vmatprep.mubr.msk.f32.mxu0 %vm534_vm0, %v15930_v21  ;;  %v14454_v58 = vpack.c.bf16 %v12004_v57, %v12002_v56  ;;  %v14456_v61 = vpack.c.bf16 %v12003_v60, %v12001_v59  ;;  %v12006_v62 = vld [vmem:[%s19379_s1 + $0x68] sm:$0xff]  ;;  %v12008_v63 = vld [vmem:[%s19379_s1 + $0x78] sm:$0xff]  ;;  %v12005_v1 = vld [vmem:[%s19379_s1 + $0x60] sm:$0xff]  ;;  %s11866_s25 = sshll.u32 %s490_s23, 4  ;;  %s15685_s16 = scalar_lea.vmem %s15684_s27, 256  ;;  %s19312_s25 = int_to_ptr.vmem [resolvable:$true] %s11866_s25 }
  0x2e   : > { %14347 = vmatprep.subr.bf16.mxu0 %v15932_v22  ;;  %13324 = vmatmul.mubr.msk.f32.vlgmr.msra.gmra.mrb[0].mxu1 %vm534_vm0, %v15923_v20  ;;  %v12007_v2 = vld [vmem:[%s19379_s1 + $0x70] sm:$0xff]  ;;  %v1228_v7 = vld [vmem:[%s19379_s1 + $0x8] sm:$0xff]  ;;  %v1230_v8 = vld [vmem:[%s19379_s1 + $0x18] sm:$0xff]  ;;  %s15679_s30 = scalar_lea.vmem %s19312_s25, 128  ;;  %p15686_p0 = scmp.lt.s32.totalorder %s19312_s25, %s15684_s27 }
  0x2f   : > { %14353 = vmatpush3.bf16.msra.mxu1 %v15934_v23  ;;  %13326 = vmatprep.mubr.msk.f32.mxu1 %vm534_vm0, %v15930_v21  ;;  %v14460_v3 = vpack.c.bf16 %v12007_v2, %v12005_v1  ;;  %v14462_v9 = vpack.c.bf16 %v1230_v8, %v1228_v7  ;;  %v16186_v10 = vld [vmem:[%s19354_s2 + $0x40] sm:$0xff]  ;;  %v16191_v12 = vld [vmem:[%s19354_s2 + $0x48] sm:$0xff]  ;;  %v16203_v13 = vld [vmem:[%s19354_s2 + $0x50] sm:$0xff]  ;;  %p15680_p11 = scmp.ne.s32.totalorder %s19312_s25, %s15679_s30  ;;  %p15687_p1 = scmp.lt.s32.totalorder %s15685_s16, %s15679_s30 }
  0x30   : > { %13313 = vmatmul.mubr.msk.f32.gmra.mrb[2].mxu0 %vm534_vm0, %v15949_v28  ;;  %14355 = vmatprep.subr.bf16.mxu1 %v15959_v32  ;;  %v16208_v15 = vld [vmem:[%s19354_s2 + $0x58] sm:$0xff]  ;;  %v1227_v57 = vld [vmem:[%s19379_s1] sm:$0xff]  ;;  %v1232_v60 = vld [vmem:[%s19379_s1 + $0x28] sm:$0xff] }
  0x31   : > { %14349 = vmatpush3.bf16.msra.mxu0 %v15932_v22  ;;  %13337 = vmatprep.mubr.msk.f32.mxu0 %vm534_vm0, %v15879_v0  ;;  %v1233_v7 = vld [vmem:[%s19379_s1 + $0x30] sm:$0xff]  ;;  %p15681_p12 = pnand %p15680_p11, %p15865_p5  ;;  %p15688_p2 = por %p15687_p1, %p15686_p0 }
  0x32   : > { %14359 = vmatprep.subr.bf16.mxu0 %v15952_v29  ;;  %13327 = vmatmul.mubr.msk.f32.gmra.mrb[2].mxu1 %vm534_vm0, %v15949_v28 }
  0x33   : > { %14357 = vmatpush3.bf16.msra.mxu1 %v15959_v32  ;;  %13351 = vmatprep.mubr.msk.f32.mxu1 %vm534_vm0, %v15879_v0  ;;  %p15682_p13 = pneg %p15681_p12 }
  0x34   : > { %13338 = vmatmul.mubr.msk.f32.vlgmr.msra.gmra.mrb[4].mxu0 %vm534_vm0, %v15923_v20  ;;  %14367 = vmatprep.subr.bf16.mxu1 %v15979_v38 }
  0x35   : > { %14361 = vmatpush3.bf16.msra.mxu0 %v15952_v29  ;;  %13340 = vmatprep.mubr.msk.f32.mxu0 %vm534_vm0, %v15930_v21  ;;  %p15689_p3 = pnand %p15688_p2, %p15682_p13 }
  0x36   : > { %14363 = vmatprep.subr.bf16.mxu0 %v15970_v35  ;;  %13352 = vmatmul.mubr.msk.f32.vlgmr.msra.gmra.mrb[4].mxu1 %vm534_vm0, %v15923_v20 }
  0x37   : > { %14369 = vmatpush3.bf16.msra.mxu1 %v15979_v38  ;;  %13354 = vmatprep.mubr.msk.f32.mxu1 %vm534_vm0, %v15930_v21 }
  0x38   : > { %13341 = vmatmul.mubr.msk.f32.gmra.mrb[6].mxu0 %vm534_vm0, %v15949_v28  ;;  %14371 = vmatprep.subr.bf16.mxu1 %v15999_v44 }
  0x39   : > { %14365 = vmatpush3.bf16.msra.mxu0 %v15970_v35  ;;  %13365 = vmatprep.mubr.msk.f32.mxu0 %vm534_vm0, %v15879_v0 }
  0x3a   : > { %14375 = vmatprep.subr.bf16.mxu0 %v15990_v41  ;;  %13355 = vmatmul.mubr.msk.f32.gmra.mrb[6].mxu1 %vm534_vm0, %v15949_v28 }
  0x3b   : > { %14373 = vmatpush3.bf16.msra.mxu1 %v15999_v44  ;;  %13379 = vmatprep.mubr.msk.f32.mxu1 %vm534_vm0, %v15879_v0 }
  0x3c   : > { %13366 = vmatmul.mubr.msk.f32.vlgmr.msra.gmra.mrb[8].mxu0 %vm534_vm0, %v15923_v20  ;;  %14383 = vmatprep.subr.bf16.mxu1 %v16017_v48 }
  0x3d   : > { %14377 = vmatpush3.bf16.msra.mxu0 %v15990_v41  ;;  %13368 = vmatprep.mubr.msk.f32.mxu0 %vm534_vm0, %v15930_v21 }
  0x3e   : > { %14379 = vmatprep.subr.bf16.mxu0 %v16010_v47  ;;  %13380 = vmatmul.mubr.msk.f32.vlgmr.msra.gmra.mrb[8].mxu1 %vm534_vm0, %v15923_v20 }
  0x3f   : > { %14385 = vmatpush3.bf16.msra.mxu1 %v16017_v48  ;;  %13382 = vmatprep.mubr.msk.f32.mxu1 %vm534_vm0, %v15930_v21 }
  0x40   : > { %13369 = vmatmul.mubr.msk.f32.gmra.mrb[10].mxu0 %vm534_vm0, %v15949_v28  ;;  %14387 = vmatprep.subr.bf16.mxu1 %v16033_v51 }
  0x41   : > { %14381 = vmatpush3.bf16.msra.mxu0 %v16010_v47  ;;  %13393 = vmatprep.mubr.msk.f32.mxu0 %vm534_vm0, %v15879_v0 }
  0x42   : > { %14391 = vmatprep.subr.bf16.mxu0 %v15893_v4  ;;  %13383 = vmatmul.mubr.msk.f32.gmra.mrb[10].mxu1 %vm534_vm0, %v15949_v28 }
  0x43   : > { %14389 = vmatpush3.bf16.msra.mxu1 %v16033_v51  ;;  %13407 = vmatprep.mubr.msk.f32.mxu1 %vm534_vm0, %v15879_v0  ;;  %v14458_v0 = vpack.c.bf16 %v12008_v63, %v12006_v62 }
  0x44   : > { %13394 = vmatmul.mubr.msk.f32.vlgmr.msra.gmra.mrb[12].mxu0 %vm534_vm0, %v15923_v20  ;;  %14399 = vmatprep.subr.bf16.mxu1 %v15904_v11 }
  0x45   : > { %14393 = vmatpush3.bf16.msra.mxu0 %v15893_v4  ;;  %13396 = vmatprep.mubr.msk.f32.mxu0 %vm534_vm0, %v15930_v21 }
  0x46   : > { %14395 = vmatprep.subr.bf16.mxu0 %v15896_v6  ;;  %13408 = vmatmul.mubr.msk.f32.vlgmr.msra.gmra.mrb[12].mxu1 %vm534_vm0, %v15923_v20 }
  0x47   : > { %14401 = vmatpush3.bf16.msra.mxu1 %v15904_v11  ;;  %13410 = vmatprep.mubr.msk.f32.mxu1 %vm534_vm0, %v15930_v21 }
  0x48   : > { %13397 = vmatmul.mubr.msk.f32.gmra.mrb[14].mxu0 %vm534_vm0, %v15949_v28  ;;  %14403 = vmatprep.subr.bf16.mxu1 %v15912_v16 }
  0x49   : > { %14397 = vmatpush3.bf16.msra.mxu0 %v15896_v6  ;;  %13421 = vmatprep.mubr.msk.f32.mxu0 %vm534_vm0, %v16057_v52 }
  0x4a   : > { %13411 = vmatmul.mubr.msk.f32.gmra.mrb[14].mxu1 %vm534_vm0, %v15949_v28  ;;  %14407 = vmatprep.subr.bf16.mxu0 %v15909_v14 }
  0x4b   : > { %14405 = vmatpush3.bf16.msra.mxu1 %v15912_v16  ;;  %13435 = vmatprep.mubr.msk.f32.mxu1 %vm534_vm0, %v16057_v52 }
  0x4c   : > { %13422 = vmatmul.mubr.msk.f32.vlgmr.msra.gmra.mrb[16].mxu0 %vm534_vm0, %v11966_v53  ;;  %14415 = vmatprep.subr.bf16.mxu1 %v15934_v23 }
  0x4d   : > { %13424 = vmatprep.mubr.msk.f32.mxu0 %vm534_vm0, %v11967_v54  ;;  %14409 = vmatpush3.bf16.msra.mxu0 %v15909_v14 }
  0x4e   : > { %13436 = vmatmul.mubr.msk.f32.vlgmr.msra.gmra.mrb[16].mxu1 %vm534_vm0, %v11966_v53  ;;  %14411 = vmatprep.subr.bf16.mxu0 %v15932_v22 }
  0x4f   : > { %13438 = vmatprep.mubr.msk.f32.mxu1 %vm534_vm0, %v11967_v54  ;;  %14417 = vmatpush3.bf16.msra.mxu1 %v15934_v23 }
  0x50   : > { %13425 = vmatmul.mubr.msk.f32.gmra.mrb[18].mxu0 %vm534_vm0, %v11968_v55  ;;  %14419 = vmatprep.subr.bf16.mxu1 %v15959_v32 }
  0x51   : > { %13449 = vmatprep.mubr.msk.f32.mxu0 %vm534_vm0, %v16057_v52  ;;  %14413 = vmatpush3.bf16.msra.mxu0 %v15932_v22 }
  0x52   : > { %13439 = vmatmul.mubr.msk.f32.gmra.mrb[18].mxu1 %vm534_vm0, %v11968_v55  ;;  %14423 = vmatprep.subr.bf16.mxu0 %v15952_v29 }
  0x53   : > { %13463 = vmatprep.mubr.msk.f32.mxu1 %vm534_vm0, %v16057_v52  ;;  %14421 = vmatpush3.bf16.msra.mxu1 %v15959_v32 }
  0x54   : > { %13450 = vmatmul.mubr.msk.f32.vlgmr.msra.gmra.mrb[20].mxu0 %vm534_vm0, %v11966_v53  ;;  %14431 = vmatprep.subr.bf16.mxu1 %v15979_v38 }
  0x55   : > { %13452 = vmatprep.mubr.msk.f32.mxu0 %vm534_vm0, %v11967_v54  ;;  %14425 = vmatpush3.bf16.msra.mxu0 %v15952_v29 }
  0x56   : > { %14427 = vmatprep.subr.bf16.mxu0 %v15970_v35  ;;  %13464 = vmatmul.mubr.msk.f32.vlgmr.msra.gmra.mrb[20].mxu1 %vm534_vm0, %v11966_v53 }
  0x57   : > { %13466 = vmatprep.mubr.msk.f32.mxu1 %vm534_vm0, %v11967_v54  ;;  %14433 = vmatpush3.bf16.msra.mxu1 %v15979_v38 }
  0x58   : > { %13453 = vmatmul.mubr.msk.f32.gmra.mrb[22].mxu0 %vm534_vm0, %v11968_v55  ;;  %14435 = vmatprep.subr.bf16.mxu1 %v15999_v44 }
  0x59   : > { %14429 = vmatpush3.bf16.msra.mxu0 %v15970_v35  ;;  %13477 = vmatprep.mubr.msk.f32.mxu0 %vm534_vm0, %v16057_v52 }
  0x5a   : > { %14439 = vmatprep.subr.bf16.mxu0 %v15990_v41  ;;  %13467 = vmatmul.mubr.msk.f32.gmra.mrb[22].mxu1 %vm534_vm0, %v11968_v55 }
  0x5b   : > { %13491 = vmatprep.mubr.msk.f32.mxu1 %vm534_vm0, %v16057_v52  ;;  %14437 = vmatpush3.bf16.msra.mxu1 %v15999_v44 }
  0x5c   : > { %13478 = vmatmul.mubr.msk.f32.vlgmr.msra.gmra.mrb[24].mxu0 %vm534_vm0, %v11966_v53  ;;  %14447 = vmatprep.subr.bf16.mxu1 %v16017_v48 }
  0x5d   : > { %13480 = vmatprep.mubr.msk.f32.mxu0 %vm534_vm0, %v11967_v54  ;;  %14441 = vmatpush3.bf16.msra.mxu0 %v15990_v41 }
  0x5e   : > { %14443 = vmatprep.subr.bf16.mxu0 %v16010_v47  ;;  %13492 = vmatmul.mubr.msk.f32.vlgmr.msra.gmra.mrb[24].mxu1 %vm534_vm0, %v11966_v53 }
  0x5f   : > { %13494 = vmatprep.mubr.msk.f32.mxu1 %vm534_vm0, %v11967_v54  ;;  %14449 = vmatpush3.bf16.msra.mxu1 %v16017_v48 }
  0x60   : > { %13481 = vmatmul.mubr.msk.f32.gmra.mrb[26].mxu0 %vm534_vm0, %v11968_v55  ;;  %14451 = vmatprep.subr.bf16.mxu1 %v16033_v51 }
  0x61   : > { %14445 = vmatpush3.bf16.msra.mxu0 %v16010_v47  ;;  %13505 = vmatprep.mubr.msk.f32.mxu0 %vm534_vm0, %v16057_v52 }
  0x62   : > { %13495 = vmatmul.mubr.msk.f32.gmra.mrb[26].mxu1 %vm534_vm0, %v11968_v55  ;;  %14455 = vmatprep.subr.bf16.mxu0 %v14454_v58  ;;  %v1229_v58 = vld [vmem:[%s19379_s1 + $0x10] sm:$0xff] }
  0x63   : > { %13519 = vmatprep.mubr.msk.f32.mxu1 %vm534_vm0, %v16057_v52  ;;  %14453 = vmatpush3.bf16.msra.mxu1 %v16033_v51  ;;  %v14464_v63 = vpack.c.bf16 %v1229_v58, %v1227_v57 }
  0x64   : > { %13506 = vmatmul.mubr.msk.f32.vlgmr.msra.gmra.mrb[28].mxu0 %vm534_vm0, %v11966_v53  ;;  %14471 = vmatprep.subr.bf16.mxu1 %v15893_v4 }
  0x65   : > { %13508 = vmatprep.mubr.msk.f32.mxu0 %vm534_vm0, %v11967_v54  ;;  %14457 = vmatpush1.bf16.msra.mxu0 %v14456_v61  ;;  %v1234_v61 = vld [vmem:[%s19379_s1 + $0x38] sm:$0xff] }
  0x66   : > { %13520 = vmatmul.mubr.msk.f32.vlgmr.msra.gmra.mrb[28].mxu1 %vm534_vm0, %v11966_v53  ;;  %14459 = vmatprep.subr.bf16.mxu0 %v14458_v0  ;;  %v14466_v2 = vpack.c.bf16 %v1234_v61, %v1232_v60 }
  0x67   : > { %13522 = vmatprep.mubr.msk.f32.mxu1 %vm534_vm0, %v11967_v54  ;;  %14473 = vmatpush3.bf16.msra.mxu1 %v15893_v4 }
  0x68   : > { %13509 = vmatmul.mubr.msk.f32.gmra.mrb[30].mxu0 %vm534_vm0, %v11968_v55  ;;  %14475 = vmatprep.subr.bf16.mxu1 %v15896_v6 }
  0x69   : > { %14461 = vmatpush1.bf16.msra.mxu0 %v14460_v3  ;;  %2101 = vmatprep.mubr.f32.mxu0 %v15743_v5  ;;  %v1231_v3 = vld [vmem:[%s19379_s1 + $0x20] sm:$0xff] }
  0x6a   : > { %13523 = vmatmul.mubr.msk.f32.gmra.mrb[30].mxu1 %vm534_vm0, %v11968_v55  ;;  %14463 = vmatprep.subr.bf16.mxu0 %v14462_v9 }
  0x6b   : > { %14477 = vmatpush3.bf16.msra.mxu1 %v15896_v6  ;;  %13533 = vmatprep.mubr.msk.f32.mxu1 %vm534_vm0, %v16186_v10 }
  0x6c   : > { %14479 = vmatprep.subr.bf16.mxu1 %v15904_v11 }
  0x6e   : > { %13534 = vmatmul.mubr.msk.f32.vlgmr.msra.gmra.mrb[32].mxu1 %vm534_vm0, %v16191_v12 }
  0x6f   : > { %14481 = vmatpush3.bf16.msra.mxu1 %v15904_v11  ;;  %13536 = vmatprep.mubr.msk.f32.mxu1 %vm534_vm0, %v16203_v13 }
  0x70   : > { %14483 = vmatprep.subr.bf16.mxu1 %v15912_v16 }
  0x72   : > { %13537 = vmatmul.mubr.msk.f32.gmra.mrb[34].mxu1 %vm534_vm0, %v16208_v15 }
  0x73   : > { %14485 = vmatpush3.bf16.msra.mxu1 %v15912_v16  ;;  %13547 = vmatprep.mubr.msk.f32.mxu1 %vm534_vm0, %v16186_v10 }
  0x74   : > { %14487 = vmatprep.subr.bf16.mxu1 %v15909_v14 }
  0x76   : > { %13548 = vmatmul.mubr.msk.f32.vlgmr.msra.gmra.mrb[36].mxu1 %vm534_vm0, %v16191_v12 }
  0x77   : > { %13550 = vmatprep.mubr.msk.f32.mxu1 %vm534_vm0, %v16203_v13  ;;  %14489 = vmatpush3.bf16.msra.mxu1 %v15909_v14 }
  0x78   : > { %14491 = vmatprep.subr.bf16.mxu1 %v15932_v22 }
  0x7a   : > { %13551 = vmatmul.mubr.msk.f32.gmra.mrb[38].mxu1 %vm534_vm0, %v16208_v15 }
  0x7b   : > { %14493 = vmatpush3.bf16.msra.mxu1 %v15932_v22  ;;  %13561 = vmatprep.mubr.msk.f32.mxu1 %vm534_vm0, %v16186_v10 }
  0x7c   : > { %14495 = vmatprep.subr.bf16.mxu1 %v15934_v23 }
  0x7e   : > { %13562 = vmatmul.mubr.msk.f32.vlgmr.msra.gmra.mrb[40].mxu1 %vm534_vm0, %v16191_v12 }
  0x7f   : > { %13564 = vmatprep.mubr.msk.f32.mxu1 %vm534_vm0, %v16203_v13  ;;  %14497 = vmatpush3.bf16.msra.mxu1 %v15934_v23 }
  0x80   : > { %14499 = vmatprep.subr.bf16.mxu1 %v15959_v32 }
  0x82   : > { %13565 = vmatmul.mubr.msk.f32.gmra.mrb[42].mxu1 %vm534_vm0, %v16208_v15 }
  0x83   : > { %14501 = vmatpush3.bf16.msra.mxu1 %v15959_v32  ;;  %13575 = vmatprep.mubr.msk.f32.mxu1 %vm534_vm0, %v16186_v10 }
  0x84   : > { %14503 = vmatprep.subr.bf16.mxu1 %v15952_v29 }
  0x86   : > { %13576 = vmatmul.mubr.msk.f32.vlgmr.msra.gmra.mrb[44].mxu1 %vm534_vm0, %v16191_v12 }
  0x87   : > { %13578 = vmatprep.mubr.msk.f32.mxu1 %vm534_vm0, %v16203_v13  ;;  %14505 = vmatpush3.bf16.msra.mxu1 %v15952_v29 }
  0x88   : > { %14507 = vmatprep.subr.bf16.mxu1 %v15970_v35 }
  0x8a   : > { %13579 = vmatmul.mubr.msk.f32.gmra.mrb[46].mxu1 %vm534_vm0, %v16208_v15 }
  0x8b   : > { %14509 = vmatpush3.bf16.msra.mxu1 %v15970_v35  ;;  %13589 = vmatprep.mubr.msk.f32.mxu1 %vm534_vm0, %v16186_v10 }
  0x8c   : > { %14511 = vmatprep.subr.bf16.mxu1 %v15979_v38 }
  0x8e   : > { %13590 = vmatmul.mubr.msk.f32.vlgmr.msra.gmra.mrb[48].mxu1 %vm534_vm0, %v16191_v12 }
  0x8f   : > { %13592 = vmatprep.mubr.msk.f32.mxu1 %vm534_vm0, %v16203_v13  ;;  %14513 = vmatpush3.bf16.msra.mxu1 %v15979_v38 }
  0x90   : > { %14515 = vmatprep.subr.bf16.mxu1 %v15999_v44 }
  0x92   : > { %13593 = vmatmul.mubr.msk.f32.gmra.mrb[50].mxu1 %vm534_vm0, %v16208_v15 }
  0x93   : > { %14517 = vmatpush3.bf16.msra.mxu1 %v15999_v44  ;;  %13603 = vmatprep.mubr.msk.f32.mxu1 %vm534_vm0, %v16186_v10 }
  0x94   : > { %14519 = vmatprep.subr.bf16.mxu1 %v15990_v41 }
  0x96   : > { %13604 = vmatmul.mubr.msk.f32.vlgmr.msra.gmra.mrb[52].mxu1 %vm534_vm0, %v16191_v12 }
  0x97   : > { %13606 = vmatprep.mubr.msk.f32.mxu1 %vm534_vm0, %v16203_v13  ;;  %14521 = vmatpush3.bf16.msra.mxu1 %v15990_v41 }
  0x98   : > { %14523 = vmatprep.subr.bf16.mxu1 %v16010_v47 }
  0x9a   : > { %13607 = vmatmul.mubr.msk.f32.gmra.mrb[54].mxu1 %vm534_vm0, %v16208_v15 }
  0x9b   : > { %14525 = vmatpush3.bf16.msra.mxu1 %v16010_v47  ;;  %13617 = vmatprep.mubr.msk.f32.mxu1 %vm534_vm0, %v16186_v10 }
  0x9c   : > { %14527 = vmatprep.subr.bf16.mxu1 %v16017_v48 }
  0x9e   : > { %13618 = vmatmul.mubr.msk.f32.vlgmr.msra.gmra.mrb[56].mxu1 %vm534_vm0, %v16191_v12 }
  0x9f   : > { %13620 = vmatprep.mubr.msk.f32.mxu1 %vm534_vm0, %v16203_v13  ;;  %14529 = vmatpush3.bf16.msra.mxu1 %v16017_v48 }
  0xa0   : > { %14531 = vmatprep.subr.bf16.mxu1 %v16033_v51 }
  0xa2   : > { %13621 = vmatmul.mubr.msk.f32.gmra.mrb[58].mxu1 %vm534_vm0, %v16208_v15 }
  0xa3   : > { %14533 = vmatpush3.bf16.msra.mxu1 %v16033_v51  ;;  %13631 = vmatprep.mubr.msk.f32.mxu1 %vm534_vm0, %v16186_v10  ;;  %v14468_v10 = vpack.c.bf16 %v1233_v7, %v1231_v3 }
  0xa4   : > { %14543 = vmatprep.subr.bf16.mxu1 %v15893_v4 }
  0xa6   : > { %13632 = vmatmul.mubr.msk.f32.vlgmr.msra.gmra.mrb[60].mxu1 %vm534_vm0, %v16191_v12 }
  0xa7   : > { %13634 = vmatprep.mubr.msk.f32.mxu1 %vm534_vm0, %v16203_v13  ;;  %14545 = vmatpush3.bf16.msra.mxu1 %v15893_v4 }
  0xa8   : > { %14547 = vmatprep.subr.bf16.mxu1 %v15896_v6 }
  0xaa   : > { %13635 = vmatmul.mubr.msk.f32.gmra.mrb[62].mxu1 %vm534_vm0, %v16208_v15 }
  0xab   : > { %14549 = vmatpush3.bf16.msra.mxu1 %v15896_v6 }
  0xac   : > { %14551 = vmatprep.subr.bf16.mxu1 %v15904_v11 }
  0xff   : > { %v16277_v17 = vpop.f32.mrb[0].mxu0 }
 0x100   : > { %v16281_v18 = vpop.f32.mrb[1].mxu0 }
 0x101   : > { %v16287_v19 = vpop.f32.mrb[0].mxu1 }
 0x102   : > { %v16291_v21 = vpop.f32.mrb[1].mxu1 }
 0x103   : > { %v16289_v20 = vpop.f32.mrb[2].mxu0 }
 0x104   : > { %v16295_v24 = vpop.f32.mrb[3].mxu0 }
 0x105   : > { %v16301_v25 = vpop.f32.mrb[2].mxu1 }
 0x106   : > { %v16305_v27 = vpop.f32.mrb[3].mxu1 }
 0x107   : > { %v16303_v26 = vpop.f32.mrb[4].mxu0 }
 0x108   : > { %v16309_v28 = vpop.f32.mrb[5].mxu0 }
 0x109   : > { %v16315_v30 = vpop.f32.mrb[4].mxu1 }
 0x10a   : > { %v16319_v33 = vpop.f32.mrb[5].mxu1 }
 0x10b   : > { %v16317_v31 = vpop.f32.mrb[6].mxu0 }
 0x10c   : > { %v16323_v34 = vpop.f32.mrb[7].mxu0 }
 0x10d   : > { %v16327_v36 = vpop.f32.mrb[6].mxu1 }
 0x10e   : > { %v16331_v39 = vpop.f32.mrb[7].mxu1 }
 0x10f   : > { %v16329_v37 = vpop.f32.mrb[8].mxu0 }
 0x110   : > { %v16333_v40 = vpop.f32.mrb[9].mxu0 }
 0x111   : > { %v16335_v42 = vpop.f32.mrb[8].mxu1 }
 0x112   : > { %19380 = vst [vmem:[#allocation8_spill] sm:$0xff] %v16335_v42  ;;  %v16339_v45 = vpop.f32.mrb[9].mxu1 }
 0x113   : > { %v16337_v43 = vpop.f32.mrb[10].mxu0  ;;  %19382 = vst [vmem:[#allocation10_spill] sm:$0xff] %v16339_v45 }
 0x114   : > { %19381 = vst [vmem:[#allocation9_spill] sm:$0xff] %v16337_v43  ;;  %v16341_v46 = vpop.f32.mrb[11].mxu0  ;;  %v16450_v43 = vld [vmem:[%s19354_s2 + $0x68] sm:$0xff] }
 0x115   : > { %v16343_v49 = vpop.f32.mrb[10].mxu1 }
 0x116   : > { %19383 = vst [vmem:[#allocation11_spill] sm:$0xff] %v16343_v49  ;;  %v16347_v52 = vpop.f32.mrb[11].mxu1 }
 0x117   : > { %v16345_v50 = vpop.f32.mrb[12].mxu0  ;;  %19385 = vst [vmem:[#allocation13_spill] sm:$0xff] %v16347_v52  ;;  %v12112_v52 = vld [vmem:[%s19379_s1 + $0x98] sm:$0xff] }
 0x118   : > { %19384 = vst [vmem:[#allocation12_spill] sm:$0xff] %v16345_v50  ;;  %v16349_v53 = vpop.f32.mrb[13].mxu0 }
 0x119   : > { %19386 = vst [vmem:[#allocation14_spill] sm:$0xff] %v16349_v53  ;;  %v16351_v54 = vpop.f32.mrb[12].mxu1 }
 0x11a   : > { %19387 = vst [vmem:[#allocation15_spill] sm:$0xff] %v16351_v54  ;;  %v16355_v56 = vpop.f32.mrb[13].mxu1 }
 0x11b   : > { %v16353_v55 = vpop.f32.mrb[14].mxu0  ;;  %19389 = vst [vmem:[#allocation17_spill] sm:$0xff] %v16355_v56 }
 0x11c   : > { %19388 = vst [vmem:[#allocation16_spill] sm:$0xff] %v16353_v55  ;;  %v16363_v59 = vpop.f32.mrb[15].mxu0 }
 0x11d   : > { %19390 = vst [vmem:[#allocation18_spill] sm:$0xff] %v16363_v59  ;;  %v16371_v62 = vpop.f32.mrb[14].mxu1 }
 0x11e   : > { %19391 = vst [vmem:[#allocation19_spill] sm:$0xff] %v16371_v62  ;;  %v16373_v1 = vpop.f32.mrb[15].mxu1 }
 0x11f   : > { %v13423_v0 = vpop.f32.mrb[16].mxu0  ;;  %19392 = vst [vmem:[#allocation20_spill] sm:$0xff] %v16373_v1 }
 0x120   : > { %v1318_v8 = vpop.f32.mrb[17].mxu0 }
 0x121   : > { %12009 = vmatmul.mubr.msk.f32.vlgmr.msra.gmra.mrb[32].mxu0 %vm534_vm0, %v1318_v8  ;;  %v13437_v9 = vpop.f32.mrb[16].mxu1 }
 0x122   : > { %2107 = vmatprep.mubr.f32.mxu0 %v15743_v5  ;;  %14465 = vmatpush1.bf16.msra.mxu0 %v14464_v63  ;;  %v1403_v13 = vpop.f32.mrb[17].mxu1 }
 0x123   : > { %v13426_v12 = vpop.f32.mrb[18].mxu0  ;;  %14467 = vmatprep.subr.bf16.mxu0 %v14466_v2 }
 0x124   : > { %v1328_v15 = vpop.f32.mrb[19].mxu0 }
 0x125   : > { %12010 = vmatmul.mubr.msk.f32.gmra.mrb[34].mxu0 %vm534_vm0, %v13423_v0  ;;  %v13440_v57 = vpop.f32.mrb[18].mxu1 }
 0x126   : > { %2113 = vmatprep.mubr.f32.mxu0 %v15743_v5  ;;  %14469 = vmatpush1.bf16.msra.mxu0 %v14468_v10  ;;  %v1413_v58 = vpop.f32.mrb[19].mxu1 }
 0x127   : > { %v13451_v60 = vpop.f32.mrb[20].mxu0 }
 0x128   : > { %v1488_v61 = vpop.f32.mrb[21].mxu0 }
 0x129   : > { %12011 = vmatmul.mubr.msk.f32.gmra.mrb[36].mxu0 %vm534_vm0, %v1328_v15  ;;  %v13465_v8 = vpop.f32.mrb[20].mxu1 }
 0x12a   : > { %2119 = vmatprep.mubr.f32.mxu0 %v15743_v5  ;;  %v1573_v3 = vpop.f32.mrb[21].mxu1 }
 0x12b   : > { %v13454_v63 = vpop.f32.mrb[22].mxu0 }
 0x12c   : > { %v1498_v2 = vpop.f32.mrb[23].mxu0 }
 0x12d   : > { %12012 = vmatmul.mubr.msk.f32.gmra.mrb[38].mxu0 %vm534_vm0, %v13426_v12  ;;  %v16389_v0 = vpop.f32.mrb[22].mxu1 }
 0x12e   : > { %2125 = vmatprep.mubr.f32.mxu0 %v15743_v5  ;;  %v1583_v7 = vpop.f32.mrb[23].mxu1 }
 0x12f   : > { %v16391_v62 = vpop.f32.mrb[24].mxu0 }
 0x130   : > { %v16394_v10 = vpop.f32.mrb[25].mxu0 }
 0x131   : > { %12013 = vmatmul.mubr.msk.f32.gmra.mrb[40].mxu0 %vm534_vm0, %v1403_v13  ;;  %v16402_v12 = vpop.f32.mrb[24].mxu1 }
 0x132   : > { %2131 = vmatprep.mubr.f32.mxu0 %v15743_v5  ;;  %v16405_v54 = vpop.f32.mrb[25].mxu1 }
 0x133   : > { %v16397_v15 = vpop.f32.mrb[26].mxu0 }
 0x134   : > { %v16400_v1 = vpop.f32.mrb[27].mxu0 }
 0x135   : > { %12014 = vmatmul.mubr.msk.f32.gmra.mrb[42].mxu0 %vm534_vm0, %v13437_v9  ;;  %v16410_v13 = vpop.f32.mrb[26].mxu1 }
 0x136   : > { %2137 = vmatprep.mubr.f32.mxu0 %v15743_v5  ;;  %v16415_v59 = vpop.f32.mrb[27].mxu1 }
 0x137   : > { %v16407_v56 = vpop.f32.mrb[28].mxu0 }
 0x138   : > { %v16412_v55 = vpop.f32.mrb[29].mxu0 }
 0x139   : > { %12015 = vmatmul.mubr.msk.f32.gmra.mrb[44].mxu0 %vm534_vm0, %v1413_v58  ;;  %v16423_v53 = vpop.f32.mrb[28].mxu1  ;;  %v12110_v58 = vld [vmem:[%s19379_s1 + $0x88] sm:$0xff] }
 0x13a   : > { %2143 = vmatprep.mubr.f32.mxu0 %v15743_v5  ;;  %v16425_v49 = vpop.f32.mrb[29].mxu1  ;;  %v14534_v42 = vpack.c.bf16 %v12112_v52, %v12110_v58  ;;  %v16471_v52 = vld [vmem:[%s19354_s2 + $0x78] sm:$0xff] }
 0x13b   : > { %v16417_v9 = vpop.f32.mrb[30].mxu0 }
 0x13c   : > { %v16420_v50 = vpop.f32.mrb[31].mxu0  ;;  %14535 = vmatprep.subr.bf16.mxu0 %v14534_v42  ;;  %v16466_v42 = vld [vmem:[%s19354_s2 + $0x70] sm:$0xff] }
 0x13d   : > { %12016 = vmatmul.mubr.msk.f32.gmra.mrb[46].mxu0 %vm534_vm0, %v13440_v57  ;;  %v16435_v57 = vpop.f32.mrb[30].mxu1 }
 0x13e   : > { %2149 = vmatprep.mubr.f32.mxu0 %v15743_v5  ;;  %v16437_v45 = vpop.f32.mrb[31].mxu1 }
 0x141   : > { %12017 = vmatmul.mubr.msk.f32.gmra.mrb[48].mxu0 %vm534_vm0, %v1488_v61  ;;  %v16445_v61 = vld [vmem:[%s19354_s2 + $0x60] sm:$0xff] }
 0x142   : > { %2155 = vmatprep.mubr.f32.mxu0 %v15743_v5  ;;  %13645 = vmatprep.mubr.msk.f32.mxu1 %vm534_vm0, %v16445_v61 }
 0x143   : > { %13646 = vmatmul.mubr.msk.f32.vlgmr.msra.gmra.mrb[64].mxu1 %vm534_vm0, %v16450_v43 }
 0x144   : > { %14553 = vmatpush3.bf16.msra.mxu1 %v15904_v11  ;;  %13648 = vmatprep.mubr.msk.f32.mxu1 %vm534_vm0, %v16466_v42 }
 0x145   : > { %12018 = vmatmul.mubr.msk.f32.gmra.mrb[50].mxu0 %vm534_vm0, %v13451_v60  ;;  %14555 = vmatprep.subr.bf16.mxu1 %v15912_v16 }
 0x146   : > { %2161 = vmatprep.mubr.f32.mxu0 %v15743_v5 }
 0x147   : > { %13649 = vmatmul.mubr.msk.f32.gmra.mrb[66].mxu1 %vm534_vm0, %v16471_v52 }
 0x148   : > { %14557 = vmatpush3.bf16.msra.mxu1 %v15912_v16  ;;  %13659 = vmatprep.mubr.msk.f32.mxu1 %vm534_vm0, %v16445_v61 }
 0x149   : > { %12019 = vmatmul.mubr.msk.f32.gmra.mrb[52].mxu0 %vm534_vm0, %v1498_v2  ;;  %14559 = vmatprep.subr.bf16.mxu1 %v15909_v14  ;;  %v19399_v2 = vld [vmem:[#allocation12_spill] sm:$0xff] }
 0x14a   : > { %2167 = vmatprep.mubr.f32.mxu0 %v15743_v5 }
 0x14b   : > { %13660 = vmatmul.mubr.msk.f32.vlgmr.msra.gmra.mrb[68].mxu1 %vm534_vm0, %v16450_v43 }
 0x14c   : > { %13662 = vmatprep.mubr.msk.f32.mxu1 %vm534_vm0, %v16466_v42  ;;  %14561 = vmatpush3.bf16.msra.mxu1 %v15909_v14 }
 0x14d   : > { %12020 = vmatmul.mubr.msk.f32.gmra.mrb[54].mxu0 %vm534_vm0, %v13454_v63  ;;  %14563 = vmatprep.subr.bf16.mxu1 %v15932_v22  ;;  %v16701_v63 = vld [vmem:[%s19354_s2 + $0x80] sm:$0xff] }
 0x14e   : > { %2173 = vmatprep.mubr.f32.mxu0 %v15743_v5 }
 0x14f   : > { %13663 = vmatmul.mubr.msk.f32.gmra.mrb[70].mxu1 %vm534_vm0, %v16471_v52 }
 0x150   : > { %14565 = vmatpush3.bf16.msra.mxu1 %v15932_v22  ;;  %13673 = vmatprep.mubr.msk.f32.mxu1 %vm534_vm0, %v16445_v61 }
 0x151   : > { %12021 = vmatmul.mubr.msk.f32.gmra.mrb[56].mxu0 %vm534_vm0, %v1573_v3  ;;  %14567 = vmatprep.subr.bf16.mxu1 %v15934_v23  ;;  %v16706_v3 = vld [vmem:[%s19354_s2 + $0x88] sm:$0xff] }
 0x152   : > { %2179 = vmatprep.mubr.f32.mxu0 %v15743_v5 }
 0x153   : > { %13674 = vmatmul.mubr.msk.f32.vlgmr.msra.gmra.mrb[72].mxu1 %vm534_vm0, %v16450_v43 }
 0x154   : > { %13676 = vmatprep.mubr.msk.f32.mxu1 %vm534_vm0, %v16466_v42  ;;  %14569 = vmatpush3.bf16.msra.mxu1 %v15934_v23 }
 0x155   : > { %12022 = vmatmul.mubr.msk.f32.gmra.mrb[58].mxu0 %vm534_vm0, %v13465_v8  ;;  %14571 = vmatprep.subr.bf16.mxu1 %v15959_v32 }
 0x156   : > { %2185 = vmatprep.mubr.f32.mxu0 %v15743_v5 }
 0x157   : > { %13677 = vmatmul.mubr.msk.f32.gmra.mrb[74].mxu1 %vm534_vm0, %v16471_v52 }
 0x158   : > { %14573 = vmatpush3.bf16.msra.mxu1 %v15959_v32  ;;  %13687 = vmatprep.mubr.msk.f32.mxu1 %vm534_vm0, %v16445_v61 }
 0x159   : > { %12023 = vmatmul.mubr.msk.f32.gmra.mrb[60].mxu0 %vm534_vm0, %v1583_v7  ;;  %14575 = vmatprep.subr.bf16.mxu1 %v15952_v29  ;;  %v19400_v7 = vld [vmem:[#allocation18_spill] sm:$0xff] }
 0x15a   : > { %2191 = vmatprep.mubr.f32.mxu0 %v15743_v5 }
 0x15b   : > { %13688 = vmatmul.mubr.msk.f32.vlgmr.msra.gmra.mrb[76].mxu1 %vm534_vm0, %v16450_v43 }
 0x15c   : > { %13690 = vmatprep.mubr.msk.f32.mxu1 %vm534_vm0, %v16466_v42  ;;  %14577 = vmatpush3.bf16.msra.mxu1 %v15952_v29 }
 0x15d   : > { %12024 = vmatmul.mubr.msk.f32.gmra.mrb[62].mxu0 %vm534_vm0, %v16389_v0  ;;  %14579 = vmatprep.subr.bf16.mxu1 %v15970_v35 }
 0x15e   : > { %2197 = vmatprep.mubr.f32.mxu0 %v15743_v5 }
 0x15f   : > { %13691 = vmatmul.mubr.msk.f32.gmra.mrb[78].mxu1 %vm534_vm0, %v16471_v52 }
 0x160   : > { %14581 = vmatpush3.bf16.msra.mxu1 %v15970_v35  ;;  %13701 = vmatprep.mubr.msk.f32.mxu1 %vm534_vm0, %v16445_v61 }
 0x161   : > { %12025 = vmatmul.mubr.msk.f32.gmra.mrb[64].mxu0 %vm534_vm0, %v16394_v10  ;;  %14583 = vmatprep.subr.bf16.mxu1 %v15979_v38 }
 0x162   : > { %2203 = vmatprep.mubr.f32.mxu0 %v15743_v5 }
 0x163   : > { %13702 = vmatmul.mubr.msk.f32.vlgmr.msra.gmra.mrb[80].mxu1 %vm534_vm0, %v16450_v43 }
 0x164   : > { %13704 = vmatprep.mubr.msk.f32.mxu1 %vm534_vm0, %v16466_v42  ;;  %14585 = vmatpush3.bf16.msra.mxu1 %v15979_v38 }
 0x165   : > { %12026 = vmatmul.mubr.msk.f32.gmra.mrb[66].mxu0 %vm534_vm0, %v16391_v62  ;;  %14587 = vmatprep.subr.bf16.mxu1 %v15999_v44 }
 0x166   : > { %2209 = vmatprep.mubr.f32.mxu0 %v15743_v5 }
 0x167   : > { %13705 = vmatmul.mubr.msk.f32.gmra.mrb[82].mxu1 %vm534_vm0, %v16471_v52 }
 0x168   : > { %14589 = vmatpush3.bf16.msra.mxu1 %v15999_v44  ;;  %13715 = vmatprep.mubr.msk.f32.mxu1 %vm534_vm0, %v16445_v61 }
 0x169   : > { %12027 = vmatmul.mubr.msk.f32.gmra.mrb[68].mxu0 %vm534_vm0, %v16400_v1  ;;  %14591 = vmatprep.subr.bf16.mxu1 %v15990_v41 }
 0x16a   : > { %2215 = vmatprep.mubr.f32.mxu0 %v15743_v5 }
 0x16b   : > { %13716 = vmatmul.mubr.msk.f32.vlgmr.msra.gmra.mrb[84].mxu1 %vm534_vm0, %v16450_v43 }
 0x16c   : > { %13718 = vmatprep.mubr.msk.f32.mxu1 %vm534_vm0, %v16466_v42  ;;  %14593 = vmatpush3.bf16.msra.mxu1 %v15990_v41 }
 0x16d   : > { %12028 = vmatmul.mubr.msk.f32.gmra.mrb[70].mxu0 %vm534_vm0, %v16397_v15  ;;  %14595 = vmatprep.subr.bf16.mxu1 %v16010_v47 }
 0x16e   : > { %2221 = vmatprep.mubr.f32.mxu0 %v15743_v5 }
 0x16f   : > { %13719 = vmatmul.mubr.msk.f32.gmra.mrb[86].mxu1 %vm534_vm0, %v16471_v52 }
 0x170   : > { %14597 = vmatpush3.bf16.msra.mxu1 %v16010_v47  ;;  %13729 = vmatprep.mubr.msk.f32.mxu1 %vm534_vm0, %v16445_v61 }
 0x171   : > { %12029 = vmatmul.mubr.msk.f32.gmra.mrb[72].mxu0 %vm534_vm0, %v16405_v54  ;;  %14599 = vmatprep.subr.bf16.mxu1 %v16017_v48  ;;  %v12113_v54 = vld [vmem:[%s19379_s1 + $0xa0] sm:$0xff] }
 0x172   : > { %2227 = vmatprep.mubr.f32.mxu0 %v15743_v5 }
 0x173   : > { %13730 = vmatmul.mubr.msk.f32.vlgmr.msra.gmra.mrb[88].mxu1 %vm534_vm0, %v16450_v43 }
 0x174   : > { %13732 = vmatprep.mubr.msk.f32.mxu1 %vm534_vm0, %v16466_v42  ;;  %14601 = vmatpush3.bf16.msra.mxu1 %v16017_v48 }
 0x175   : > { %12030 = vmatmul.mubr.msk.f32.gmra.mrb[74].mxu0 %vm534_vm0, %v16402_v12  ;;  %14603 = vmatprep.subr.bf16.mxu1 %v16033_v51  ;;  %v19402_v12 = vld [vmem:[#allocation17_spill] sm:$0xff] }
 0x176   : > { %2233 = vmatprep.mubr.f32.mxu0 %v15743_v5 }
 0x177   : > { %13733 = vmatmul.mubr.msk.f32.gmra.mrb[90].mxu1 %vm534_vm0, %v16471_v52 }
 0x178   : > { %14605 = vmatpush3.bf16.msra.mxu1 %v16033_v51  ;;  %13743 = vmatprep.mubr.msk.f32.mxu1 %vm534_vm0, %v16445_v61  ;;  %v12185_v61 = vld [vmem:[%s19379_s1 + $0xc0] sm:$0xff] }
 0x179   : > { %12031 = vmatmul.mubr.msk.f32.gmra.mrb[76].mxu0 %vm534_vm0, %v16415_v59  ;;  %14615 = vmatprep.subr.bf16.mxu1 %v15893_v4 }
 0x17a   : > { %2239 = vmatprep.mubr.f32.mxu0 %v15743_v5 }
 0x17b   : > { %13744 = vmatmul.mubr.msk.f32.vlgmr.msra.gmra.mrb[92].mxu1 %vm534_vm0, %v16450_v43  ;;  %v12114_v43 = vld [vmem:[%s19379_s1 + $0xa8] sm:$0xff] }
 0x17c   : > { %13746 = vmatprep.mubr.msk.f32.mxu1 %vm534_vm0, %v16466_v42  ;;  %14617 = vmatpush3.bf16.msra.mxu1 %v15893_v4  ;;  %v12109_v4 = vld [vmem:[%s19379_s1 + $0x80] sm:$0xff]  ;;  %v12187_v42 = vld [vmem:[%s19379_s1 + $0xd0] sm:$0xff] }
 0x17d   : > { %12032 = vmatmul.mubr.msk.f32.gmra.mrb[78].mxu0 %vm534_vm0, %v16410_v13  ;;  %14619 = vmatprep.subr.bf16.mxu1 %v15896_v6  ;;  %v19403_v13 = vld [vmem:[#allocation15_spill] sm:$0xff] }
 0x17e   : > { %2245 = vmatprep.mubr.f32.mxu0 %v15743_v5 }
 0x17f   : > { %13747 = vmatmul.mubr.msk.f32.gmra.mrb[94].mxu1 %vm534_vm0, %v16471_v52  ;;  %v12190_v52 = vld [vmem:[%s19379_s1 + $0xe8] sm:$0xff] }
 0x180   : > { %14621 = vmatpush3.bf16.msra.mxu1 %v15896_v6  ;;  %v12111_v6 = vld [vmem:[%s19379_s1 + $0x90] sm:$0xff]  ;;  %13757 = vmatprep.mubr.msk.f32.mxu1 %vm534_vm0, %v16701_v63 }
 0x181   : > { %12033 = vmatmul.mubr.msk.f32.gmra.mrb[80].mxu0 %vm534_vm0, %v16412_v55  ;;  %14623 = vmatprep.subr.bf16.mxu1 %v15904_v11  ;;  %v12115_v55 = vld [vmem:[%s19379_s1 + $0xb0] sm:$0xff] }
 0x182   : > { %2251 = vmatprep.mubr.f32.mxu0 %v15743_v5  ;;  %v14540_v59 = vpack.c.bf16 %v12115_v55, %v12113_v54  ;;  %v12191_v54 = vld [vmem:[%s19379_s1 + $0xf0] sm:$0xff] }
 0x183   : > { %13758 = vmatmul.mubr.msk.f32.vlgmr.msra.gmra.mrb[96].mxu1 %vm534_vm0, %v16706_v3 }
 0x184   : > { %14625 = vmatpush3.bf16.msra.mxu1 %v15904_v11  ;;  %v16728_v11 = vld [vmem:[%s19354_s2 + $0x90] sm:$0xff] }
 0x185   : > { %12034 = vmatmul.mubr.msk.f32.gmra.mrb[82].mxu0 %vm534_vm0, %v16407_v56  ;;  %14627 = vmatprep.subr.bf16.mxu1 %v15912_v16 }
 0x186   : > { %2257 = vmatprep.mubr.f32.mxu0 %v15743_v5  ;;  %13760 = vmatprep.mubr.msk.f32.mxu1 %vm534_vm0, %v16728_v11 }
 0x188   : > { %14629 = vmatpush3.bf16.msra.mxu1 %v15912_v16 }
 0x189   : > { %12035 = vmatmul.mubr.msk.f32.gmra.mrb[84].mxu0 %vm534_vm0, %v16420_v50  ;;  %v16630_v50 = vpop.f32.mrb[32].mxu1  ;;  %14631 = vmatprep.subr.bf16.mxu1 %v15909_v14 }
 0x18a   : > { %2263 = vmatprep.mubr.f32.mxu0 %v15743_v5  ;;  %v16638_v56 = vpop.f32.mrb[33].mxu1 }
 0x18b   : > { %v16646_v62 = vpop.f32.mrb[34].mxu1 }
 0x18c   : > { %v16648_v1 = vpop.f32.mrb[35].mxu1 }
 0x18d   : > { %12036 = vmatmul.mubr.msk.f32.gmra.mrb[86].mxu0 %vm534_vm0, %v16417_v9 }
 0x18e   : > { %2269 = vmatprep.mubr.f32.mxu0 %v15743_v5 }
 0x191   : > { %12037 = vmatmul.mubr.msk.f32.gmra.mrb[88].mxu0 %vm534_vm0, %v16425_v49  ;;  %v12116_v49 = vld [vmem:[%s19379_s1 + $0xb8] sm:$0xff] }
 0x192   : > { %2275 = vmatprep.mubr.f32.mxu0 %v15743_v5 }
 0x195   : > { %12038 = vmatmul.mubr.msk.f32.gmra.mrb[90].mxu0 %vm534_vm0, %v16423_v53  ;;  %v14538_v53 = vpack.c.bf16 %v12116_v49, %v12114_v43  ;;  %v14608_v43 = vpack.c.bf16 %v12187_v42, %v12185_v61 }
 0x196   : > { %2281 = vmatprep.mubr.f32.mxu0 %v15743_v5 }
 0x199   : > { %12039 = vmatmul.mubr.msk.f32.gmra.mrb[92].mxu0 %vm534_vm0, %v16437_v45  ;;  %v14536_v45 = vpack.c.bf16 %v12111_v6, %v12109_v4  ;;  %v12192_v4 = vld [vmem:[%s19379_s1 + $0xf8] sm:$0xff]  ;;  %v19405_v6 = vld [vmem:[#allocation19_spill] sm:$0xff] }
 0x19a   : > { %2287 = vmatprep.mubr.f32.mxu0 %v15743_v5 }
 0x19d   : > { %12040 = vmatmul.mubr.msk.f32.gmra.mrb[94].mxu0 %vm534_vm0, %v16435_v57  ;;  %v19404_v57 = vld [vmem:[#allocation20_spill] sm:$0xff] }
 0x19e   : > { %2454 = vmatprep.mubr.f32.mxu0 %v15743_v5 }
 0x1a1   : > { %12041 = vmatmul.mubr.msk.f32.vlgmr.msra.gmra.mrb[32].mxu0 %vm534_vm0, %v16281_v18  ;;  %v16655_v18 = vpop.f32.mrb[36].mxu1 }
 0x1a2   : > { %2460 = vmatprep.mubr.f32.mxu0 %v15743_v5  ;;  %14537 = vmatpush1.bf16.msra.mxu0 %v14536_v45  ;;  %v14610_v45 = vpack.c.bf16 %v12192_v4, %v12190_v52 }
 0x1a3   : > { %14539 = vmatprep.subr.bf16.mxu0 %v14538_v53  ;;  %v12189_v53 = vld [vmem:[%s19379_s1 + $0xe0] sm:$0xff] }
 0x1a5   : > { %12042 = vmatmul.mubr.msk.f32.gmra.mrb[34].mxu0 %vm534_vm0, %v16277_v17  ;;  %v16658_v17 = vpop.f32.mrb[37].mxu1 }
 0x1a6   : > { %2466 = vmatprep.mubr.f32.mxu0 %v15743_v5  ;;  %14541 = vmatpush1.bf16.msra.mxu0 %v14540_v59  ;;  %v14612_v59 = vpack.c.bf16 %v12191_v54, %v12189_v53 }
 0x1a9   : > { %12043 = vmatmul.mubr.msk.f32.gmra.mrb[36].mxu0 %vm534_vm0, %v16295_v24  ;;  %v16665_v24 = vpop.f32.mrb[38].mxu1 }
 0x1aa   : > { %2472 = vmatprep.mubr.f32.mxu0 %v15743_v5  ;;  %v16668_v60 = vpop.f32.mrb[39].mxu1 }
 0x1ad   : > { %12044 = vmatmul.mubr.msk.f32.gmra.mrb[38].mxu0 %vm534_vm0, %v16289_v20  ;;  %v16675_v20 = vpop.f32.mrb[40].mxu1 }
 0x1ae   : > { %2478 = vmatprep.mubr.f32.mxu0 %v15743_v5 }
 0x1b1   : > { %12045 = vmatmul.mubr.msk.f32.gmra.mrb[40].mxu0 %vm534_vm0, %v16291_v21  ;;  %v16678_v21 = vpop.f32.mrb[41].mxu1 }
 0x1b2   : > { %2484 = vmatprep.mubr.f32.mxu0 %v15743_v5  ;;  %v16691_v8 = vpop.f32.mrb[42].mxu1 }
 0x1b5   : > { %12046 = vmatmul.mubr.msk.f32.gmra.mrb[42].mxu0 %vm534_vm0, %v16287_v19  ;;  %v12186_v19 = vld [vmem:[%s19379_s1 + $0xc8] sm:$0xff] }
 0x1b6   : > { %2490 = vmatprep.mubr.f32.mxu0 %v15743_v5 }
 0x1b9   : > { %12047 = vmatmul.mubr.msk.f32.gmra.mrb[44].mxu0 %vm534_vm0, %v16305_v27  ;;  %v12188_v27 = vld [vmem:[%s19379_s1 + $0xd8] sm:$0xff] }
 0x1ba   : > { %2496 = vmatprep.mubr.f32.mxu0 %v15743_v5 }
 0x1bd   : > { %12048 = vmatmul.mubr.msk.f32.gmra.mrb[46].mxu0 %vm534_vm0, %v16301_v25  ;;  %v14606_v25 = vpack.c.bf16 %v12188_v27, %v12186_v19 }
 0x1be   : > { %2502 = vmatprep.mubr.f32.mxu0 %v15743_v5 }
 0x1bf   : > { %14607 = vmatprep.subr.bf16.mxu0 %v14606_v25 }
 0x1c1   : > { %12049 = vmatmul.mubr.msk.f32.gmra.mrb[48].mxu0 %vm534_vm0, %v16309_v28  ;;  %v16694_v28 = vpop.f32.mrb[43].mxu1 }
 0x1c2   : > { %2508 = vmatprep.mubr.f32.mxu0 %v15743_v5 }
 0x1c5   : > { %12050 = vmatmul.mubr.msk.f32.gmra.mrb[50].mxu0 %vm534_vm0, %v16303_v26  ;;  %v16716_v26 = vpop.f32.mrb[44].mxu1 }
 0x1c6   : > { %2514 = vmatprep.mubr.f32.mxu0 %v15743_v5 }
 0x1c9   : > { %12051 = vmatmul.mubr.msk.f32.gmra.mrb[52].mxu0 %vm534_vm0, %v16323_v34  ;;  %v16720_v34 = vpop.f32.mrb[45].mxu1 }
 0x1ca   : > { %2520 = vmatprep.mubr.f32.mxu0 %v15743_v5  ;;  %v16745_v16 = vpop.f32.mrb[46].mxu1 }
 0x1cd   : > { %12052 = vmatmul.mubr.msk.f32.gmra.mrb[54].mxu0 %vm534_vm0, %v16317_v31  ;;  %v16733_v31 = vld [vmem:[%s19354_s2 + $0x98] sm:$0xff] }
 0x1ce   : > { %2526 = vmatprep.mubr.f32.mxu0 %v15743_v5  ;;  %13761 = vmatmul.mubr.msk.f32.gmra.mrb[98].mxu1 %vm534_vm0, %v16733_v31 }
 0x1cf   : > { %13771 = vmatprep.mubr.msk.f32.mxu1 %vm534_vm0, %v16701_v63 }
 0x1d1   : > { %12053 = vmatmul.mubr.msk.f32.gmra.mrb[56].mxu0 %vm534_vm0, %v16319_v33  ;;  %v16748_v33 = vpop.f32.mrb[47].mxu1 }
 0x1d2   : > { %2532 = vmatprep.mubr.f32.mxu0 %v15743_v5  ;;  %13772 = vmatmul.mubr.msk.f32.vlgmr.msra.gmra.mrb[100].mxu1 %vm534_vm0, %v16706_v3 }
 0x1d3   : > { %13774 = vmatprep.mubr.msk.f32.mxu1 %vm534_vm0, %v16728_v11  ;;  %14633 = vmatpush3.bf16.msra.mxu1 %v15909_v14 }
 0x1d4   : > { %14635 = vmatprep.subr.bf16.mxu1 %v15932_v22 }
 0x1d5   : > { %12054 = vmatmul.mubr.msk.f32.gmra.mrb[58].mxu0 %vm534_vm0, %v16315_v30  ;;  %v16766_v30 = vpop.f32.mrb[48].mxu1 }
 0x1d6   : > { %2538 = vmatprep.mubr.f32.mxu0 %v15743_v5  ;;  %13775 = vmatmul.mubr.msk.f32.gmra.mrb[102].mxu1 %vm534_vm0, %v16733_v31  ;;  %v16770_v14 = vpop.f32.mrb[49].mxu1 }
 0x1d7   : > { %14637 = vmatpush3.bf16.msra.mxu1 %v15932_v22  ;;  %13785 = vmatprep.mubr.msk.f32.mxu1 %vm534_vm0, %v16701_v63  ;;  %v16788_v22 = vpop.f32.mrb[50].mxu1 }
 0x1d8   : > { %14639 = vmatprep.subr.bf16.mxu1 %v15934_v23 }
 0x1d9   : > { %12055 = vmatmul.mubr.msk.f32.gmra.mrb[60].mxu0 %vm534_vm0, %v16331_v39 }
 0x1da   : > { %2544 = vmatprep.mubr.f32.mxu0 %v15743_v5  ;;  %13786 = vmatmul.mubr.msk.f32.vlgmr.msra.gmra.mrb[104].mxu1 %vm534_vm0, %v16706_v3 }
 0x1db   : > { %13788 = vmatprep.mubr.msk.f32.mxu1 %vm534_vm0, %v16728_v11  ;;  %14641 = vmatpush3.bf16.msra.mxu1 %v15934_v23  ;;  %v16792_v23 = vpop.f32.mrb[51].mxu1 }
 0x1dc   : > { %14643 = vmatprep.subr.bf16.mxu1 %v15959_v32 }
 0x1dd   : > { %12056 = vmatmul.mubr.msk.f32.gmra.mrb[62].mxu0 %vm534_vm0, %v16327_v36  ;;  %v16810_v36 = vpop.f32.mrb[52].mxu1 }
 0x1de   : > { %2550 = vmatprep.mubr.f32.mxu0 %v15743_v5  ;;  %13789 = vmatmul.mubr.msk.f32.gmra.mrb[106].mxu1 %vm534_vm0, %v16733_v31 }
 0x1df   : > { %14645 = vmatpush3.bf16.msra.mxu1 %v15959_v32  ;;  %13799 = vmatprep.mubr.msk.f32.mxu1 %vm534_vm0, %v16701_v63  ;;  %v19393_v32 = vld [vmem:[#allocation9_spill] sm:$0xff] }
 0x1e0   : > { %14647 = vmatprep.subr.bf16.mxu1 %v15952_v29 }
 0x1e1   : > { %12057 = vmatmul.mubr.msk.f32.gmra.mrb[64].mxu0 %vm534_vm0, %v16333_v40  ;;  %v19397_v40 = vld [vmem:[#allocation11_spill] sm:$0xff] }
 0x1e2   : > { %2556 = vmatprep.mubr.f32.mxu0 %v15743_v5  ;;  %13800 = vmatmul.mubr.msk.f32.vlgmr.msra.gmra.mrb[108].mxu1 %vm534_vm0, %v16706_v3 }
 0x1e3   : > { %13802 = vmatprep.mubr.msk.f32.mxu1 %vm534_vm0, %v16728_v11  ;;  %14649 = vmatpush3.bf16.msra.mxu1 %v15952_v29  ;;  %v16814_v29 = vpop.f32.mrb[53].mxu1 }
 0x1e4   : > { %14651 = vmatprep.subr.bf16.mxu1 %v15970_v35  ;;  %v16832_v39 = vpop.f32.mrb[54].mxu1 }
 0x1e5   : > { %12058 = vmatmul.mubr.msk.f32.gmra.mrb[66].mxu0 %vm534_vm0, %v16329_v37  ;;  %v19395_v37 = vld [vmem:[#allocation8_spill] sm:$0xff] }
 0x1e6   : > { %2562 = vmatprep.mubr.f32.mxu0 %v15743_v5  ;;  %13803 = vmatmul.mubr.msk.f32.gmra.mrb[110].mxu1 %vm534_vm0, %v16733_v31 }
 0x1e7   : > { %14653 = vmatpush3.bf16.msra.mxu1 %v15970_v35  ;;  %13813 = vmatprep.mubr.msk.f32.mxu1 %vm534_vm0, %v16701_v63  ;;  %v19394_v35 = vld [vmem:[#allocation10_spill] sm:$0xff] }
 0x1e8   : > { %14655 = vmatprep.subr.bf16.mxu1 %v15979_v38 }
 0x1e9   : > { %12059 = vmatmul.mubr.msk.f32.gmra.mrb[68].mxu0 %vm534_vm0, %v16341_v46 }
 0x1ea   : > { %2568 = vmatprep.mubr.f32.mxu0 %v15743_v5  ;;  %13814 = vmatmul.mubr.msk.f32.vlgmr.msra.gmra.mrb[112].mxu1 %vm534_vm0, %v16706_v3 }
 0x1eb   : > { %13816 = vmatprep.mubr.msk.f32.mxu1 %vm534_vm0, %v16728_v11  ;;  %14657 = vmatpush3.bf16.msra.mxu1 %v15979_v38  ;;  %v16836_v38 = vpop.f32.mrb[55].mxu1 }
 0x1ec   : > { %14659 = vmatprep.subr.bf16.mxu1 %v15999_v44  ;;  %v16854_v46 = vpop.f32.mrb[56].mxu1 }
 0x1ed   : > { %12060 = vmatmul.mubr.msk.f32.gmra.mrb[70].mxu0 %vm534_vm0, %v19393_v32 }
 0x1ee   : > { %2574 = vmatprep.mubr.f32.mxu0 %v15743_v5  ;;  %13817 = vmatmul.mubr.msk.f32.gmra.mrb[114].mxu1 %vm534_vm0, %v16733_v31 }
 0x1ef   : > { %14661 = vmatpush3.bf16.msra.mxu1 %v15999_v44  ;;  %13827 = vmatprep.mubr.msk.f32.mxu1 %vm534_vm0, %v16701_v63  ;;  %v19396_v44 = vld [vmem:[#allocation13_spill] sm:$0xff] }
 0x1f0   : > { %14663 = vmatprep.subr.bf16.mxu1 %v15990_v41 }
 0x1f1   : > { %12061 = vmatmul.mubr.msk.f32.gmra.mrb[72].mxu0 %vm534_vm0, %v19394_v35 }
 0x1f2   : > { %2580 = vmatprep.mubr.f32.mxu0 %v15743_v5  ;;  %13828 = vmatmul.mubr.msk.f32.vlgmr.msra.gmra.mrb[116].mxu1 %vm534_vm0, %v16706_v3 }
 0x1f3   : > { %13830 = vmatprep.mubr.msk.f32.mxu1 %vm534_vm0, %v16728_v11  ;;  %14665 = vmatpush3.bf16.msra.mxu1 %v15990_v41  ;;  %v16858_v41 = vpop.f32.mrb[57].mxu1 }
 0x1f4   : > { %14667 = vmatprep.subr.bf16.mxu1 %v16010_v47  ;;  %v16876_v0 = vpop.f32.mrb[58].mxu1 }
 0x1f5   : > { %12062 = vmatmul.mubr.msk.f32.gmra.mrb[74].mxu0 %vm534_vm0, %v19395_v37 }
 0x1f6   : > { %2586 = vmatprep.mubr.f32.mxu0 %v15743_v5  ;;  %13831 = vmatmul.mubr.msk.f32.gmra.mrb[118].mxu1 %vm534_vm0, %v16733_v31 }
 0x1f7   : > { %14669 = vmatpush3.bf16.msra.mxu1 %v16010_v47  ;;  %13841 = vmatprep.mubr.msk.f32.mxu1 %vm534_vm0, %v16701_v63  ;;  %v19398_v47 = vld [vmem:[#allocation14_spill] sm:$0xff] }
 0x1f8   : > { %14671 = vmatprep.subr.bf16.mxu1 %v16017_v48 }
 0x1f9   : > { %12063 = vmatmul.mubr.msk.f32.gmra.mrb[76].mxu0 %vm534_vm0, %v19396_v44  ;;  %v12263_v44 = vld [vmem:[%s19379_s1 + $0x110] sm:$0xff] }
 0x1fa   : > { %2592 = vmatprep.mubr.f32.mxu0 %v15743_v5  ;;  %13842 = vmatmul.mubr.msk.f32.vlgmr.msra.gmra.mrb[120].mxu1 %vm534_vm0, %v16706_v3 }
 0x1fb   : > { %13844 = vmatprep.mubr.msk.f32.mxu1 %vm534_vm0, %v16728_v11  ;;  %14673 = vmatpush3.bf16.msra.mxu1 %v16017_v48  ;;  %v16879_v48 = vpop.f32.mrb[59].mxu1 }
 0x1fc   : > { %14675 = vmatprep.subr.bf16.mxu1 %v16033_v51  ;;  %v16892_v10 = vpop.f32.mrb[60].mxu1 }
 0x1fd   : > { %12064 = vmatmul.mubr.msk.f32.gmra.mrb[78].mxu0 %vm534_vm0, %v19397_v40  ;;  %v16895_v15 = vpop.f32.mrb[61].mxu1  ;;  %v12266_v40 = vld [vmem:[%s19379_s1 + $0x128] sm:$0xff] }
 0x1fe   : > { %2598 = vmatprep.mubr.f32.mxu0 %v15743_v5  ;;  %13845 = vmatmul.mubr.msk.f32.gmra.mrb[122].mxu1 %vm534_vm0, %v16733_v31  ;;  %v16902_v9 = vpop.f32.mrb[62].mxu1 }
 0x1ff   : > { %14677 = vmatpush3.bf16.msra.mxu1 %v16033_v51  ;;  %13855 = vmatprep.mubr.msk.f32.mxu1 %vm534_vm0, %v16701_v63  ;;  %v19401_v51 = vld [vmem:[#allocation16_spill] sm:$0xff]  ;;  %v16905_v58 = vpop.f32.mrb[63].mxu1 }
 0x201   : > { %12065 = vmatmul.mubr.msk.f32.gmra.mrb[80].mxu0 %vm534_vm0, %v19398_v47 }
 0x202   : > { %2604 = vmatprep.mubr.f32.mxu0 %v15743_v5  ;;  %13856 = vmatmul.mubr.msk.f32.vlgmr.msra.gmra.mrb[124].mxu1 %vm534_vm0, %v16706_v3 }
 0x203   : > { %13858 = vmatprep.mubr.msk.f32.mxu1 %vm534_vm0, %v16728_v11 }
 0x205   : > { %12066 = vmatmul.mubr.msk.f32.gmra.mrb[82].mxu0 %vm534_vm0, %v19399_v2 }
 0x206   : > { %2610 = vmatprep.mubr.f32.mxu0 %v15743_v5  ;;  %13859 = vmatmul.mubr.msk.f32.gmra.mrb[126].mxu1 %vm534_vm0, %v16733_v31 }
 0x209   : > { %12067 = vmatmul.mubr.msk.f32.gmra.mrb[84].mxu0 %vm534_vm0, %v19400_v7 }
 0x20a   : > { %2616 = vmatprep.mubr.f32.mxu0 %v15743_v5 }
 0x20d   : > { %12068 = vmatmul.mubr.msk.f32.gmra.mrb[86].mxu0 %vm534_vm0, %v19401_v51 }
 0x20e   : > { %2622 = vmatprep.mubr.f32.mxu0 %v15743_v5 }
 0x211   : > { %12069 = vmatmul.mubr.msk.f32.gmra.mrb[88].mxu0 %vm534_vm0, %v19402_v12 }
 0x212   : > { %2628 = vmatprep.mubr.f32.mxu0 %v15743_v5 }
 0x215   : > { %12070 = vmatmul.mubr.msk.f32.gmra.mrb[90].mxu0 %vm534_vm0, %v19403_v13 }
 0x216   : > { %2634 = vmatprep.mubr.f32.mxu0 %v15743_v5  ;;  %v16925_v49 = vpop.f32.mrb[64].mxu1 }
 0x217   : > { %v16933_v55 = vpop.f32.mrb[65].mxu1 }
 0x219   : > { %12071 = vmatmul.mubr.msk.f32.gmra.mrb[92].mxu0 %vm534_vm0, %v19404_v57 }
 0x21a   : > { %2640 = vmatprep.mubr.f32.mxu0 %v15743_v5  ;;  %v16941_v19 = vpop.f32.mrb[66].mxu1 }
 0x21b   : > { %v16943_v27 = vpop.f32.mrb[67].mxu1 }
 0x21d   : > { %12072 = vmatmul.mubr.msk.f32.gmra.mrb[94].mxu0 %vm534_vm0, %v19405_v6 }
 0x21e   : > { %3513 = vmatprep.mubr.f32.mxu0 %v15743_v5 }
 0x221   : > { %12117 = vmatmul.mubr.msk.f32.vlgmr.msra.gmra.mrb[32].mxu0 %vm534_vm0, %v16638_v56  ;;  %v16950_v56 = vpop.f32.mrb[68].mxu1 }
 0x222   : > { %3519 = vmatprep.mubr.f32.mxu0 %v15743_v5  ;;  %14609 = vmatpush1.bf16.msra.mxu0 %v14608_v43 }
 0x223   : > { %14611 = vmatprep.subr.bf16.mxu0 %v14610_v45 }
 0x225   : > { %12118 = vmatmul.mubr.msk.f32.gmra.mrb[34].mxu0 %vm534_vm0, %v16630_v50  ;;  %v16953_v50 = vpop.f32.mrb[69].mxu1 }
 0x226   : > { %3525 = vmatprep.mubr.f32.mxu0 %v15743_v5  ;;  %14613 = vmatpush1.bf16.msra.mxu0 %v14612_v59 }
 0x229   : > { %12119 = vmatmul.mubr.msk.f32.gmra.mrb[36].mxu0 %vm534_vm0, %v16648_v1  ;;  %v16960_v1 = vpop.f32.mrb[70].mxu1 }
 0x22a   : > { %3531 = vmatprep.mubr.f32.mxu0 %v15743_v5  ;;  %v16963_v25 = vpop.f32.mrb[71].mxu1 }
 0x22d   : > { %12120 = vmatmul.mubr.msk.f32.gmra.mrb[38].mxu0 %vm534_vm0, %v16646_v62  ;;  %v16970_v62 = vpop.f32.mrb[72].mxu1 }
 0x22e   : > { %3537 = vmatprep.mubr.f32.mxu0 %v15743_v5 }
 0x231   : > { %12121 = vmatmul.mubr.msk.f32.gmra.mrb[40].mxu0 %vm534_vm0, %v16658_v17  ;;  %v16973_v17 = vpop.f32.mrb[73].mxu1 }
 0x232   : > { %3543 = vmatprep.mubr.f32.mxu0 %v15743_v5  ;;  %v16986_v63 = vpop.f32.mrb[74].mxu1 }
 0x235   : > { %12122 = vmatmul.mubr.msk.f32.gmra.mrb[42].mxu0 %vm534_vm0, %v16655_v18  ;;  %v12262_v18 = vld [vmem:[%s19379_s1 + $0x108] sm:$0xff] }
 0x236   : > { %3549 = vmatprep.mubr.f32.mxu0 %v15743_v5 }
 0x239   : > { %12123 = vmatmul.mubr.msk.f32.gmra.mrb[44].mxu0 %vm534_vm0, %v16668_v60  ;;  %v12264_v60 = vld [vmem:[%s19379_s1 + $0x118] sm:$0xff] }
 0x23a   : > { %3555 = vmatprep.mubr.f32.mxu0 %v15743_v5 }
 0x23d   : > { %12124 = vmatmul.mubr.msk.f32.gmra.mrb[46].mxu0 %vm534_vm0, %v16665_v24  ;;  %v14678_v24 = vpack.c.bf16 %v12264_v60, %v12262_v18 }
 0x23e   : > { %3561 = vmatprep.mubr.f32.mxu0 %v15743_v5 }
 0x23f   : > { %14679 = vmatprep.subr.bf16.mxu0 %v14678_v24 }
 0x241   : > { %12125 = vmatmul.mubr.msk.f32.gmra.mrb[48].mxu0 %vm534_vm0, %v16678_v21  ;;  %v16989_v21 = vpop.f32.mrb[75].mxu1 }
 0x242   : > { %3567 = vmatprep.mubr.f32.mxu0 %v15743_v5  ;;  %v16996_v3 = vpop.f32.mrb[76].mxu1 }
 0x243   : > { %v16999_v11 = vpop.f32.mrb[77].mxu1 }
 0x245   : > { %12126 = vmatmul.mubr.msk.f32.gmra.mrb[50].mxu0 %vm534_vm0, %v16675_v20  ;;  %v17006_v20 = vpop.f32.mrb[78].mxu1 }
 0x246   : > { %3573 = vmatprep.mubr.f32.mxu0 %v15743_v5 }
 0x249   : > { %12127 = vmatmul.mubr.msk.f32.gmra.mrb[52].mxu0 %vm534_vm0, %v16694_v28  ;;  %v17009_v28 = vpop.f32.mrb[79].mxu1 }
 0x24a   : > { %3579 = vmatprep.mubr.f32.mxu0 %v15743_v5 }
 0x24d   : > { %12128 = vmatmul.mubr.msk.f32.gmra.mrb[54].mxu0 %vm534_vm0, %v16691_v8  ;;  %v17016_v8 = vpop.f32.mrb[80].mxu1 }
 0x24e   : > { %3585 = vmatprep.mubr.f32.mxu0 %v15743_v5 }
 0x251   : > { %12129 = vmatmul.mubr.msk.f32.gmra.mrb[56].mxu0 %vm534_vm0, %v16720_v34  ;;  %v17019_v34 = vpop.f32.mrb[81].mxu1 }
 0x252   : > { %3591 = vmatprep.mubr.f32.mxu0 %v15743_v5 }
 0x255   : > { %12130 = vmatmul.mubr.msk.f32.gmra.mrb[58].mxu0 %vm534_vm0, %v16716_v26  ;;  %v17026_v26 = vpop.f32.mrb[82].mxu1 }
 0x256   : > { %3597 = vmatprep.mubr.f32.mxu0 %v15743_v5  ;;  %v17029_v31 = vpop.f32.mrb[83].mxu1 }
 0x259   : > { %12131 = vmatmul.mubr.msk.f32.gmra.mrb[60].mxu0 %vm534_vm0, %v16748_v33 }
 0x25a   : > { %3603 = vmatprep.mubr.f32.mxu0 %v15743_v5 }
 0x25d   : > { %12132 = vmatmul.mubr.msk.f32.gmra.mrb[62].mxu0 %vm534_vm0, %v16745_v16  ;;  %v17036_v16 = vpop.f32.mrb[84].mxu1 }
 0x25e   : > { %3609 = vmatprep.mubr.f32.mxu0 %v15743_v5  ;;  %v17039_v33 = vpop.f32.mrb[85].mxu1 }
 0x261   : > { %12133 = vmatmul.mubr.msk.f32.gmra.mrb[64].mxu0 %vm534_vm0, %v16770_v14 }
 0x262   : > { %3615 = vmatprep.mubr.f32.mxu0 %v15743_v5 }
 0x265   : > { %12134 = vmatmul.mubr.msk.f32.gmra.mrb[66].mxu0 %vm534_vm0, %v16766_v30  ;;  %v17046_v30 = vpop.f32.mrb[86].mxu1 }
 0x266   : > { %3621 = vmatprep.mubr.f32.mxu0 %v15743_v5  ;;  %v17049_v14 = vpop.f32.mrb[87].mxu1 }
 0x269   : > { %12135 = vmatmul.mubr.msk.f32.gmra.mrb[68].mxu0 %vm534_vm0, %v16792_v23 }
 0x26a   : > { %3627 = vmatprep.mubr.f32.mxu0 %v15743_v5 }
 0x26d   : > { %12136 = vmatmul.mubr.msk.f32.gmra.mrb[70].mxu0 %vm534_vm0, %v16788_v22  ;;  %v17056_v22 = vpop.f32.mrb[88].mxu1 }
 0x26e   : > { %3633 = vmatprep.mubr.f32.mxu0 %v15743_v5  ;;  %v17059_v23 = vpop.f32.mrb[89].mxu1 }
 0x26f   : > { %v17066_v32 = vpop.f32.mrb[90].mxu1 }
 0x271   : > { %12137 = vmatmul.mubr.msk.f32.gmra.mrb[72].mxu0 %vm534_vm0, %v16814_v29 }
 0x272   : > { %3639 = vmatprep.mubr.f32.mxu0 %v15743_v5 }
 0x275   : > { %12138 = vmatmul.mubr.msk.f32.gmra.mrb[74].mxu0 %vm534_vm0, %v16810_v36  ;;  %v17069_v36 = vpop.f32.mrb[91].mxu1 }
 0x276   : > { %3645 = vmatprep.mubr.f32.mxu0 %v15743_v5  ;;  %v17076_v29 = vpop.f32.mrb[92].mxu1 }
 0x277   : > { %v17079_v35 = vpop.f32.mrb[93].mxu1 }
 0x278   : > { %v17086_v37 = vpop.f32.mrb[94].mxu1 }
 0x279   : > { %12139 = vmatmul.mubr.msk.f32.gmra.mrb[76].mxu0 %vm534_vm0, %v16836_v38  ;;  %v12261_v38 = vld [vmem:[%s19379_s1 + $0x100] sm:$0xff] }
 0x27a   : > { %3651 = vmatprep.mubr.f32.mxu0 %v15743_v5 }
 0x27d   : > { %12140 = vmatmul.mubr.msk.f32.gmra.mrb[78].mxu0 %vm534_vm0, %v16832_v39  ;;  %v17089_v39 = vpop.f32.mrb[95].mxu1 }
 0x27e   : > { %3657 = vmatprep.mubr.f32.mxu0 %v15743_v5  ;;  %v17109_v47 = vpop.f32.mrb[96].mxu1 }
 0x27f   : > { %v17117_v7 = vpop.f32.mrb[97].mxu1 }
 0x281   : > { %12141 = vmatmul.mubr.msk.f32.gmra.mrb[80].mxu0 %vm534_vm0, %v16858_v41  ;;  %v14680_v41 = vpack.c.bf16 %v12263_v44, %v12261_v38  ;;  %v6062_v38 = vld [vmem:[%s19355_s3 + $0x70] sm:$0xff]  ;;  %v6063_v44 = vld [vmem:[%s19355_s3 + $0x78] sm:$0xff] }
 0x282   : > { %3663 = vmatprep.mubr.f32.mxu0 %v15743_v5 }
 0x285   : > { %12142 = vmatmul.mubr.msk.f32.gmra.mrb[82].mxu0 %vm534_vm0, %v16854_v46  ;;  %v12268_v46 = vld [vmem:[%s19379_s1 + $0x138] sm:$0xff] }
 0x286   : > { %3669 = vmatprep.mubr.f32.mxu0 %v15743_v5  ;;  %v14682_v2 = vpack.c.bf16 %v12268_v46, %v12266_v40  ;;  %v14708_v40 = vpack.c.bf16 %v6063_v44, %v6062_v38  ;;  %v6064_v46 = vld [vmem:[%s19355_s3 + $0x80] sm:$0xff] }
 0x287   : > { %v12329_v44 = vld [vmem:[%s19355_s3 + $0x140] sm:$0xff] }
 0x289   : > { %12143 = vmatmul.mubr.msk.f32.gmra.mrb[84].mxu0 %vm534_vm0, %v16879_v48  ;;  %v12267_v48 = vld [vmem:[%s19379_s1 + $0x130] sm:$0xff] }
 0x28a   : > { %3675 = vmatprep.mubr.f32.mxu0 %v15743_v5 }
 0x28d   : > { %12144 = vmatmul.mubr.msk.f32.gmra.mrb[86].mxu0 %vm534_vm0, %v16876_v0  ;;  %v12265_v0 = vld [vmem:[%s19379_s1 + $0x120] sm:$0xff]  ;;  %s11853_s1 = scalar_lea.sflag [#allocation3], %s488_s24 }
 0x28e   : > { %3681 = vmatprep.mubr.f32.mxu0 %v15743_v5  ;;  %v14684_v51 = vpack.c.bf16 %v12267_v48, %v12265_v0  ;;  %v6067_v0 = vld [vmem:[%s19355_s3 + $0x98] sm:$0xff] }
 0x291   : > { %12145 = vmatmul.mubr.msk.f32.gmra.mrb[88].mxu0 %vm534_vm0, %v16895_v15 }
 0x292   : > { %3687 = vmatprep.mubr.f32.mxu0 %v15743_v5 }
 0x295   : > { %12146 = vmatmul.mubr.msk.f32.gmra.mrb[90].mxu0 %vm534_vm0, %v16892_v10 }
 0x296   : > { %3693 = vmatprep.mubr.f32.mxu0 %v15743_v5 }
 0x299   : > { %12147 = vmatmul.mubr.msk.f32.gmra.mrb[92].mxu0 %vm534_vm0, %v16905_v58 }
 0x29a   : > { %3699 = vmatprep.mubr.f32.mxu0 %v15743_v5 }
 0x29d   : > { %12148 = vmatmul.mubr.msk.f32.gmra.mrb[94].mxu0 %vm534_vm0, %v16902_v9 }
 0x29e   : > { %4636 = vmatprep.mubr.f32.mxu0 %v15743_v5 }
 0x2a1   : > { %12193 = vmatmul.mubr.msk.f32.vlgmr.msra.gmra.mrb[32].mxu0 %vm534_vm0, %v16933_v55  ;;  %v17125_v10 = vpop.f32.mrb[98].mxu1 }
 0x2a2   : > { %4642 = vmatprep.mubr.f32.mxu0 %v15743_v5  ;;  %14681 = vmatpush1.bf16.msra.mxu0 %v14680_v41  ;;  %v17127_v15 = vpop.f32.mrb[99].mxu1  ;;  %v6065_v41 = vld [vmem:[%s19355_s3 + $0x88] sm:$0xff] }
 0x2a3   : > { %14683 = vmatprep.subr.bf16.mxu0 %v14682_v2  ;;  %v6066_v2 = vld [vmem:[%s19355_s3 + $0x90] sm:$0xff] }
 0x2a4   : > { %v14714_v48 = vpack.c.bf16 %v6067_v0, %v6066_v2  ;;  %v12331_v2 = vld [vmem:[%s19355_s3 + $0x150] sm:$0xff]  ;;  %v12332_v0 = vld [vmem:[%s19355_s3 + $0x158] sm:$0xff] }
 0x2a5   : > { %12194 = vmatmul.mubr.msk.f32.gmra.mrb[34].mxu0 %vm534_vm0, %v16925_v49  ;;  %v17134_v12 = vpop.f32.mrb[100].mxu1 }
 0x2a6   : > { %4648 = vmatprep.mubr.f32.mxu0 %v15743_v5  ;;  %14685 = vmatpush1.bf16.msra.mxu0 %v14684_v51  ;;  %v17137_v13 = vpop.f32.mrb[101].mxu1  ;;  %v6069_v51 = vld [vmem:[%s19355_s3 + $0xa8] sm:$0xff] }
 0x2a9   : > { %12195 = vmatmul.mubr.msk.f32.gmra.mrb[36].mxu0 %vm534_vm0, %v16943_v27  ;;  %v17144_v9 = vpop.f32.mrb[102].mxu1 }
 0x2aa   : > { %4654 = vmatprep.mubr.f32.mxu0 %v15743_v5  ;;  %v17147_v58 = vpop.f32.mrb[103].mxu1 }
 0x2ad   : > { %12196 = vmatmul.mubr.msk.f32.gmra.mrb[38].mxu0 %vm534_vm0, %v16941_v19  ;;  %v17154_v57 = vpop.f32.mrb[104].mxu1 }
 0x2ae   : > { %4660 = vmatprep.mubr.f32.mxu0 %v15743_v5  ;;  %v17157_v61 = vpop.f32.mrb[105].mxu1 }
 0x2b1   : > { %12197 = vmatmul.mubr.msk.f32.gmra.mrb[40].mxu0 %vm534_vm0, %v16953_v50  ;;  %v17164_v42 = vpop.f32.mrb[106].mxu1 }
 0x2b2   : > { %4666 = vmatprep.mubr.f32.mxu0 %v15743_v5  ;;  %v17167_v52 = vpop.f32.mrb[107].mxu1 }
 0x2b5   : > { %12198 = vmatmul.mubr.msk.f32.gmra.mrb[42].mxu0 %vm534_vm0, %v16950_v56  ;;  %v17174_v4 = vpop.f32.mrb[108].mxu1 }
 0x2b6   : > { %4672 = vmatprep.mubr.f32.mxu0 %v15743_v5  ;;  %v17177_v6 = vpop.f32.mrb[109].mxu1 }
 0x2b9   : > { %12199 = vmatmul.mubr.msk.f32.gmra.mrb[44].mxu0 %vm534_vm0, %v16963_v25  ;;  %v17184_v43 = vpop.f32.mrb[110].mxu1 }
 0x2ba   : > { %4678 = vmatprep.mubr.f32.mxu0 %v15743_v5  ;;  %v17187_v49 = vpop.f32.mrb[111].mxu1 }
 0x2bd   : > { %12200 = vmatmul.mubr.msk.f32.gmra.mrb[46].mxu0 %vm534_vm0, %v16960_v1  ;;  %v17194_v45 = vpop.f32.mrb[112].mxu1 }
 0x2be   : > { %4684 = vmatprep.mubr.f32.mxu0 %v15743_v5  ;;  %v17197_v53 = vpop.f32.mrb[113].mxu1 }
 0x2c1   : > { %12201 = vmatmul.mubr.msk.f32.gmra.mrb[48].mxu0 %vm534_vm0, %v16973_v17  ;;  %v17204_v54 = vpop.f32.mrb[114].mxu1 }
 0x2c2   : > { %4690 = vmatprep.mubr.f32.mxu0 %v15743_v5  ;;  %v17207_v55 = vpop.f32.mrb[115].mxu1 }
 0x2c5   : > { %12202 = vmatmul.mubr.msk.f32.gmra.mrb[50].mxu0 %vm534_vm0, %v16970_v62  ;;  %v17214_v59 = vpop.f32.mrb[116].mxu1 }
 0x2c6   : > { %4696 = vmatprep.mubr.f32.mxu0 %v15743_v5  ;;  %v17217_v19 = vpop.f32.mrb[117].mxu1 }
 0x2c9   : > { %12203 = vmatmul.mubr.msk.f32.gmra.mrb[52].mxu0 %vm534_vm0, %v16989_v21  ;;  %v17224_v27 = vpop.f32.mrb[118].mxu1  ;;  %v6049_v21 = vld [vmem:[%s19355_s3 + $0x8] sm:$0xff] }
 0x2ca   : > { %4702 = vmatprep.mubr.f32.mxu0 %v15743_v5  ;;  %v17227_v56 = vpop.f32.mrb[119].mxu1 }
 0x2cd   : > { %12204 = vmatmul.mubr.msk.f32.gmra.mrb[54].mxu0 %vm534_vm0, %v16986_v63  ;;  %v17234_v50 = vpop.f32.mrb[120].mxu1  ;;  %v6048_v63 = vld [vmem:[%s19355_s3] sm:$0xff] }
 0x2ce   : > { %4708 = vmatprep.mubr.f32.mxu0 %v15743_v5  ;;  %v17237_v1 = vpop.f32.mrb[121].mxu1 }
 0x2d1   : > { %12205 = vmatmul.mubr.msk.f32.gmra.mrb[56].mxu0 %vm534_vm0, %v16999_v11  ;;  %v17244_v25 = vpop.f32.mrb[122].mxu1  ;;  %v15744_v11 = vmov 0.0|0.0  }
 0x2d2   : > { %4714 = vmatprep.mubr.f32.mxu0 %v15743_v5  ;;  %v17247_v62 = vpop.f32.mrb[123].mxu1  ;;  %14686 = vmatprep.subr.bf16.mxu1 %v15744_v11 }
 0x2d5   : > { %12206 = vmatmul.mubr.msk.f32.gmra.mrb[58].mxu0 %vm534_vm0, %v16996_v3  ;;  %v17254_v17 = vpop.f32.mrb[124].mxu1  ;;  %v6050_v3 = vld [vmem:[%s19355_s3 + $0x10] sm:$0xff] }
 0x2d6   : > { %4720 = vmatprep.mubr.f32.mxu0 %v15743_v5  ;;  %v17257_v18 = vpop.f32.mrb[125].mxu1 }
 0x2d9   : > { %12207 = vmatmul.mubr.msk.f32.gmra.mrb[60].mxu0 %vm534_vm0, %v17009_v28  ;;  %v17264_v60 = vpop.f32.mrb[126].mxu1  ;;  %v6051_v28 = vld [vmem:[%s19355_s3 + $0x18] sm:$0xff] }
 0x2da   : > { %4726 = vmatprep.mubr.f32.mxu0 %v15743_v5  ;;  %v17267_v24 = vpop.f32.mrb[127].mxu1 }
 0x2dd   : > { %12208 = vmatmul.mubr.msk.f32.gmra.mrb[62].mxu0 %vm534_vm0, %v17006_v20  ;;  %v14687_v20 = vpack.c.bf16 %v6049_v21, %v6048_v63 }
 0x2de   : > { %4732 = vmatprep.mubr.f32.mxu0 %v15743_v5 }
 0x2df   : > { %14688 = vmatpush1.bf16.msra.mxu1 %v14687_v20  ;;  %v12323_v20 = vld [vmem:[%s19355_s3 + $0x110] sm:$0xff] }
 0x2e0   : > { %14689 = vmatprep.subr.bf16.mxu1 %v15744_v11 }
 0x2e1   : > { %12209 = vmatmul.mubr.msk.f32.gmra.mrb[64].mxu0 %vm534_vm0, %v17019_v34  ;;  %v6052_v34 = vld [vmem:[%s19355_s3 + $0x20] sm:$0xff] }
 0x2e2   : > { %4738 = vmatprep.mubr.f32.mxu0 %v15743_v5 }
 0x2e5   : > { %12210 = vmatmul.mubr.msk.f32.gmra.mrb[66].mxu0 %vm534_vm0, %v17016_v8  ;;  %v14690_v8 = vpack.c.bf16 %v6051_v28, %v6050_v3  ;;  %v12324_v28 = vld [vmem:[%s19355_s3 + $0x118] sm:$0xff] }
 0x2e6   : > { %4744 = vmatprep.mubr.f32.mxu0 %v15743_v5 }
 0x2e7   : > { %14691 = vmatpush1.bf16.msra.mxu1 %v14690_v8 }
 0x2e8   : > { %14692 = vmatprep.subr.bf16.mxu1 %v15744_v11 }
 0x2e9   : > { %12211 = vmatmul.mubr.msk.f32.gmra.mrb[68].mxu0 %vm534_vm0, %v17029_v31 }
 0x2ea   : > { %4750 = vmatprep.mubr.f32.mxu0 %v15743_v5 }
 0x2ed   : > { %12212 = vmatmul.mubr.msk.f32.gmra.mrb[70].mxu0 %vm534_vm0, %v17026_v26  ;;  %v6053_v26 = vld [vmem:[%s19355_s3 + $0x28] sm:$0xff] }
 0x2ee   : > { %4756 = vmatprep.mubr.f32.mxu0 %v15743_v5  ;;  %v14693_v31 = vpack.c.bf16 %v6053_v26, %v6052_v34  ;;  %v14738_v26 = vpack.c.bf16 %v12324_v28, %v12323_v20 }
 0x2f0   : > { %14694 = vmatpush1.bf16.msra.mxu1 %v14693_v31  ;;  %v12325_v31 = vld [vmem:[%s19355_s3 + $0x120] sm:$0xff] }
 0x2f1   : > { %12213 = vmatmul.mubr.msk.f32.gmra.mrb[72].mxu0 %vm534_vm0, %v17039_v33  ;;  %v6055_v33 = vld [vmem:[%s19355_s3 + $0x38] sm:$0xff]  ;;  %14695 = vmatprep.subr.bf16.mxu1 %v15744_v11 }
 0x2f2   : > { %4762 = vmatprep.mubr.f32.mxu0 %v15743_v5 }
 0x2f5   : > { %12214 = vmatmul.mubr.msk.f32.gmra.mrb[74].mxu0 %vm534_vm0, %v17036_v16  ;;  %v6054_v16 = vld [vmem:[%s19355_s3 + $0x30] sm:$0xff] }
 0x2f6   : > { %4768 = vmatprep.mubr.f32.mxu0 %v15743_v5 }
 0x2f9   : > { %12215 = vmatmul.mubr.msk.f32.gmra.mrb[76].mxu0 %vm534_vm0, %v17049_v14  ;;  %v6056_v14 = vld [vmem:[%s19355_s3 + $0x40] sm:$0xff] }
 0x2fa   : > { %4774 = vmatprep.mubr.f32.mxu0 %v15743_v5 }
 0x2fd   : > { %12216 = vmatmul.mubr.msk.f32.gmra.mrb[78].mxu0 %vm534_vm0, %v17046_v30  ;;  %v14696_v30 = vpack.c.bf16 %v6055_v33, %v6054_v16  ;;  %v12326_v16 = vld [vmem:[%s19355_s3 + $0x128] sm:$0xff] }
 0x2fe   : > { %4780 = vmatprep.mubr.f32.mxu0 %v15743_v5 }
 0x2ff   : > { %14697 = vmatpush1.bf16.msra.mxu1 %v14696_v30 }
 0x300   : > { %14698 = vmatprep.subr.bf16.mxu1 %v15744_v11 }
 0x301   : > { %12217 = vmatmul.mubr.msk.f32.gmra.mrb[80].mxu0 %vm534_vm0, %v17059_v23 }
 0x302   : > { %4786 = vmatprep.mubr.f32.mxu0 %v15743_v5 }
 0x305   : > { %12218 = vmatmul.mubr.msk.f32.gmra.mrb[82].mxu0 %vm534_vm0, %v17056_v22  ;;  %v6057_v22 = vld [vmem:[%s19355_s3 + $0x48] sm:$0xff] }
 0x306   : > { %4792 = vmatprep.mubr.f32.mxu0 %v15743_v5  ;;  %v14699_v23 = vpack.c.bf16 %v6057_v22, %v6056_v14 }
 0x308   : > { %14700 = vmatpush1.bf16.msra.mxu1 %v14699_v23  ;;  %v14741_v23 = vpack.c.bf16 %v12326_v16, %v12325_v31 }
 0x309   : > { %12219 = vmatmul.mubr.msk.f32.gmra.mrb[84].mxu0 %vm534_vm0, %v17069_v36  ;;  %v6059_v36 = vld [vmem:[%s19355_s3 + $0x58] sm:$0xff]  ;;  %14701 = vmatprep.subr.bf16.mxu1 %v15744_v11 }
 0x30a   : > { %4798 = vmatprep.mubr.f32.mxu0 %v15743_v5 }
 0x30d   : > { %12220 = vmatmul.mubr.msk.f32.gmra.mrb[86].mxu0 %vm534_vm0, %v17066_v32  ;;  %v6058_v32 = vld [vmem:[%s19355_s3 + $0x50] sm:$0xff] }
 0x30e   : > { %4804 = vmatprep.mubr.f32.mxu0 %v15743_v5 }
 0x311   : > { %12221 = vmatmul.mubr.msk.f32.gmra.mrb[88].mxu0 %vm534_vm0, %v17079_v35  ;;  %v6060_v35 = vld [vmem:[%s19355_s3 + $0x60] sm:$0xff] }
 0x312   : > { %4810 = vmatprep.mubr.f32.mxu0 %v15743_v5 }
 0x315   : > { %12222 = vmatmul.mubr.msk.f32.gmra.mrb[90].mxu0 %vm534_vm0, %v17076_v29  ;;  %v14702_v29 = vpack.c.bf16 %v6059_v36, %v6058_v32  ;;  %v12327_v32 = vld [vmem:[%s19355_s3 + $0x130] sm:$0xff]  ;;  %v12328_v36 = vld [vmem:[%s19355_s3 + $0x138] sm:$0xff] }
 0x316   : > { %4816 = vmatprep.mubr.f32.mxu0 %v15743_v5  ;;  %v14744_v38 = vpack.c.bf16 %v12328_v36, %v12327_v32 }
 0x317   : > { %14703 = vmatpush1.bf16.msra.mxu1 %v14702_v29 }
 0x318   : > { %14704 = vmatprep.subr.bf16.mxu1 %v15744_v11 }
 0x319   : > { %12223 = vmatmul.mubr.msk.f32.gmra.mrb[92].mxu0 %vm534_vm0, %v17089_v39 }
 0x31a   : > { %4822 = vmatprep.mubr.f32.mxu0 %v15743_v5 }
 0x31d   : > { %12224 = vmatmul.mubr.msk.f32.gmra.mrb[94].mxu0 %vm534_vm0, %v17086_v37  ;;  %v6061_v37 = vld [vmem:[%s19355_s3 + $0x68] sm:$0xff] }
 0x31e   : > { %5759 = vmatprep.mubr.f32.mxu0 %v15743_v5  ;;  %v14705_v39 = vpack.c.bf16 %v6061_v37, %v6060_v35 }
 0x320   : > { %14706 = vmatpush1.bf16.msra.mxu1 %v14705_v39 }
 0x321   : > { %12269 = vmatmul.mubr.msk.f32.vlgmr.msra.gmra.mrb[32].mxu0 %vm534_vm0, %v17117_v7  ;;  %14707 = vmatprep.subr.bf16.mxu1 %v15744_v11  ;;  %v6068_v7 = vld [vmem:[%s19355_s3 + $0xa0] sm:$0xff] }
 0x322   : > { %5765 = vmatprep.mubr.f32.mxu0 %v15743_v5 }
 0x324   : > { %14709 = vmatpush1.bf16.msra.mxu1 %v14708_v40  ;;  %v12330_v40 = vld [vmem:[%s19355_s3 + $0x148] sm:$0xff] }
 0x325   : > { %12270 = vmatmul.mubr.msk.f32.gmra.mrb[34].mxu0 %vm534_vm0, %v17109_v47  ;;  %v14711_v47 = vpack.c.bf16 %v6065_v41, %v6064_v46  ;;  %14710 = vmatprep.subr.bf16.mxu1 %v15744_v11 }
 0x326   : > { %5771 = vmatprep.mubr.f32.mxu0 %v15743_v5 }
 0x328   : > { %14712 = vmatpush1.bf16.msra.mxu1 %v14711_v47  ;;  %v14747_v47 = vpack.c.bf16 %v12330_v40, %v12329_v44 }
 0x329   : > { %12271 = vmatmul.mubr.msk.f32.gmra.mrb[36].mxu0 %vm534_vm0, %v17127_v15  ;;  %14713 = vmatprep.subr.bf16.mxu1 %v15744_v11  ;;  %v6070_v15 = vld [vmem:[%s19355_s3 + $0xb0] sm:$0xff] }
 0x32a   : > { %5777 = vmatprep.mubr.f32.mxu0 %v15743_v5 }
 0x32c   : > { %14715 = vmatpush1.bf16.msra.mxu1 %v14714_v48 }
 0x32d   : > { %12272 = vmatmul.mubr.msk.f32.gmra.mrb[38].mxu0 %vm534_vm0, %v17125_v10  ;;  %v14717_v10 = vpack.c.bf16 %v6069_v51, %v6068_v7  ;;  %14716 = vmatprep.subr.bf16.mxu1 %v15744_v11  ;;  %v14750_v51 = vpack.c.bf16 %v12332_v0, %v12331_v2 }
 0x32e   : > { %5783 = vmatprep.mubr.f32.mxu0 %v15743_v5 }
 0x330   : > { %14718 = vmatpush1.bf16.msra.mxu1 %v14717_v10  ;;  %v12333_v10 = vld [vmem:[%s19355_s3 + $0x160] sm:$0xff] }
 0x331   : > { %12273 = vmatmul.mubr.msk.f32.gmra.mrb[40].mxu0 %vm534_vm0, %v17137_v13  ;;  %14719 = vmatprep.subr.bf16.mxu1 %v15744_v11 }
 0x332   : > { %5789 = vmatprep.mubr.f32.mxu0 %v15743_v5 }
 0x335   : > { %12274 = vmatmul.mubr.msk.f32.gmra.mrb[42].mxu0 %vm534_vm0, %v17134_v12  ;;  %v6071_v12 = vld [vmem:[%s19355_s3 + $0xb8] sm:$0xff] }
 0x336   : > { %5795 = vmatprep.mubr.f32.mxu0 %v15743_v5  ;;  %v14720_v13 = vpack.c.bf16 %v6071_v12, %v6070_v15  ;;  %v12334_v15 = vld [vmem:[%s19355_s3 + $0x168] sm:$0xff] }
 0x338   : > { %14721 = vmatpush1.bf16.msra.mxu1 %v14720_v13 }
 0x339   : > { %12275 = vmatmul.mubr.msk.f32.gmra.mrb[44].mxu0 %vm534_vm0, %v17147_v58  ;;  %14722 = vmatprep.subr.bf16.mxu1 %v15744_v11  ;;  %v6073_v58 = vld [vmem:[%s19355_s3 + $0xc8] sm:$0xff] }
 0x33a   : > { %5801 = vmatprep.mubr.f32.mxu0 %v15743_v5 }
 0x33d   : > { %12276 = vmatmul.mubr.msk.f32.gmra.mrb[46].mxu0 %vm534_vm0, %v17144_v9  ;;  %v6072_v9 = vld [vmem:[%s19355_s3 + $0xc0] sm:$0xff] }
 0x33e   : > { %5807 = vmatprep.mubr.f32.mxu0 %v15743_v5 }
 0x341   : > { %12277 = vmatmul.mubr.msk.f32.gmra.mrb[48].mxu0 %vm534_vm0, %v17157_v61  ;;  %v6074_v61 = vld [vmem:[%s19355_s3 + $0xd0] sm:$0xff] }
 0x342   : > { %5813 = vmatprep.mubr.f32.mxu0 %v15743_v5 }
 0x345   : > { %12278 = vmatmul.mubr.msk.f32.gmra.mrb[50].mxu0 %vm534_vm0, %v17154_v57  ;;  %v14723_v57 = vpack.c.bf16 %v6073_v58, %v6072_v9 }
 0x346   : > { %5819 = vmatprep.mubr.f32.mxu0 %v15743_v5 }
 0x347   : > { %14724 = vmatpush1.bf16.msra.mxu1 %v14723_v57  ;;  %v14753_v57 = vpack.c.bf16 %v12334_v15, %v12333_v10 }
 0x348   : > { %14725 = vmatprep.subr.bf16.mxu1 %v15744_v11 }
 0x349   : > { %12279 = vmatmul.mubr.msk.f32.gmra.mrb[52].mxu0 %vm534_vm0, %v17167_v52 }
 0x34a   : > { %5825 = vmatprep.mubr.f32.mxu0 %v15743_v5 }
 0x34d   : > { %12280 = vmatmul.mubr.msk.f32.gmra.mrb[54].mxu0 %vm534_vm0, %v17164_v42  ;;  %v6075_v42 = vld [vmem:[%s19355_s3 + $0xd8] sm:$0xff] }
 0x34e   : > { %5831 = vmatprep.mubr.f32.mxu0 %v15743_v5  ;;  %v14726_v52 = vpack.c.bf16 %v6075_v42, %v6074_v61  ;;  %v12335_v61 = vld [vmem:[%s19355_s3 + $0x170] sm:$0xff]  ;;  %v12336_v42 = vld [vmem:[%s19355_s3 + $0x178] sm:$0xff] }
 0x350   : > { %14727 = vmatpush1.bf16.msra.mxu1 %v14726_v52 }
 0x351   : > { %12281 = vmatmul.mubr.msk.f32.gmra.mrb[56].mxu0 %vm534_vm0, %v17177_v6  ;;  %14728 = vmatprep.subr.bf16.mxu1 %v15744_v11 }
 0x352   : > { %5837 = vmatprep.mubr.f32.mxu0 %v15743_v5 }
 0x355   : > { %12282 = vmatmul.mubr.msk.f32.gmra.mrb[58].mxu0 %vm534_vm0, %v17174_v4 }
 0x356   : > { %5843 = vmatprep.mubr.f32.mxu0 %v15743_v5 }
 0x359   : > { %12283 = vmatmul.mubr.msk.f32.gmra.mrb[60].mxu0 %vm534_vm0, %v17187_v49 }
 0x35a   : > { %5849 = vmatprep.mubr.f32.mxu0 %v15743_v5 }
 0x35d   : > { %12284 = vmatmul.mubr.msk.f32.gmra.mrb[62].mxu0 %vm534_vm0, %v17184_v43 }
 0x35e   : > { %5855 = vmatprep.mubr.f32.mxu0 %v15743_v5 }
 0x361   : > { %12285 = vmatmul.mubr.msk.f32.gmra.mrb[64].mxu0 %vm534_vm0, %v17197_v53  ;;  %v12318_v53 = vld [vmem:[%s19355_s3 + $0xe8] sm:$0xff] }
 0x362   : > { %5861 = vmatprep.mubr.f32.mxu0 %v15743_v5 }
 0x365   : > { %12286 = vmatmul.mubr.msk.f32.gmra.mrb[66].mxu0 %vm534_vm0, %v17194_v45  ;;  %v12317_v45 = vld [vmem:[%s19355_s3 + $0xe0] sm:$0xff] }
 0x366   : > { %5867 = vmatprep.mubr.f32.mxu0 %v15743_v5 }
 0x369   : > { %12287 = vmatmul.mubr.msk.f32.gmra.mrb[68].mxu0 %vm534_vm0, %v17207_v55 }
 0x36a   : > { %5873 = vmatprep.mubr.f32.mxu0 %v15743_v5 }
 0x36d   : > { %12288 = vmatmul.mubr.msk.f32.gmra.mrb[70].mxu0 %vm534_vm0, %v17204_v54 }
 0x36e   : > { %5879 = vmatprep.mubr.f32.mxu0 %v15743_v5 }
 0x371   : > { %12289 = vmatmul.mubr.msk.f32.gmra.mrb[72].mxu0 %vm534_vm0, %v17217_v19 }
 0x372   : > { %5885 = vmatprep.mubr.f32.mxu0 %v15743_v5 }
 0x375   : > { %12290 = vmatmul.mubr.msk.f32.gmra.mrb[74].mxu0 %vm534_vm0, %v17214_v59 }
 0x376   : > { %5891 = vmatprep.mubr.f32.mxu0 %v15743_v5 }
 0x379   : > { %12291 = vmatmul.mubr.msk.f32.gmra.mrb[76].mxu0 %vm534_vm0, %v17227_v56  ;;  %v12319_v56 = vld [vmem:[%s19355_s3 + $0xf0] sm:$0xff] }
 0x37a   : > { %5897 = vmatprep.mubr.f32.mxu0 %v15743_v5 }
 0x37d   : > { %12292 = vmatmul.mubr.msk.f32.gmra.mrb[78].mxu0 %vm534_vm0, %v17224_v27  ;;  %v14729_v27 = vpack.c.bf16 %v12318_v53, %v12317_v45  ;;  %v12337_v45 = vld [vmem:[%s19355_s3 + $0x180] sm:$0xff]  ;;  %v12338_v53 = vld [vmem:[%s19355_s3 + $0x188] sm:$0xff] }
 0x37e   : > { %5903 = vmatprep.mubr.f32.mxu0 %v15743_v5 }
 0x381   : > { %12293 = vmatmul.mubr.msk.f32.gmra.mrb[80].mxu0 %vm534_vm0, %v17237_v1 }
 0x382   : > { %5909 = vmatprep.mubr.f32.mxu0 %v15743_v5 }
 0x385   : > { %12294 = vmatmul.mubr.msk.f32.gmra.mrb[82].mxu0 %vm534_vm0, %v17234_v50  ;;  %v12320_v50 = vld [vmem:[%s19355_s3 + $0xf8] sm:$0xff] }
 0x386   : > { %5915 = vmatprep.mubr.f32.mxu0 %v15743_v5 }
 0x389   : > { %12295 = vmatmul.mubr.msk.f32.gmra.mrb[84].mxu0 %vm534_vm0, %v17247_v62 }
 0x38a   : > { %5921 = vmatprep.mubr.f32.mxu0 %v15743_v5 }
 0x38d   : > { %12296 = vmatmul.mubr.msk.f32.gmra.mrb[86].mxu0 %vm534_vm0, %v17244_v25 }
 0x38e   : > { %5927 = vmatprep.mubr.f32.mxu0 %v15743_v5 }
 0x391   : > { %12297 = vmatmul.mubr.msk.f32.gmra.mrb[88].mxu0 %vm534_vm0, %v17257_v18  ;;  %v14732_v18 = vpack.c.bf16 %v12320_v50, %v12319_v56  ;;  %v12339_v56 = vld [vmem:[%s19355_s3 + $0x190] sm:$0xff]  ;;  %v12340_v50 = vld [vmem:[%s19355_s3 + $0x198] sm:$0xff] }
 0x392   : > { %5933 = vmatprep.mubr.f32.mxu0 %v15743_v5 }
 0x395   : > { %12298 = vmatmul.mubr.msk.f32.gmra.mrb[90].mxu0 %vm534_vm0, %v17254_v17 }
 0x396   : > { %5939 = vmatprep.mubr.f32.mxu0 %v15743_v5 }
 0x399   : > { %12299 = vmatmul.mubr.msk.f32.gmra.mrb[92].mxu0 %vm534_vm0, %v17267_v24  ;;  %v12322_v24 = vld [vmem:[%s19355_s3 + $0x108] sm:$0xff] }
 0x39a   : > { %5945 = vmatprep.mubr.f32.mxu0 %v15743_v5 }
 0x39d   : > { %12300 = vmatmul.mubr.msk.f32.gmra.mrb[94].mxu0 %vm534_vm0, %v17264_v60  ;;  %v12321_v60 = vld [vmem:[%s19355_s3 + $0x100] sm:$0xff] }
 0x39e   : > { %v14735_v3 = vpack.c.bf16 %v12322_v24, %v12321_v60  ;;  %v12341_v60 = vld [vmem:[%s19355_s3 + $0x1a0] sm:$0xff]  ;;  %v12342_v24 = vld [vmem:[%s19355_s3 + $0x1a8] sm:$0xff] }
 0x39f   : > { %v14765_v28 = vpack.c.bf16 %v12342_v24, %v12341_v60 }
 0x3f4   : > { %v5761_v4 = vpop.f32.mrb[32].mxu0 }
 0x3f5   : > { %v5763_v6 = vpop.f32.mrb[33].mxu0 }
 0x3f8   : > { %v5767_v43 = vpop.f32.mrb[34].mxu0 }
 0x3f9   : > { %v5769_v49 = vpop.f32.mrb[35].mxu0 }
 0x3fc   : > { %v5773_v54 = vpop.f32.mrb[36].mxu0 }
 0x3fd   : > { %v17475_v55 = vmax.f32 %v5761_v4, %v5773_v54  ;;  %v5775_v59 = vpop.f32.mrb[37].mxu0 }
 0x3fe   : > { %v17477_v19 = vmax.f32 %v5763_v6, %v5775_v59 }
 0x400   : > { %v5779_v1 = vpop.f32.mrb[38].mxu0  ;;  %12301 = vmatprep.mubr.msk.f32.mxu1 %vm6076_vm1, %v17477_v19 }
 0x401   : > { %v17487_v25 = vmax.f32 %v5767_v43, %v5779_v1  ;;  %v5781_v62 = vpop.f32.mrb[39].mxu0  ;;  %6190 = vmatmul.mubr.f32.vlgmr.msra.gmra.mrb[128].mxu1 %v17475_v55 }
 0x402   : > { %v17490_v17 = vmax.f32 %v5769_v49, %v5781_v62  ;;  %14730 = vmatpush1.bf16.msra.mxu1 %v14729_v27  ;;  %v14756_v49 = vpack.c.bf16 %v12336_v42, %v12335_v61  ;;  %v14759_v27 = vpack.c.bf16 %v12338_v53, %v12337_v45 }
 0x403   : > { %14731 = vmatprep.subr.bf16.mxu1 %v15744_v11 }
 0x404   : > { %v5785_v63 = vpop.f32.mrb[40].mxu0  ;;  %12302 = vmatprep.mubr.msk.f32.mxu1 %vm6076_vm1, %v17490_v17 }
 0x405   : > { %v5787_v21 = vpop.f32.mrb[41].mxu0  ;;  %6195 = vmatmul.mubr.f32.gmra.mrb[130].mxu1 %v17487_v25 }
 0x406   : > { %14733 = vmatpush1.bf16.msra.mxu1 %v14732_v18  ;;  %v14762_v18 = vpack.c.bf16 %v12340_v50, %v12339_v56 }
 0x407   : > { %14734 = vmatprep.subr.bf16.mxu1 %v15744_v11 }
 0x408   : > { %v5791_v8 = vpop.f32.mrb[42].mxu0 }
 0x409   : > { %v5793_v34 = vpop.f32.mrb[43].mxu0 }
 0x40a   : > { %14736 = vmatpush1.bf16.msra.mxu1 %v14735_v3 }
 0x40b   : > { %14737 = vmatprep.subr.bf16.mxu1 %v15744_v11 }
 0x40c   : > { %v5797_v33 = vpop.f32.mrb[44].mxu0 }
 0x40d   : > { %v17516_v30 = vmax.f32 %v5785_v63, %v5797_v33  ;;  %v5799_v14 = vpop.f32.mrb[45].mxu0 }
 0x40e   : > { %v17518_v22 = vmax.f32 %v5787_v21, %v5799_v14  ;;  %14739 = vmatpush1.bf16.msra.mxu1 %v14738_v26 }
 0x40f   : > { %14740 = vmatprep.subr.bf16.mxu1 %v15744_v11 }
 0x410   : > { %v5803_v29 = vpop.f32.mrb[46].mxu0  ;;  %12303 = vmatprep.mubr.msk.f32.mxu1 %vm6076_vm1, %v17518_v22 }
 0x411   : > { %v17529_v35 = vmax.f32 %v5791_v8, %v5803_v29  ;;  %v5805_v37 = vpop.f32.mrb[47].mxu0  ;;  %6200 = vmatmul.mubr.f32.gmra.mrb[132].mxu1 %v17516_v30  ;;  %v12343_v8 = vld [vmem:[%s19355_s3 + $0x1b0] sm:$0xff] }
 0x412   : > { %v17532_v39 = vmax.f32 %v5793_v34, %v5805_v37  ;;  %14742 = vmatpush1.bf16.msra.mxu1 %v14741_v23  ;;  %v12344_v34 = vld [vmem:[%s19355_s3 + $0x1b8] sm:$0xff] }
 0x413   : > { %14743 = vmatprep.subr.bf16.mxu1 %v15744_v11  ;;  %v14768_v14 = vpack.c.bf16 %v12344_v34, %v12343_v8 }
 0x414   : > { %v5809_v46 = vpop.f32.mrb[48].mxu0  ;;  %12304 = vmatprep.mubr.msk.f32.mxu1 %vm6076_vm1, %v17532_v39 }
 0x415   : > { %v5811_v41 = vpop.f32.mrb[49].mxu0  ;;  %6205 = vmatmul.mubr.f32.gmra.mrb[134].mxu1 %v17529_v35 }
 0x416   : > { %14745 = vmatpush1.bf16.msra.mxu1 %v14744_v38 }
 0x417   : > { %14746 = vmatprep.subr.bf16.mxu1 %v15744_v11 }
 0x418   : > { %v5815_v48 = vpop.f32.mrb[50].mxu0 }
 0x419   : > { %v5817_v7 = vpop.f32.mrb[51].mxu0 }
 0x41a   : > { %14748 = vmatpush1.bf16.msra.mxu1 %v14747_v47 }
 0x41b   : > { %14749 = vmatprep.subr.bf16.mxu1 %v15744_v11 }
 0x41c   : > { %v5821_v12 = vpop.f32.mrb[52].mxu0 }
 0x41d   : > { %v17558_v13 = vmax.f32 %v5809_v46, %v5821_v12  ;;  %v5823_v9 = vpop.f32.mrb[53].mxu0 }
 0x41e   : > { %v17560_v58 = vmax.f32 %v5811_v41, %v5823_v9  ;;  %14751 = vmatpush1.bf16.msra.mxu1 %v14750_v51 }
 0x41f   : > { %14752 = vmatprep.subr.bf16.mxu1 %v15744_v11 }
 0x420   : > { %v5827_v52 = vpop.f32.mrb[54].mxu0  ;;  %12305 = vmatprep.mubr.msk.f32.mxu1 %vm6076_vm1, %v17560_v58 }
 0x421   : > { %v17571_v4 = vmax.f32 %v5815_v48, %v5827_v52  ;;  %v5829_v6 = vpop.f32.mrb[55].mxu0  ;;  %6210 = vmatmul.mubr.f32.gmra.mrb[136].mxu1 %v17558_v13 }
 0x422   : > { %v17574_v43 = vmax.f32 %v5817_v7, %v5829_v6  ;;  %14754 = vmatpush1.bf16.msra.mxu1 %v14753_v57 }
 0x423   : > { %14755 = vmatprep.subr.bf16.mxu1 %v15744_v11 }
 0x424   : > { %v5833_v54 = vpop.f32.mrb[56].mxu0  ;;  %12306 = vmatprep.mubr.msk.f32.mxu1 %vm6076_vm1, %v17574_v43 }
 0x425   : > { %v5835_v59 = vpop.f32.mrb[57].mxu0  ;;  %6215 = vmatmul.mubr.f32.gmra.mrb[138].mxu1 %v17571_v4 }
 0x426   : > { %14757 = vmatpush1.bf16.msra.mxu1 %v14756_v49 }
 0x427   : > { %14758 = vmatprep.subr.bf16.mxu1 %v15744_v11 }
 0x428   : > { %v5839_v1 = vpop.f32.mrb[58].mxu0 }
 0x429   : > { %v5841_v62 = vpop.f32.mrb[59].mxu0 }
 0x42a   : > { %14760 = vmatpush1.bf16.msra.mxu1 %v14759_v27 }
 0x42b   : > { %14761 = vmatprep.subr.bf16.mxu1 %v15744_v11 }
 0x42c   : > { %v5845_v63 = vpop.f32.mrb[60].mxu0 }
 0x42d   : > { %v17600_v21 = vmax.f32 %v5833_v54, %v5845_v63  ;;  %v5847_v3 = vpop.f32.mrb[61].mxu0 }
 0x42e   : > { %v17602_v20 = vmax.f32 %v5835_v59, %v5847_v3  ;;  %14763 = vmatpush1.bf16.msra.mxu1 %v14762_v18 }
 0x42f   : > { %14764 = vmatprep.subr.bf16.mxu1 %v15744_v11 }
 0x430   : > { %v5851_v26 = vpop.f32.mrb[62].mxu0  ;;  %12307 = vmatprep.mubr.msk.f32.mxu1 %vm6076_vm1, %v17602_v20 }
 0x431   : > { %v17613_v31 = vmax.f32 %v5839_v1, %v5851_v26  ;;  %v5853_v16 = vpop.f32.mrb[63].mxu0  ;;  %6220 = vmatmul.mubr.f32.gmra.mrb[140].mxu1 %v17600_v21 }
 0x432   : > { %v17616_v33 = vmax.f32 %v5841_v62, %v5853_v16  ;;  %14766 = vmatpush1.bf16.msra.mxu1 %v14765_v28 }
 0x433   : > { %14767 = vmatprep.subr.bf16.mxu1 %v15744_v11 }
 0x434   : > { %v5857_v23 = vpop.f32.mrb[64].mxu0  ;;  %12308 = vmatprep.mubr.msk.f32.mxu1 %vm6076_vm1, %v17616_v33 }
 0x435   : > { %v5859_v32 = vpop.f32.mrb[65].mxu0  ;;  %6225 = vmatmul.mubr.f32.gmra.mrb[142].mxu1 %v17613_v31 }
 0x436   : > { %14769 = vmatpush1.bf16.msra.mxu1 %v14768_v14 }
 0x438   : > { %v5863_v36 = vpop.f32.mrb[66].mxu0 }
 0x439   : > { %v5865_v29 = vpop.f32.mrb[67].mxu0 }
 0x43c   : > { %v5869_v37 = vpop.f32.mrb[68].mxu0 }
 0x43d   : > { %v17622_v38 = vmax.f32 %v5857_v23, %v5869_v37  ;;  %v5871_v44 = vpop.f32.mrb[69].mxu0 }
 0x43e   : > { %v17624_v40 = vmax.f32 %v5859_v32, %v5871_v44 }
 0x440   : > { %v5875_v46 = vpop.f32.mrb[70].mxu0  ;;  %12309 = vmatprep.mubr.msk.f32.mxu1 %vm6076_vm1, %v17624_v40 }
 0x441   : > { %v17628_v41 = vmax.f32 %v5863_v36, %v5875_v46  ;;  %v5877_v47 = vpop.f32.mrb[71].mxu0  ;;  %6230 = vmatmul.mubr.f32.gmra.mrb[144].mxu1 %v17622_v38 }
 0x442   : > { %v17631_v2 = vmax.f32 %v5865_v29, %v5877_v47 }
 0x444   : > { %v5881_v0 = vpop.f32.mrb[72].mxu0  ;;  %12310 = vmatprep.mubr.msk.f32.mxu1 %vm6076_vm1, %v17631_v2 }
 0x445   : > { %v5883_v48 = vpop.f32.mrb[73].mxu0  ;;  %6235 = vmatmul.mubr.f32.gmra.mrb[146].mxu1 %v17628_v41 }
 0x448   : > { %v5887_v7 = vpop.f32.mrb[74].mxu0 }
 0x449   : > { %v5889_v51 = vpop.f32.mrb[75].mxu0 }
 0x44c   : > { %v5893_v10 = vpop.f32.mrb[76].mxu0 }
 0x44d   : > { %v17636_v15 = vmax.f32 %v5881_v0, %v5893_v10  ;;  %v5895_v12 = vpop.f32.mrb[77].mxu0 }
 0x44e   : > { %v6037_v9 = vmax.f32 %v5883_v48, %v5895_v12 }
 0x450   : > { %v5899_v57 = vpop.f32.mrb[78].mxu0  ;;  %12311 = vmatprep.mubr.msk.f32.mxu1 %vm6076_vm1, %v6037_v9 }
 0x451   : > { %v6038_v61 = vmax.f32 %v5887_v7, %v5899_v57  ;;  %v5901_v42 = vpop.f32.mrb[79].mxu0  ;;  %6240 = vmatmul.mubr.f32.gmra.mrb[148].mxu1 %v17636_v15 }
 0x452   : > { %v6039_v52 = vmax.f32 %v5889_v51, %v5901_v42 }
 0x454   : > { %v5905_v6 = vpop.f32.mrb[80].mxu0  ;;  %12312 = vmatprep.mubr.msk.f32.mxu1 %vm6076_vm1, %v6039_v52 }
 0x455   : > { %v5907_v49 = vpop.f32.mrb[81].mxu0  ;;  %6245 = vmatmul.mubr.f32.gmra.mrb[150].mxu1 %v6038_v61 }
 0x458   : > { %v5911_v45 = vpop.f32.mrb[82].mxu0 }
 0x459   : > { %v5913_v53 = vpop.f32.mrb[83].mxu0 }
 0x45c   : > { %v5917_v54 = vpop.f32.mrb[84].mxu0 }
 0x45d   : > { %v6040_v59 = vmax.f32 %v5905_v6, %v5917_v54  ;;  %v5919_v27 = vpop.f32.mrb[85].mxu0 }
 0x45e   : > { %v6041_v56 = vmax.f32 %v5907_v49, %v5919_v27 }
 0x460   : > { %v5923_v50 = vpop.f32.mrb[86].mxu0  ;;  %12313 = vmatprep.mubr.msk.f32.mxu1 %vm6076_vm1, %v6041_v56 }
 0x461   : > { %v6042_v1 = vmax.f32 %v5911_v45, %v5923_v50  ;;  %v5925_v62 = vpop.f32.mrb[87].mxu0  ;;  %6250 = vmatmul.mubr.f32.gmra.mrb[152].mxu1 %v6040_v59 }
 0x462   : > { %v6043_v18 = vmax.f32 %v5913_v53, %v5925_v62 }
 0x464   : > { %v5929_v60 = vpop.f32.mrb[88].mxu0  ;;  %12314 = vmatprep.mubr.msk.f32.mxu1 %vm6076_vm1, %v6043_v18 }
 0x465   : > { %v5931_v24 = vpop.f32.mrb[89].mxu0  ;;  %6255 = vmatmul.mubr.f32.gmra.mrb[154].mxu1 %v6042_v1 }
 0x468   : > { %v5935_v63 = vpop.f32.mrb[90].mxu0 }
 0x469   : > { %v5937_v3 = vpop.f32.mrb[91].mxu0 }
 0x46c   : > { %v5941_v28 = vpop.f32.mrb[92].mxu0 }
 0x46d   : > { %v6044_v8 = vmax.f32 %v5929_v60, %v5941_v28  ;;  %v5943_v34 = vpop.f32.mrb[93].mxu0  ;;  %v17740_v28 = vld [vmem:[%s19358_s6 + $0x38] sm:$0xff] }
 0x46e   : > { %v6045_v26 = vmax.f32 %v5931_v24, %v5943_v34 }
 0x470   : > { %v5947_v16 = vpop.f32.mrb[94].mxu0  ;;  %12315 = vmatprep.mubr.msk.f32.mxu1 %vm6076_vm1, %v6045_v26 }
 0x471   : > { %v6046_v14 = vmax.f32 %v5935_v63, %v5947_v16  ;;  %v5949_v23 = vpop.f32.mrb[95].mxu0  ;;  %6260 = vmatmul.mubr.f32.gmra.mrb[156].mxu1 %v6044_v8 }
 0x472   : > { %v6047_v32 = vmax.f32 %v5937_v3, %v5949_v23  ;;  %v17735_v3 = vld [vmem:[%s19358_s6 + $0x8] sm:$0xff] }
 0x474   : > { %12316 = vmatprep.mubr.msk.f32.mxu1 %vm6076_vm1, %v6047_v32 }
 0x475   : > { %6265 = vmatmul.mubr.f32.gmra.mrb[158].mxu1 %v6046_v14 }
 0x476   : > { %12345 = vmatprep.mubr.msk.f32.mxu1 %vm6076_vm1, %v17477_v19 }
 0x479   : > { %6364 = vmatmul.mubr.f32.vlgmr.msra.gmra.mrb[160].mxu1 %v17475_v55 }
 0x47a   : > { %12346 = vmatprep.mubr.msk.f32.mxu1 %vm6076_vm1, %v17490_v17 }
 0x47d   : > { %6369 = vmatmul.mubr.f32.gmra.mrb[162].mxu1 %v17487_v25 }
 0x47e   : > { %12347 = vmatprep.mubr.msk.f32.mxu1 %vm6076_vm1, %v17518_v22  ;;  %v17690_v22 = vld [vmem:[%s19358_s6 + $0x30] sm:$0xff] }
 0x47f   : > { %14033 = vmatprep.mubr.msk.f32.mxu0 %vm6501_vm2, %v17690_v22 }
 0x481   : > { %6374 = vmatmul.mubr.f32.gmra.mrb[164].mxu1 %v17516_v30  ;;  %v17685_v30 = vld [vmem:[%s19358_s6] sm:$0xff] }
 0x482   : > { %12348 = vmatprep.mubr.msk.f32.mxu1 %vm6076_vm1, %v17532_v39 }
 0x485   : > { %6379 = vmatmul.mubr.f32.gmra.mrb[166].mxu1 %v17529_v35 }
 0x486   : > { %12349 = vmatprep.mubr.msk.f32.mxu1 %vm6076_vm1, %v17560_v58 }
 0x489   : > { %6384 = vmatmul.mubr.f32.gmra.mrb[168].mxu1 %v17558_v13 }
 0x48a   : > { %12350 = vmatprep.mubr.msk.f32.mxu1 %vm6076_vm1, %v17574_v43 }
 0x48d   : > { %6389 = vmatmul.mubr.f32.gmra.mrb[170].mxu1 %v17571_v4 }
 0x48e   : > { %12351 = vmatprep.mubr.msk.f32.mxu1 %vm6076_vm1, %v17602_v20 }
 0x491   : > { %6394 = vmatmul.mubr.f32.gmra.mrb[172].mxu1 %v17600_v21 }
 0x492   : > { %12352 = vmatprep.mubr.msk.f32.mxu1 %vm6076_vm1, %v17616_v33 }
 0x495   : > { %6399 = vmatmul.mubr.f32.gmra.mrb[174].mxu1 %v17613_v31 }
 0x496   : > { %12353 = vmatprep.mubr.msk.f32.mxu1 %vm6076_vm1, %v17624_v40 }
 0x499   : > { %6404 = vmatmul.mubr.f32.gmra.mrb[176].mxu1 %v17622_v38 }
 0x49a   : > { %12354 = vmatprep.mubr.msk.f32.mxu1 %vm6076_vm1, %v17631_v2 }
 0x49d   : > { %6409 = vmatmul.mubr.f32.gmra.mrb[178].mxu1 %v17628_v41 }
 0x49e   : > { %12355 = vmatprep.mubr.msk.f32.mxu1 %vm6076_vm1, %v6037_v9 }
 0x4a1   : > { %6414 = vmatmul.mubr.f32.gmra.mrb[180].mxu1 %v17636_v15 }
 0x4a2   : > { %12356 = vmatprep.mubr.msk.f32.mxu1 %vm6076_vm1, %v6039_v52  ;;  %v17721_v52 = vld [vmem:[%s19356_s4] ss:$0 sm:$0xff] }
 0x4a5   : > { %6419 = vmatmul.mubr.f32.gmra.mrb[182].mxu1 %v6038_v61 }
 0x4a6   : > { %12357 = vmatprep.mubr.msk.f32.mxu1 %vm6076_vm1, %v6041_v56 }
 0x4a9   : > { %6424 = vmatmul.mubr.f32.gmra.mrb[184].mxu1 %v6040_v59 }
 0x4aa   : > { %12358 = vmatprep.mubr.msk.f32.mxu1 %vm6076_vm1, %v6043_v18 }
 0x4ad   : > { %6429 = vmatmul.mubr.f32.gmra.mrb[186].mxu1 %v6042_v1 }
 0x4ae   : > { %12359 = vmatprep.mubr.msk.f32.mxu1 %vm6076_vm1, %v6045_v26 }
 0x4b1   : > { %6434 = vmatmul.mubr.f32.gmra.mrb[188].mxu1 %v6044_v8 }
 0x4b2   : > { %12360 = vmatprep.mubr.msk.f32.mxu1 %vm6076_vm1, %v6047_v32 }
 0x4b5   : > { %6439 = vmatmul.mubr.f32.gmra.mrb[190].mxu1 %v6046_v14 }
 0x4b6   : > { %13865 = vmatprep.mubr.msk.f32.mxu1 %vm6501_vm2, %v17685_v30 }
 0x4d4   : > { %v6191_v55 = vpop.f32.mrb[128].mxu1 }
 0x4d5   : > { %v6193_v19 = vpop.f32.mrb[129].mxu1 }
 0x4d8   : > { %v6196_v25 = vpop.f32.mrb[130].mxu1 }
 0x4d9   : > { %v6198_v17 = vpop.f32.mrb[131].mxu1 }
 0x4e4   : > { %v6201_v35 = vpop.f32.mrb[132].mxu1 }
 0x4e5   : > { %v6203_v39 = vpop.f32.mrb[133].mxu1 }
 0x4e8   : > { %v6206_v13 = vpop.f32.mrb[134].mxu1 }
 0x4e9   : > { %v6208_v58 = vpop.f32.mrb[135].mxu1 }
 0x4f4   : > { %v6211_v4 = vpop.f32.mrb[136].mxu1 }
 0x4f5   : > { %v6213_v43 = vpop.f32.mrb[137].mxu1 }
 0x4f8   : > { %v17696_v21 = vpop.f32.mrb[138].mxu1 }
 0x4f9   : > { %v6218_v20 = vpop.f32.mrb[139].mxu1 }
 0x504   : > { %v17698_v31 = vpop.f32.mrb[140].mxu1 }
 0x505   : > { %v6223_v33 = vpop.f32.mrb[141].mxu1 }
 0x508   : > { %v17700_v36 = vpop.f32.mrb[142].mxu1 }
 0x509   : > { %v6228_v29 = vpop.f32.mrb[143].mxu1 }
 0x514   : > { %v17702_v37 = vpop.f32.mrb[144].mxu1 }
 0x515   : > { %v6233_v38 = vpop.f32.mrb[145].mxu1 }
 0x518   : > { %v17704_v44 = vpop.f32.mrb[146].mxu1 }
 0x519   : > { %v6238_v40 = vpop.f32.mrb[147].mxu1 }
 0x524   : > { %v17706_v46 = vpop.f32.mrb[148].mxu1 }
 0x525   : > { %v6243_v41 = vpop.f32.mrb[149].mxu1 }
 0x528   : > { %v17708_v47 = vpop.f32.mrb[150].mxu1 }
 0x529   : > { %v6248_v2 = vpop.f32.mrb[151].mxu1 }
 0x534   : > { %v17710_v0 = vpop.f32.mrb[152].mxu1 }
 0x535   : > { %v6253_v48 = vpop.f32.mrb[153].mxu1 }
 0x538   : > { %v17712_v7 = vpop.f32.mrb[154].mxu1 }
 0x539   : > { %v6258_v51 = vpop.f32.mrb[155].mxu1 }
 0x544   : > { %v17714_v10 = vpop.f32.mrb[156].mxu1 }
 0x545   : > { %v6263_v15 = vpop.f32.mrb[157].mxu1 }
 0x548   : > { %v17716_v12 = vpop.f32.mrb[158].mxu1 }
 0x549   : > { %v6268_v9 = vpop.f32.mrb[159].mxu1 }
 0x54c   : > { %v6365_v57 = vpop.f32.mrb[160].mxu1 }
 0x54d   : > { %v6444_v61 = vmax.f32 %v6191_v55, %v6365_v57  ;;  %v6367_v42 = vpop.f32.mrb[161].mxu1 }
 0x54f   : > { %v6467_v49 = vadd.f32 %v17721_v52, %v6444_v61 }
 0x550   : > { %v6370_v6 = vpop.f32.mrb[162].mxu1 }
 0x551   : > { %v6445_v45 = vmax.f32 %v6196_v25, %v6370_v6  ;;  %v6372_v53 = vpop.f32.mrb[163].mxu1  ;;  %v6483_v27 = vmax.f32 %v6467_v49, 0.0 }
 0x553   : > { %v6468_v54 = vadd.f32 %v17721_v52, %v6445_v45 }
 0x554   : > { %v6375_v59 = vpop.f32.mrb[164].mxu1 }
 0x555   : > { %v6484_v56 = vmax.f32 %v6468_v54, 0.0  ;;  %v6446_v50 = vmax.f32 %v6201_v35, %v6375_v59  ;;  %v6377_v1 = vpop.f32.mrb[165].mxu1 }
 0x557   : > { %v17725_v62 = vpack.c.bf16 %v6484_v56, %v6483_v27  ;;  %v6469_v60 = vadd.f32 %v17721_v52, %v6446_v50 }
 0x558   : > { %v6380_v18 = vpop.f32.mrb[166].mxu1 }
 0x559   : > { %v6447_v24 = vmax.f32 %v6206_v13, %v6380_v18  ;;  %v6382_v63 = vpop.f32.mrb[167].mxu1  ;;  %14771 = vmatprep.subr.bf16.mxu1 %v17725_v62  ;;  %14951 = vmatprep.subr.bf16.mxu0 %v17725_v62  ;;  %v6485_v26 = vmax.f32 %v6469_v60, 0.0 }
 0x55a   : > { %14773 = vmatpush3.bf16.msra.mxu1 %v17725_v62  ;;  %14953 = vmatpush3.bf16.msra.mxu0 %v17725_v62 }
 0x55b   : > { %v6470_v8 = vadd.f32 %v17721_v52, %v6447_v24 }
 0x55c   : > { %v6385_v34 = vpop.f32.mrb[168].mxu1 }
 0x55d   : > { %v6486_v16 = vmax.f32 %v6470_v8, 0.0  ;;  %v6448_v14 = vmax.f32 %v6211_v4, %v6385_v34  ;;  %v6387_v23 = vpop.f32.mrb[169].mxu1  ;;  %13866 = vmatmul.mubr.msk.f32.vlgmr.msra.gmra.mrb[192].mxu1 %vm6501_vm2, %v17735_v3  ;;  %14034 = vmatmul.mubr.msk.f32.vlgmr.msra.gmra.mrb[96].mxu0 %vm6501_vm2, %v17740_v28 }
 0x55e   : > { %13872 = vmatprep.mubr.msk.f32.mxu1 %vm6501_vm2, %v17685_v30  ;;  %14040 = vmatprep.mubr.msk.f32.mxu0 %vm6501_vm2, %v17690_v22 }
 0x55f   : > { %v17751_v32 = vpack.c.bf16 %v6486_v16, %v6485_v26  ;;  %v6471_v19 = vadd.f32 %v17721_v52, %v6448_v14 }
 0x560   : > { %v6390_v55 = vpop.f32.mrb[170].mxu1 }
 0x561   : > { %v6449_v25 = vmax.f32 %v17696_v21, %v6390_v55  ;;  %v6392_v17 = vpop.f32.mrb[171].mxu1  ;;  %14775 = vmatprep.subr.bf16.mxu1 %v17751_v32  ;;  %14955 = vmatprep.subr.bf16.mxu0 %v17751_v32  ;;  %v6487_v13 = vmax.f32 %v6471_v19, 0.0 }
 0x562   : > { %14777 = vmatpush3.bf16.msra.mxu1 %v17751_v32  ;;  %14957 = vmatpush3.bf16.msra.mxu0 %v17751_v32 }
 0x563   : > { %v6472_v35 = vadd.f32 %v17721_v52, %v6449_v25 }
 0x564   : > { %v6395_v39 = vpop.f32.mrb[172].mxu1 }
 0x565   : > { %v6488_v58 = vmax.f32 %v6472_v35, 0.0  ;;  %v6450_v4 = vmax.f32 %v17698_v31, %v6395_v39  ;;  %v6397_v43 = vpop.f32.mrb[173].mxu1  ;;  %13873 = vmatmul.mubr.msk.f32.vlgmr.msra.gmra.mrb[194].mxu1 %vm6501_vm2, %v17735_v3  ;;  %14041 = vmatmul.mubr.msk.f32.vlgmr.msra.gmra.mrb[98].mxu0 %vm6501_vm2, %v17740_v28 }
 0x566   : > { %13879 = vmatprep.mubr.msk.f32.mxu1 %vm6501_vm2, %v17685_v30  ;;  %14047 = vmatprep.mubr.msk.f32.mxu0 %vm6501_vm2, %v17690_v22 }
 0x567   : > { %v17769_v21 = vpack.c.bf16 %v6488_v58, %v6487_v13  ;;  %v6473_v33 = vadd.f32 %v17721_v52, %v6450_v4  ;;  %v12399_v4 = vld [vmem:[%s19357_s5 + $0xf8] sm:$0xff] }
 0x568   : > { %v6400_v20 = vpop.f32.mrb[174].mxu1 }
 0x569   : > { %v6451_v31 = vmax.f32 %v17700_v36, %v6400_v20  ;;  %v6402_v29 = vpop.f32.mrb[175].mxu1  ;;  %14779 = vmatprep.subr.bf16.mxu1 %v17769_v21  ;;  %14959 = vmatprep.subr.bf16.mxu0 %v17769_v21  ;;  %v6489_v41 = vmax.f32 %v6473_v33, 0.0  ;;  %v12396_v20 = vld [vmem:[%s19357_s5 + $0xe0] sm:$0xff]  ;;  %v12398_v33 = vld [vmem:[%s19357_s5 + $0xf0] sm:$0xff] }
 0x56a   : > { %14781 = vmatpush3.bf16.msra.mxu1 %v17769_v21  ;;  %14961 = vmatpush3.bf16.msra.mxu0 %v17769_v21  ;;  %v12403_v29 = vld [vmem:[%s19357_s5 + $0x118] sm:$0xff] }
 0x56b   : > { %v6474_v38 = vadd.f32 %v17721_v52, %v6451_v31  ;;  %v12401_v31 = vld [vmem:[%s19357_s5 + $0x108] sm:$0xff] }
 0x56c   : > { %v6405_v40 = vpop.f32.mrb[176].mxu1 }
 0x56d   : > { %v6490_v2 = vmax.f32 %v6474_v38, 0.0  ;;  %v6452_v48 = vmax.f32 %v17702_v37, %v6405_v40  ;;  %v6407_v51 = vpop.f32.mrb[177].mxu1  ;;  %13880 = vmatmul.mubr.msk.f32.vlgmr.msra.gmra.mrb[196].mxu1 %vm6501_vm2, %v17735_v3  ;;  %14048 = vmatmul.mubr.msk.f32.vlgmr.msra.gmra.mrb[100].mxu0 %vm6501_vm2, %v17740_v28  ;;  %v14836_v38 = vpack.c.bf16 %v12398_v33, %v12396_v20  ;;  %v14838_v40 = vpack.c.bf16 %v12403_v29, %v12401_v31  ;;  %v7108_v29 = vld [vmem:[%s19357_s5] sm:$0xff] }
 0x56e   : > { %13886 = vmatprep.mubr.msk.f32.mxu1 %vm6501_vm2, %v17685_v30  ;;  %14054 = vmatprep.mubr.msk.f32.mxu0 %vm6501_vm2, %v17690_v22  ;;  %v12407_v51 = vld [vmem:[%s19357_s5 + $0x138] sm:$0xff] }
 0x56f   : > { %v17787_v36 = vpack.c.bf16 %v6490_v2, %v6489_v41  ;;  %v6475_v9 = vadd.f32 %v17721_v52, %v6452_v48  ;;  %v12400_v41 = vld [vmem:[%s19357_s5 + $0x100] sm:$0xff]  ;;  %v12402_v2 = vld [vmem:[%s19357_s5 + $0x110] sm:$0xff]  ;;  %v12405_v48 = vld [vmem:[%s19357_s5 + $0x128] sm:$0xff] }
 0x570   : > { %v6410_v15 = vpop.f32.mrb[178].mxu1 }
 0x571   : > { %v6453_v37 = vmax.f32 %v17704_v44, %v6410_v15  ;;  %v6412_v57 = vpop.f32.mrb[179].mxu1  ;;  %14783 = vmatprep.subr.bf16.mxu1 %v17787_v36  ;;  %14963 = vmatprep.subr.bf16.mxu0 %v17787_v36  ;;  %v6491_v6 = vmax.f32 %v6475_v9, 0.0  ;;  %v14840_v15 = vpack.c.bf16 %v12402_v2, %v12400_v41  ;;  %v14842_v9 = vpack.c.bf16 %v12407_v51, %v12405_v48  ;;  %v7113_v41 = vld [vmem:[%s19357_s5 + $0x28] sm:$0xff]  ;;  %v7115_v2 = vld [vmem:[%s19357_s5 + $0x38] sm:$0xff] }
 0x572   : > { %14785 = vmatpush3.bf16.msra.mxu1 %v17787_v36  ;;  %14965 = vmatpush3.bf16.msra.mxu0 %v17787_v36  ;;  %v12406_v57 = vld [vmem:[%s19357_s5 + $0x130] sm:$0xff] }
 0x573   : > { %v6476_v61 = vadd.f32 %v17721_v52, %v6453_v37  ;;  %v12404_v37 = vld [vmem:[%s19357_s5 + $0x120] sm:$0xff] }
 0x574   : > { %v6415_v42 = vpop.f32.mrb[180].mxu1 }
 0x575   : > { %v6492_v49 = vmax.f32 %v6476_v61, 0.0  ;;  %v6454_v45 = vmax.f32 %v17706_v46, %v6415_v42  ;;  %v6417_v53 = vpop.f32.mrb[181].mxu1  ;;  %13887 = vmatmul.mubr.msk.f32.vlgmr.msra.gmra.mrb[198].mxu1 %vm6501_vm2, %v17735_v3  ;;  %14055 = vmatmul.mubr.msk.f32.vlgmr.msra.gmra.mrb[102].mxu0 %vm6501_vm2, %v17740_v28  ;;  %v12409_v61 = vld [vmem:[%s19357_s5 + $0x148] sm:$0xff]  ;;  %v12411_v42 = vld [vmem:[%s19357_s5 + $0x158] sm:$0xff] }
 0x576   : > { %13893 = vmatprep.mubr.msk.f32.mxu1 %vm6501_vm2, %v17685_v30  ;;  %14061 = vmatprep.mubr.msk.f32.mxu0 %vm6501_vm2, %v17690_v22  ;;  %v12410_v53 = vld [vmem:[%s19357_s5 + $0x150] sm:$0xff] }
 0x577   : > { %v17805_v44 = vpack.c.bf16 %v6492_v49, %v6491_v6  ;;  %v6477_v59 = vadd.f32 %v17721_v52, %v6454_v45  ;;  %v14844_v6 = vpack.c.bf16 %v12406_v57, %v12404_v37  ;;  %v14846_v49 = vpack.c.bf16 %v12411_v42, %v12409_v61  ;;  %v12408_v45 = vld [vmem:[%s19357_s5 + $0x140] sm:$0xff]  ;;  %v7114_v37 = vld [vmem:[%s19357_s5 + $0x30] sm:$0xff]  ;;  %v7117_v61 = vld [vmem:[%s19357_s5 + $0x48] sm:$0xff] }
 0x578   : > { %v6420_v54 = vpop.f32.mrb[182].mxu1  ;;  %v7119_v42 = vld [vmem:[%s19357_s5 + $0x58] sm:$0xff] }
 0x579   : > { %v6455_v46 = vmax.f32 %v17708_v47, %v6420_v54  ;;  %v6422_v27 = vpop.f32.mrb[183].mxu1  ;;  %14787 = vmatprep.subr.bf16.mxu1 %v17805_v44  ;;  %14967 = vmatprep.subr.bf16.mxu0 %v17805_v44  ;;  %v6493_v1 = vmax.f32 %v6477_v59, 0.0  ;;  %v14848_v54 = vpack.c.bf16 %v12410_v53, %v12408_v45  ;;  %v12413_v59 = vld [vmem:[%s19357_s5 + $0x168] sm:$0xff]  ;;  %v14870_v45 = vpack.c.bf16 %v7119_v42, %v7117_v61  ;;  %v7116_v53 = vld [vmem:[%s19357_s5 + $0x40] sm:$0xff] }
 0x57a   : > { %14789 = vmatpush3.bf16.msra.mxu1 %v17805_v44  ;;  %14969 = vmatpush3.bf16.msra.mxu0 %v17805_v44 }
 0x57b   : > { %v6478_v56 = vadd.f32 %v17721_v52, %v6455_v46  ;;  %v12415_v46 = vld [vmem:[%s19357_s5 + $0x178] sm:$0xff] }
 0x57c   : > { %v6425_v50 = vpop.f32.mrb[184].mxu1  ;;  %v14850_v27 = vpack.c.bf16 %v12415_v46, %v12413_v59  ;;  %v7121_v46 = vld [vmem:[%s19357_s5 + $0x68] sm:$0xff] }
 0x57d   : > { %v6494_v18 = vmax.f32 %v6478_v56, 0.0  ;;  %v6456_v60 = vmax.f32 %v17710_v0, %v6425_v50  ;;  %v6427_v24 = vpop.f32.mrb[185].mxu1  ;;  %13894 = vmatmul.mubr.msk.f32.vlgmr.msra.gmra.mrb[200].mxu1 %vm6501_vm2, %v17735_v3  ;;  %14062 = vmatmul.mubr.msk.f32.vlgmr.msra.gmra.mrb[104].mxu0 %vm6501_vm2, %v17740_v28  ;;  %v12412_v56 = vld [vmem:[%s19357_s5 + $0x160] sm:$0xff]  ;;  %v12414_v50 = vld [vmem:[%s19357_s5 + $0x170] sm:$0xff] }
 0x57e   : > { %13900 = vmatprep.mubr.msk.f32.mxu1 %vm6501_vm2, %v17685_v30  ;;  %14068 = vmatprep.mubr.msk.f32.mxu0 %vm6501_vm2, %v17690_v22 }
 0x57f   : > { %v17823_v47 = vpack.c.bf16 %v6494_v18, %v6493_v1  ;;  %v6479_v8 = vadd.f32 %v17721_v52, %v6456_v60  ;;  %v14852_v1 = vpack.c.bf16 %v12414_v50, %v12412_v56  ;;  %v12417_v18 = vld [vmem:[%s19357_s5 + $0x188] sm:$0xff]  ;;  %v12419_v60 = vld [vmem:[%s19357_s5 + $0x198] sm:$0xff] }
 0x580   : > { %v6430_v63 = vpop.f32.mrb[186].mxu1  ;;  %v14854_v24 = vpack.c.bf16 %v12419_v60, %v12417_v18  ;;  %v7122_v18 = vld [vmem:[%s19357_s5 + $0x70] sm:$0xff] }
 0x581   : > { %v6457_v0 = vmax.f32 %v17712_v7, %v6430_v63  ;;  %v6432_v34 = vpop.f32.mrb[187].mxu1  ;;  %14791 = vmatprep.subr.bf16.mxu1 %v17823_v47  ;;  %14971 = vmatprep.subr.bf16.mxu0 %v17823_v47  ;;  %v6495_v14 = vmax.f32 %v6479_v8, 0.0  ;;  %v12416_v63 = vld [vmem:[%s19357_s5 + $0x180] sm:$0xff]  ;;  %v12418_v8 = vld [vmem:[%s19357_s5 + $0x190] sm:$0xff] }
 0x582   : > { %14793 = vmatpush3.bf16.msra.mxu1 %v17823_v47  ;;  %14973 = vmatpush3.bf16.msra.mxu0 %v17823_v47  ;;  %v12421_v34 = vld [vmem:[%s19357_s5 + $0x1a8] sm:$0xff] }
 0x583   : > { %v6480_v26 = vadd.f32 %v17721_v52, %v6457_v0  ;;  %v14856_v0 = vpack.c.bf16 %v12418_v8, %v12416_v63  ;;  %v7125_v63 = vld [vmem:[%s19357_s5 + $0x88] sm:$0xff]  ;;  %v7127_v8 = vld [vmem:[%s19357_s5 + $0x98] sm:$0xff] }
 0x584   : > { %v6435_v16 = vpop.f32.mrb[188].mxu1 }
 0x585   : > { %v6496_v23 = vmax.f32 %v6480_v26, 0.0  ;;  %v6458_v55 = vmax.f32 %v17714_v10, %v6435_v16  ;;  %v6437_v19 = vpop.f32.mrb[189].mxu1  ;;  %13901 = vmatmul.mubr.msk.f32.vlgmr.msra.gmra.mrb[202].mxu1 %vm6501_vm2, %v17735_v3  ;;  %14069 = vmatmul.mubr.msk.f32.vlgmr.msra.gmra.mrb[106].mxu0 %vm6501_vm2, %v17740_v28  ;;  %v12423_v26 = vld [vmem:[%s19357_s5 + $0x1b8] sm:$0xff] }
 0x586   : > { %13907 = vmatprep.mubr.msk.f32.mxu1 %vm6501_vm2, %v17685_v30  ;;  %14075 = vmatprep.mubr.msk.f32.mxu0 %vm6501_vm2, %v17690_v22  ;;  %v14858_v16 = vpack.c.bf16 %v12423_v26, %v12421_v34  ;;  %v7109_v19 = vld [vmem:[%s19357_s5 + $0x8] sm:$0xff]  ;;  %v14878_v34 = vpack.c.bf16 %v7127_v8, %v7125_v63  ;;  %v7124_v26 = vld [vmem:[%s19357_s5 + $0x80] sm:$0xff] }
 0x587   : > { %v17841_v7 = vpack.c.bf16 %v6496_v23, %v6495_v14  ;;  %v6481_v17 = vadd.f32 %v17721_v52, %v6458_v55  ;;  %v12420_v14 = vld [vmem:[%s19357_s5 + $0x1a0] sm:$0xff]  ;;  %v12422_v23 = vld [vmem:[%s19357_s5 + $0x1b0] sm:$0xff] }
 0x588   : > { %v6440_v25 = vpop.f32.mrb[190].mxu1  ;;  %v14860_v55 = vpack.c.bf16 %v12422_v23, %v12420_v14  ;;  %v7129_v23 = vld [vmem:[%s19357_s5 + $0xa8] sm:$0xff] }
 0x589   : > { %v6459_v10 = vmax.f32 %v17716_v12, %v6440_v25  ;;  %v6442_v35 = vpop.f32.mrb[191].mxu1  ;;  %14795 = vmatprep.subr.bf16.mxu1 %v17841_v7  ;;  %14975 = vmatprep.subr.bf16.mxu0 %v17841_v7  ;;  %v6497_v13 = vmax.f32 %v6481_v17, 0.0  ;;  %v7111_v25 = vld [vmem:[%s19357_s5 + $0x18] sm:$0xff] }
 0x58a   : > { %14797 = vmatpush3.bf16.msra.mxu1 %v17841_v7  ;;  %14977 = vmatpush3.bf16.msra.mxu0 %v17841_v7  ;;  %v14862_v17 = vpack.c.bf16 %v7111_v25, %v7109_v19 }
 0x58b   : > { %v6482_v39 = vadd.f32 %v17721_v52, %v6459_v10  ;;  %v17885_v52 = vld [vmem:[%s19358_s6 + $0x18] sm:$0xff] }
 0x58d   : > { %v6498_v58 = vmax.f32 %v6482_v39, 0.0  ;;  %13908 = vmatmul.mubr.msk.f32.vlgmr.msra.gmra.mrb[204].mxu1 %vm6501_vm2, %v17735_v3  ;;  %14076 = vmatmul.mubr.msk.f32.vlgmr.msra.gmra.mrb[108].mxu0 %vm6501_vm2, %v17740_v28 }
 0x58e   : > { %13914 = vmatprep.mubr.msk.f32.mxu1 %vm6501_vm2, %v17685_v30  ;;  %14082 = vmatprep.mubr.msk.f32.mxu0 %vm6501_vm2, %v17690_v22  ;;  %v17873_v30 = vld [vmem:[%s19358_s6 + $0x10] sm:$0xff]  ;;  %v17878_v22 = vld [vmem:[%s19358_s6 + $0x40] sm:$0xff] }
 0x58f   : > { %v17858_v12 = vpack.c.bf16 %v6498_v58, %v6497_v13 }
 0x591   : > { %14799 = vmatprep.subr.bf16.mxu1 %v17858_v12  ;;  %14979 = vmatprep.subr.bf16.mxu0 %v17858_v12 }
 0x592   : > { %14801 = vmatpush3.bf16.msra.mxu1 %v17858_v12  ;;  %14981 = vmatpush3.bf16.msra.mxu0 %v17858_v12 }
 0x593   : > { %14803 = vmatprep.subr.bf16.mxu1 %v17725_v62  ;;  %15011 = vmatprep.subr.bf16.mxu0 %v17725_v62 }
 0x595   : > { %13915 = vmatmul.mubr.msk.f32.vlgmr.msra.gmra.mrb[206].mxu1 %vm6501_vm2, %v17735_v3  ;;  %14083 = vmatmul.mubr.msk.f32.vlgmr.msra.gmra.mrb[110].mxu0 %vm6501_vm2, %v17740_v28  ;;  %v17890_v3 = vld [vmem:[%s19358_s6 + $0x48] sm:$0xff] }
 0x596   : > { %14805 = vmatpush3.bf16.msra.mxu1 %v17725_v62  ;;  %15013 = vmatpush3.bf16.msra.mxu0 %v17725_v62  ;;  %v12397_v28 = vld [vmem:[%s19357_s5 + $0xe8] sm:$0xff] }
 0x597   : > { %14807 = vmatprep.subr.bf16.mxu1 %v17751_v32  ;;  %15015 = vmatprep.subr.bf16.mxu0 %v17751_v32  ;;  %v14834_v43 = vpack.c.bf16 %v12399_v4, %v12397_v28 }
 0x598   : > { %13921 = vmatprep.mubr.msk.f32.mxu1 %vm6501_vm2, %v17873_v30  ;;  %14089 = vmatprep.mubr.msk.f32.mxu0 %vm6501_vm2, %v17878_v22 }
 0x599   : > { %13922 = vmatmul.mubr.msk.f32.vlgmr.msra.gmra.mrb[208].mxu1 %vm6501_vm2, %v17885_v52  ;;  %14090 = vmatmul.mubr.msk.f32.vlgmr.msra.gmra.mrb[112].mxu0 %vm6501_vm2, %v17890_v3 }
 0x59a   : > { %14809 = vmatpush3.bf16.msra.mxu1 %v17751_v32  ;;  %15017 = vmatpush3.bf16.msra.mxu0 %v17751_v32 }
 0x59b   : > { %14811 = vmatprep.subr.bf16.mxu1 %v17769_v21  ;;  %15019 = vmatprep.subr.bf16.mxu0 %v17769_v21 }
 0x59c   : > { %13928 = vmatprep.mubr.msk.f32.mxu1 %vm6501_vm2, %v17873_v30  ;;  %14096 = vmatprep.mubr.msk.f32.mxu0 %vm6501_vm2, %v17878_v22 }
 0x59d   : > { %13929 = vmatmul.mubr.msk.f32.vlgmr.msra.gmra.mrb[210].mxu1 %vm6501_vm2, %v17885_v52  ;;  %14097 = vmatmul.mubr.msk.f32.vlgmr.msra.gmra.mrb[114].mxu0 %vm6501_vm2, %v17890_v3 }
 0x59e   : > { %14813 = vmatpush3.bf16.msra.mxu1 %v17769_v21  ;;  %15021 = vmatpush3.bf16.msra.mxu0 %v17769_v21 }
 0x59f   : > { %14815 = vmatprep.subr.bf16.mxu1 %v17787_v36  ;;  %15023 = vmatprep.subr.bf16.mxu0 %v17787_v36 }
 0x5a0   : > { %13935 = vmatprep.mubr.msk.f32.mxu1 %vm6501_vm2, %v17873_v30  ;;  %14103 = vmatprep.mubr.msk.f32.mxu0 %vm6501_vm2, %v17878_v22 }
 0x5a1   : > { %13936 = vmatmul.mubr.msk.f32.vlgmr.msra.gmra.mrb[212].mxu1 %vm6501_vm2, %v17885_v52  ;;  %14104 = vmatmul.mubr.msk.f32.vlgmr.msra.gmra.mrb[116].mxu0 %vm6501_vm2, %v17890_v3 }
 0x5a2   : > { %14817 = vmatpush3.bf16.msra.mxu1 %v17787_v36  ;;  %15025 = vmatpush3.bf16.msra.mxu0 %v17787_v36 }
 0x5a3   : > { %14819 = vmatprep.subr.bf16.mxu1 %v17805_v44  ;;  %15027 = vmatprep.subr.bf16.mxu0 %v17805_v44 }
 0x5a4   : > { %13942 = vmatprep.mubr.msk.f32.mxu1 %vm6501_vm2, %v17873_v30  ;;  %14110 = vmatprep.mubr.msk.f32.mxu0 %vm6501_vm2, %v17878_v22 }
 0x5a5   : > { %13943 = vmatmul.mubr.msk.f32.vlgmr.msra.gmra.mrb[214].mxu1 %vm6501_vm2, %v17885_v52  ;;  %14111 = vmatmul.mubr.msk.f32.vlgmr.msra.gmra.mrb[118].mxu0 %vm6501_vm2, %v17890_v3 }
 0x5a6   : > { %14821 = vmatpush3.bf16.msra.mxu1 %v17805_v44  ;;  %15029 = vmatpush3.bf16.msra.mxu0 %v17805_v44 }
 0x5a7   : > { %14823 = vmatprep.subr.bf16.mxu1 %v17823_v47  ;;  %15031 = vmatprep.subr.bf16.mxu0 %v17823_v47 }
 0x5a8   : > { %13949 = vmatprep.mubr.msk.f32.mxu1 %vm6501_vm2, %v17873_v30  ;;  %14117 = vmatprep.mubr.msk.f32.mxu0 %vm6501_vm2, %v17878_v22 }
 0x5a9   : > { %13950 = vmatmul.mubr.msk.f32.vlgmr.msra.gmra.mrb[216].mxu1 %vm6501_vm2, %v17885_v52  ;;  %14118 = vmatmul.mubr.msk.f32.vlgmr.msra.gmra.mrb[120].mxu0 %vm6501_vm2, %v17890_v3 }
 0x5aa   : > { %14825 = vmatpush3.bf16.msra.mxu1 %v17823_v47  ;;  %15033 = vmatpush3.bf16.msra.mxu0 %v17823_v47 }
 0x5ab   : > { %14827 = vmatprep.subr.bf16.mxu1 %v17841_v7  ;;  %15035 = vmatprep.subr.bf16.mxu0 %v17841_v7 }
 0x5ac   : > { %13956 = vmatprep.mubr.msk.f32.mxu1 %vm6501_vm2, %v17873_v30  ;;  %14124 = vmatprep.mubr.msk.f32.mxu0 %vm6501_vm2, %v17878_v22 }
 0x5ad   : > { %13957 = vmatmul.mubr.msk.f32.vlgmr.msra.gmra.mrb[218].mxu1 %vm6501_vm2, %v17885_v52  ;;  %14125 = vmatmul.mubr.msk.f32.vlgmr.msra.gmra.mrb[122].mxu0 %vm6501_vm2, %v17890_v3 }
 0x5ae   : > { %14829 = vmatpush3.bf16.msra.mxu1 %v17841_v7  ;;  %15037 = vmatpush3.bf16.msra.mxu0 %v17841_v7 }
 0x5af   : > { %14831 = vmatprep.subr.bf16.mxu1 %v17858_v12  ;;  %15039 = vmatprep.subr.bf16.mxu0 %v17858_v12 }
 0x5b0   : > { %13963 = vmatprep.mubr.msk.f32.mxu1 %vm6501_vm2, %v17873_v30  ;;  %14131 = vmatprep.mubr.msk.f32.mxu0 %vm6501_vm2, %v17878_v22 }
 0x5b1   : > { %13964 = vmatmul.mubr.msk.f32.vlgmr.msra.gmra.mrb[220].mxu1 %vm6501_vm2, %v17885_v52  ;;  %14132 = vmatmul.mubr.msk.f32.vlgmr.msra.gmra.mrb[124].mxu0 %vm6501_vm2, %v17890_v3 }
 0x5b2   : > { %14833 = vmatpush3.bf16.msra.mxu1 %v17858_v12  ;;  %15041 = vmatpush3.bf16.msra.mxu0 %v17858_v12 }
 0x5b3   : > { %13970 = vmatprep.mubr.msk.f32.mxu1 %vm6501_vm2, %v17873_v30  ;;  %14835 = vmatprep.subr.bf16.mxu1 %v14834_v43 }
 0x5b4   : > { %14138 = vmatprep.mubr.msk.f32.mxu0 %vm6501_vm2, %v17878_v22  ;;  %15070 = vmatprep.subr.bf16.mxu0 %v15744_v11 }
 0x5b5   : > { %13971 = vmatmul.mubr.msk.f32.vlgmr.msra.gmra.mrb[222].mxu1 %vm6501_vm2, %v17885_v52  ;;  %14139 = vmatmul.mubr.msk.f32.vlgmr.msra.gmra.mrb[126].mxu0 %vm6501_vm2, %v17890_v3 }
 0x5b6   : > { %14837 = vmatpush1.bf16.msra.mxu1 %v14836_v38  ;;  %7887 = vmatprep.mubr.f32.mxu1 %v15743_v5  ;;  %v7110_v38 = vld [vmem:[%s19357_s5 + $0x10] sm:$0xff] }
 0x5b7   : > { %14839 = vmatprep.subr.bf16.mxu1 %v14838_v40  ;;  %v14864_v48 = vpack.c.bf16 %v7110_v38, %v7108_v29  ;;  %v7128_v29 = vld [vmem:[%s19357_s5 + $0xa0] sm:$0xff]  ;;  %v7130_v38 = vld [vmem:[%s19357_s5 + $0xb0] sm:$0xff] }
 0x5ba   : > { %14841 = vmatpush1.bf16.msra.mxu1 %v14840_v15  ;;  %v14866_v15 = vpack.c.bf16 %v7115_v2, %v7113_v41  ;;  %v7133_v2 = vld [vmem:[%s19357_s5 + $0xc8] sm:$0xff] }
 0x5bb   : > { %14843 = vmatprep.subr.bf16.mxu1 %v14842_v9  ;;  %v7112_v9 = vld [vmem:[%s19357_s5 + $0x20] sm:$0xff] }
 0x5be   : > { %14845 = vmatpush1.bf16.msra.mxu1 %v14844_v6  ;;  %v14868_v6 = vpack.c.bf16 %v7114_v37, %v7112_v9  ;;  %v7132_v37 = vld [vmem:[%s19357_s5 + $0xc0] sm:$0xff] }
 0x5bf   : > { %14847 = vmatprep.subr.bf16.mxu1 %v14846_v49 }
 0x5c2   : > { %14849 = vmatpush1.bf16.msra.mxu1 %v14848_v54  ;;  %v7118_v54 = vld [vmem:[%s19357_s5 + $0x50] sm:$0xff] }
 0x5c3   : > { %14851 = vmatprep.subr.bf16.mxu1 %v14850_v27  ;;  %v7123_v27 = vld [vmem:[%s19357_s5 + $0x78] sm:$0xff]  ;;  %v14872_v56 = vpack.c.bf16 %v7118_v54, %v7116_v53 }
 0x5c4   : > { %v14874_v50 = vpack.c.bf16 %v7123_v27, %v7121_v46  ;;  %v12491_v46 = vld [vmem:[%s19357_s5 + $0x248] sm:$0xff]  ;;  %v12493_v27 = vld [vmem:[%s19357_s5 + $0x258] sm:$0xff] }
 0x5c6   : > { %14853 = vmatpush1.bf16.msra.mxu1 %v14852_v1  ;;  %v7120_v1 = vld [vmem:[%s19357_s5 + $0x60] sm:$0xff] }
 0x5c7   : > { %14855 = vmatprep.subr.bf16.mxu1 %v14854_v24 }
 0x5ca   : > { %14857 = vmatpush1.bf16.msra.mxu1 %v14856_v0  ;;  %v14876_v0 = vpack.c.bf16 %v7122_v18, %v7120_v1  ;;  %v12490_v1 = vld [vmem:[%s19357_s5 + $0x240] sm:$0xff]  ;;  %v12492_v18 = vld [vmem:[%s19357_s5 + $0x250] sm:$0xff] }
 0x5cb   : > { %14859 = vmatprep.subr.bf16.mxu1 %v14858_v16  ;;  %v7126_v16 = vld [vmem:[%s19357_s5 + $0x90] sm:$0xff]  ;;  %v14940_v63 = vpack.c.bf16 %v12492_v18, %v12490_v1 }
 0x5cc   : > { %v14880_v25 = vpack.c.bf16 %v7126_v16, %v7124_v26  ;;  %v12499_v26 = vld [vmem:[%s19357_s5 + $0x288] sm:$0xff]  ;;  %v12501_v16 = vld [vmem:[%s19357_s5 + $0x298] sm:$0xff]  ;;  %v12550_v1 = vld [vmem:[%s19357_s5 + $0x310] sm:$0xff] }
 0x5ce   : > { %14861 = vmatpush1.bf16.msra.mxu1 %v14860_v55  ;;  %v7131_v55 = vld [vmem:[%s19357_s5 + $0xb8] sm:$0xff] }
 0x5cf   : > { %14863 = vmatprep.subr.bf16.mxu1 %v14862_v17  ;;  %v14882_v17 = vpack.c.bf16 %v7131_v55, %v7129_v23  ;;  %v14946_v23 = vpack.c.bf16 %v12501_v16, %v12499_v26  ;;  %v12498_v55 = vld [vmem:[%s19357_s5 + $0x280] sm:$0xff]  ;;  %v12554_v26 = vld [vmem:[%s19357_s5 + $0x330] sm:$0xff] }
 0x630   : > { %v18076_v10 = vpop.f32.mrb[192].mxu1 }
 0x631   : > { %v18078_v35 = vpop.f32.mrb[193].mxu1 }
 0x638   : > { %v18080_v39 = vpop.f32.mrb[194].mxu1 }
 0x639   : > { %v18082_v13 = vpop.f32.mrb[195].mxu1 }
 0x640   : > { %v18084_v58 = vpop.f32.mrb[196].mxu1 }
 0x641   : > { %v18086_v30 = vpop.f32.mrb[197].mxu1 }
 0x648   : > { %v18088_v22 = vpop.f32.mrb[198].mxu1 }
 0x649   : > { %v18090_v52 = vpop.f32.mrb[199].mxu1 }
 0x650   : > { %v18092_v3 = vpop.f32.mrb[200].mxu1 }
 0x651   : > { %v18094_v28 = vpop.f32.mrb[201].mxu1 }
 0x658   : > { %v18096_v4 = vpop.f32.mrb[202].mxu1 }
 0x659   : > { %v18098_v43 = vpop.f32.mrb[203].mxu1 }
 0x660   : > { %v18100_v20 = vpop.f32.mrb[204].mxu1 }
 0x661   : > { %v18102_v33 = vpop.f32.mrb[205].mxu1 }
 0x668   : > { %v18104_v31 = vpop.f32.mrb[206].mxu1 }
 0x669   : > { %v18112_v40 = vpop.f32.mrb[207].mxu1 }
 0x66c   : > { %v13923_v51 = vpop.f32.mrb[208].mxu1 }
 0x66d   : > { %v7211_v57 = vpop.f32.mrb[209].mxu1 }
 0x66e   : > { %12424 = vmatmul.mubr.msk.f32.vlgmr.msra.gmra.mrb[224].mxu1 %vm7774_vm3, %v7211_v57  ;;  %v7134_v57 = vld [vmem:[%s19357_s5 + $0xd0] sm:$0xff] }
 0x66f   : > { %14865 = vmatpush1.bf16.msra.mxu1 %v14864_v48  ;;  %7893 = vmatprep.mubr.f32.mxu1 %v15743_v5  ;;  %v7135_v48 = vld [vmem:[%s19357_s5 + $0xd8] sm:$0xff] }
 0x670   : > { %14867 = vmatprep.subr.bf16.mxu1 %v14866_v15  ;;  %v13930_v49 = vpop.f32.mrb[210].mxu1  ;;  %v14884_v15 = vpack.c.bf16 %v7130_v38, %v7128_v29  ;;  %v14886_v9 = vpack.c.bf16 %v7135_v48, %v7133_v2  ;;  %v12539_v29 = vld [vmem:[%s19357_s5 + $0x2b8] sm:$0xff] }
 0x671   : > { %v7286_v59 = vpop.f32.mrb[211].mxu1 }
 0x672   : > { %12425 = vmatmul.mubr.msk.f32.gmra.mrb[226].mxu1 %vm7774_vm3, %v13923_v51 }
 0x673   : > { %14869 = vmatpush1.bf16.msra.mxu1 %v14868_v6  ;;  %7899 = vmatprep.mubr.f32.mxu1 %v15743_v5  ;;  %v14888_v6 = vpack.c.bf16 %v7134_v57, %v7132_v37 }
 0x674   : > { %14871 = vmatprep.subr.bf16.mxu1 %v14870_v45  ;;  %v13937_v60 = vpop.f32.mrb[212].mxu1 }
 0x675   : > { %v7361_v24 = vpop.f32.mrb[213].mxu1 }
 0x676   : > { %12426 = vmatmul.mubr.msk.f32.gmra.mrb[228].mxu1 %vm7774_vm3, %v7286_v59  ;;  %v12488_v59 = vld [vmem:[%s19357_s5 + $0x230] sm:$0xff] }
 0x677   : > { %14873 = vmatpush1.bf16.msra.mxu1 %v14872_v56  ;;  %7905 = vmatprep.mubr.f32.mxu1 %v15743_v5 }
 0x678   : > { %14875 = vmatprep.subr.bf16.mxu1 %v14874_v50  ;;  %v13944_v14 = vpop.f32.mrb[214].mxu1  ;;  %v14938_v50 = vpack.c.bf16 %v12493_v27, %v12491_v46 }
 0x679   : > { %v7436_v19 = vpop.f32.mrb[215].mxu1 }
 0x67a   : > { %12427 = vmatmul.mubr.msk.f32.gmra.mrb[230].mxu1 %vm7774_vm3, %v13930_v49 }
 0x67b   : > { %14877 = vmatpush1.bf16.msra.mxu1 %v14876_v0  ;;  %7911 = vmatprep.mubr.f32.mxu1 %v15743_v5  ;;  %v12494_v0 = vld [vmem:[%s19357_s5 + $0x260] sm:$0xff] }
 0x67c   : > { %14879 = vmatprep.subr.bf16.mxu1 %v14878_v34  ;;  %v13951_v41 = vpop.f32.mrb[216].mxu1  ;;  %v12496_v34 = vld [vmem:[%s19357_s5 + $0x270] sm:$0xff] }
 0x67d   : > { %v7511_v51 = vpop.f32.mrb[217].mxu1 }
 0x67e   : > { %12428 = vmatmul.mubr.msk.f32.gmra.mrb[232].mxu1 %vm7774_vm3, %v7361_v24  ;;  %v12497_v24 = vld [vmem:[%s19357_s5 + $0x278] sm:$0xff] }
 0x67f   : > { %14881 = vmatpush1.bf16.msra.mxu1 %v14880_v25  ;;  %7917 = vmatprep.mubr.f32.mxu1 %v15743_v5 }
 0x680   : > { %14883 = vmatprep.subr.bf16.mxu1 %v14882_v17  ;;  %v13958_v61 = vpop.f32.mrb[218].mxu1  ;;  %v12537_v17 = vld [vmem:[%s19357_s5 + $0x2a8] sm:$0xff] }
 0x681   : > { %v7586_v42 = vpop.f32.mrb[219].mxu1  ;;  %v14982_v38 = vpack.c.bf16 %v12539_v29, %v12537_v17 }
 0x682   : > { %12429 = vmatmul.mubr.msk.f32.gmra.mrb[234].mxu1 %vm7774_vm3, %v13937_v60  ;;  %v12495_v60 = vld [vmem:[%s19357_s5 + $0x268] sm:$0xff] }
 0x683   : > { %14885 = vmatpush1.bf16.msra.mxu1 %v14884_v15  ;;  %7923 = vmatprep.mubr.f32.mxu1 %v15743_v5  ;;  %v14942_v8 = vpack.c.bf16 %v12497_v24, %v12495_v60  ;;  %v12553_v60 = vld [vmem:[%s19357_s5 + $0x328] sm:$0xff]  ;;  %v12555_v24 = vld [vmem:[%s19357_s5 + $0x338] sm:$0xff] }
 0x684   : > { %14887 = vmatprep.subr.bf16.mxu1 %v14886_v9  ;;  %v13965_v49 = vpop.f32.mrb[220].mxu1 }
 0x685   : > { %v7661_v45 = vpop.f32.mrb[221].mxu1 }
 0x686   : > { %12430 = vmatmul.mubr.msk.f32.gmra.mrb[236].mxu1 %vm7774_vm3, %v7436_v19  ;;  %v12500_v19 = vld [vmem:[%s19357_s5 + $0x290] sm:$0xff] }
 0x687   : > { %14889 = vmatpush1.bf16.msra.mxu1 %v14888_v6  ;;  %7929 = vmatprep.mubr.f32.mxu1 %v15743_v5  ;;  %v14948_v25 = vpack.c.bf16 %v12500_v19, %v12498_v55 }
 0x688   : > { %14891 = vmatprep.subr.bf16.mxu1 %v17725_v62  ;;  %v13972_v53 = vpop.f32.mrb[222].mxu1 }
 0x689   : > { %v7736_v54 = vpop.f32.mrb[223].mxu1 }
 0x68a   : > { %12431 = vmatmul.mubr.msk.f32.gmra.mrb[238].mxu1 %vm7774_vm3, %v13944_v14  ;;  %v14944_v14 = vpack.c.bf16 %v12496_v34, %v12494_v0  ;;  %v14998_v0 = vpack.c.bf16 %v12555_v24, %v12553_v60  ;;  %v12552_v34 = vld [vmem:[%s19357_s5 + $0x320] sm:$0xff] }
 0x68b   : > { %7935 = vmatprep.mubr.f32.mxu1 %v15743_v5  ;;  %v15000_v19 = vpack.c.bf16 %v12554_v26, %v12552_v34  ;;  %v12605_v34 = vld [vmem:[%s19357_s5 + $0x3b8] sm:$0xff]  ;;  %v10846_v26 = vld [vmem:[%s19359_s7] sm:$0xff] }
 0x68e   : > { %12432 = vmatmul.mubr.msk.f32.gmra.mrb[240].mxu1 %vm7774_vm3, %v7511_v51 }
 0x68f   : > { %7941 = vmatprep.mubr.f32.mxu1 %v15743_v5 }
 0x692   : > { %12433 = vmatmul.mubr.msk.f32.gmra.mrb[242].mxu1 %vm7774_vm3, %v13951_v41  ;;  %v18394_v41 = vpop.f32.mrb[96].mxu0 }
 0x693   : > { %7947 = vmatprep.mubr.f32.mxu1 %v15743_v5  ;;  %v18396_v2 = vpop.f32.mrb[97].mxu0 }
 0x694   : > { %v18398_v48 = vpop.f32.mrb[98].mxu0 }
 0x695   : > { %v18400_v51 = vpop.f32.mrb[99].mxu0 }
 0x696   : > { %12434 = vmatmul.mubr.msk.f32.gmra.mrb[244].mxu1 %vm7774_vm3, %v7586_v42  ;;  %v18402_v15 = vpop.f32.mrb[100].mxu0 }
 0x697   : > { %7953 = vmatprep.mubr.f32.mxu1 %v15743_v5  ;;  %v18404_v9 = vpop.f32.mrb[101].mxu0 }
 0x698   : > { %v18406_v37 = vpop.f32.mrb[102].mxu0 }
 0x699   : > { %v18408_v57 = vpop.f32.mrb[103].mxu0 }
 0x69a   : > { %12435 = vmatmul.mubr.msk.f32.gmra.mrb[246].mxu1 %vm7774_vm3, %v13958_v61  ;;  %v18410_v61 = vpop.f32.mrb[104].mxu0 }
 0x69b   : > { %7959 = vmatprep.mubr.f32.mxu1 %v15743_v5  ;;  %v18412_v42 = vpop.f32.mrb[105].mxu0 }
 0x69c   : > { %v18414_v6 = vpop.f32.mrb[106].mxu0 }
 0x69e   : > { %12436 = vmatmul.mubr.msk.f32.gmra.mrb[248].mxu1 %vm7774_vm3, %v7661_v45 }
 0x69f   : > { %7965 = vmatprep.mubr.f32.mxu1 %v15743_v5 }
 0x6a2   : > { %12437 = vmatmul.mubr.msk.f32.gmra.mrb[250].mxu1 %vm7774_vm3, %v13965_v49  ;;  %v18416_v49 = vpop.f32.mrb[107].mxu0 }
 0x6a3   : > { %7971 = vmatprep.mubr.f32.mxu1 %v15743_v5  ;;  %v18418_v45 = vpop.f32.mrb[108].mxu0 }
 0x6a6   : > { %12438 = vmatmul.mubr.msk.f32.gmra.mrb[252].mxu1 %vm7774_vm3, %v7736_v54 }
 0x6a7   : > { %7977 = vmatprep.mubr.f32.mxu1 %v15743_v5 }
 0x6aa   : > { %12439 = vmatmul.mubr.msk.f32.gmra.mrb[254].mxu1 %vm7774_vm3, %v13972_v53  ;;  %v18420_v53 = vpop.f32.mrb[109].mxu0 }
 0x6ab   : > { %8096 = vmatprep.mubr.f32.mxu1 %v15743_v5  ;;  %v18422_v54 = vpop.f32.mrb[110].mxu0 }
 0x6ae   : > { %12440 = vmatmul.mubr.msk.f32.vlgmr.msra.gmra.mrb[224].mxu1 %vm7774_vm3, %v18078_v35  ;;  %v12479_v35 = vld [vmem:[%s19357_s5 + $0x1e8] sm:$0xff] }
 0x6af   : > { %14893 = vmatpush3.bf16.msra.mxu1 %v17725_v62  ;;  %8102 = vmatprep.mubr.f32.mxu1 %v15743_v5  ;;  %v12456_v62 = vld [vmem:[%s19358_s6 + $0x20] sm:$0xff] }
 0x6b0   : > { %14895 = vmatprep.subr.bf16.mxu1 %v17751_v32 }
 0x6b2   : > { %12441 = vmatmul.mubr.msk.f32.gmra.mrb[226].mxu1 %vm7774_vm3, %v18076_v10  ;;  %v12457_v10 = vld [vmem:[%s19358_s6 + $0x28] sm:$0xff] }
 0x6b3   : > { %8108 = vmatprep.mubr.f32.mxu1 %v15743_v5 }
 0x6b6   : > { %12442 = vmatmul.mubr.msk.f32.gmra.mrb[228].mxu1 %vm7774_vm3, %v18082_v13 }
 0x6b7   : > { %8114 = vmatprep.mubr.f32.mxu1 %v15743_v5 }
 0x6ba   : > { %12443 = vmatmul.mubr.msk.f32.gmra.mrb[230].mxu1 %vm7774_vm3, %v18080_v39 }
 0x6bb   : > { %8120 = vmatprep.mubr.f32.mxu1 %v15743_v5 }
 0x6be   : > { %12444 = vmatmul.mubr.msk.f32.gmra.mrb[232].mxu1 %vm7774_vm3, %v18086_v30  ;;  %v12480_v30 = vld [vmem:[%s19357_s5 + $0x1f0] sm:$0xff] }
 0x6bf   : > { %8126 = vmatprep.mubr.f32.mxu1 %v15743_v5 }
 0x6c2   : > { %12445 = vmatmul.mubr.msk.f32.gmra.mrb[234].mxu1 %vm7774_vm3, %v18084_v58  ;;  %v12478_v58 = vld [vmem:[%s19357_s5 + $0x1e0] sm:$0xff] }
 0x6c3   : > { %8132 = vmatprep.mubr.f32.mxu1 %v15743_v5 }
 0x6c6   : > { %12446 = vmatmul.mubr.msk.f32.gmra.mrb[236].mxu1 %vm7774_vm3, %v18090_v52  ;;  %v14928_v52 = vpack.c.bf16 %v12480_v30, %v12478_v58  ;;  %v12542_v58 = vld [vmem:[%s19357_s5 + $0x2d0] sm:$0xff] }
 0x6c7   : > { %8138 = vmatprep.mubr.f32.mxu1 %v15743_v5 }
 0x6ca   : > { %12447 = vmatmul.mubr.msk.f32.gmra.mrb[238].mxu1 %vm7774_vm3, %v18088_v22  ;;  %v12483_v22 = vld [vmem:[%s19357_s5 + $0x208] sm:$0xff] }
 0x6cb   : > { %8144 = vmatprep.mubr.f32.mxu1 %v15743_v5 }
 0x6ce   : > { %12448 = vmatmul.mubr.msk.f32.gmra.mrb[240].mxu1 %vm7774_vm3, %v18094_v28  ;;  %v12482_v28 = vld [vmem:[%s19357_s5 + $0x200] sm:$0xff] }
 0x6cf   : > { %8150 = vmatprep.mubr.f32.mxu1 %v15743_v5 }
 0x6d2   : > { %12449 = vmatmul.mubr.msk.f32.gmra.mrb[242].mxu1 %vm7774_vm3, %v18092_v3 }
 0x6d3   : > { %8156 = vmatprep.mubr.f32.mxu1 %v15743_v5 }
 0x6d6   : > { %12450 = vmatmul.mubr.msk.f32.gmra.mrb[244].mxu1 %vm7774_vm3, %v18098_v43  ;;  %v12487_v43 = vld [vmem:[%s19357_s5 + $0x228] sm:$0xff] }
 0x6d7   : > { %8162 = vmatprep.mubr.f32.mxu1 %v15743_v5 }
 0x6da   : > { %12451 = vmatmul.mubr.msk.f32.gmra.mrb[246].mxu1 %vm7774_vm3, %v18096_v4  ;;  %v12484_v4 = vld [vmem:[%s19357_s5 + $0x210] sm:$0xff] }
 0x6db   : > { %8168 = vmatprep.mubr.f32.mxu1 %v15743_v5 }
 0x6de   : > { %12452 = vmatmul.mubr.msk.f32.gmra.mrb[248].mxu1 %vm7774_vm3, %v18102_v33  ;;  %v14932_v33 = vpack.c.bf16 %v12484_v4, %v12482_v28  ;;  %v12544_v4 = vld [vmem:[%s19357_s5 + $0x2e0] sm:$0xff] }
 0x6df   : > { %8174 = vmatprep.mubr.f32.mxu1 %v15743_v5 }
 0x6e2   : > { %12453 = vmatmul.mubr.msk.f32.gmra.mrb[250].mxu1 %vm7774_vm3, %v18100_v20  ;;  %v12489_v20 = vld [vmem:[%s19357_s5 + $0x238] sm:$0xff] }
 0x6e3   : > { %8180 = vmatprep.mubr.f32.mxu1 %v15743_v5 }
 0x6e6   : > { %12454 = vmatmul.mubr.msk.f32.gmra.mrb[252].mxu1 %vm7774_vm3, %v18112_v40  ;;  %v12486_v40 = vld [vmem:[%s19357_s5 + $0x220] sm:$0xff] }
 0x6e7   : > { %8186 = vmatprep.mubr.f32.mxu1 %v15743_v5  ;;  %v14936_v56 = vpack.c.bf16 %v12488_v59, %v12486_v40 }
 0x6ea   : > { %12455 = vmatmul.mubr.msk.f32.gmra.mrb[254].mxu1 %vm7774_vm3, %v18104_v31  ;;  %v14934_v31 = vpack.c.bf16 %v12489_v20, %v12487_v43  ;;  %v12546_v43 = vld [vmem:[%s19357_s5 + $0x2f0] sm:$0xff] }
 0x6eb   : > { %13977 = vmatprep.mubr.msk.f32.mxu1 %vm6501_vm2, %v12456_v62  ;;  %v14992_v59 = vpack.c.bf16 %v12546_v43, %v12544_v4 }
 0x6ee   : > { %13978 = vmatmul.mubr.msk.f32.vlgmr.msra.gmra.mrb[0].mxu1 %vm6501_vm2, %v12457_v10 }
 0x6ef   : > { %14897 = vmatpush3.bf16.msra.mxu1 %v17751_v32  ;;  %13984 = vmatprep.mubr.msk.f32.mxu1 %vm6501_vm2, %v12456_v62  ;;  %v12475_v32 = vld [vmem:[%s19357_s5 + $0x1c8] sm:$0xff] }
 0x6f0   : > { %14899 = vmatprep.subr.bf16.mxu1 %v17769_v21 }
 0x6f2   : > { %13985 = vmatmul.mubr.msk.f32.vlgmr.msra.gmra.mrb[2].mxu1 %vm6501_vm2, %v12457_v10 }
 0x6f3   : > { %14901 = vmatpush3.bf16.msra.mxu1 %v17769_v21  ;;  %13991 = vmatprep.mubr.msk.f32.mxu1 %vm6501_vm2, %v12456_v62  ;;  %v12477_v21 = vld [vmem:[%s19357_s5 + $0x1d8] sm:$0xff] }
 0x6f4   : > { %14903 = vmatprep.subr.bf16.mxu1 %v17787_v36 }
 0x6f6   : > { %13992 = vmatmul.mubr.msk.f32.vlgmr.msra.gmra.mrb[4].mxu1 %vm6501_vm2, %v12457_v10 }
 0x6f7   : > { %14905 = vmatpush3.bf16.msra.mxu1 %v17787_v36  ;;  %13998 = vmatprep.mubr.msk.f32.mxu1 %vm6501_vm2, %v12456_v62  ;;  %v14922_v36 = vpack.c.bf16 %v12477_v21, %v12475_v32  ;;  %v12538_v32 = vld [vmem:[%s19357_s5 + $0x2b0] sm:$0xff]  ;;  %v12541_v21 = vld [vmem:[%s19357_s5 + $0x2c8] sm:$0xff] }
 0x6f8   : > { %14907 = vmatprep.subr.bf16.mxu1 %v17805_v44 }
 0x6fa   : > { %13999 = vmatmul.mubr.msk.f32.vlgmr.msra.gmra.mrb[6].mxu1 %vm6501_vm2, %v12457_v10 }
 0x6fb   : > { %14909 = vmatpush3.bf16.msra.mxu1 %v17805_v44  ;;  %14005 = vmatprep.mubr.msk.f32.mxu1 %vm6501_vm2, %v12456_v62  ;;  %v12474_v44 = vld [vmem:[%s19357_s5 + $0x1c0] sm:$0xff] }
 0x6fc   : > { %14911 = vmatprep.subr.bf16.mxu1 %v17823_v47 }
 0x6fe   : > { %14006 = vmatmul.mubr.msk.f32.vlgmr.msra.gmra.mrb[8].mxu1 %vm6501_vm2, %v12457_v10 }
 0x6ff   : > { %14913 = vmatpush3.bf16.msra.mxu1 %v17823_v47  ;;  %14012 = vmatprep.mubr.msk.f32.mxu1 %vm6501_vm2, %v12456_v62  ;;  %v12476_v47 = vld [vmem:[%s19357_s5 + $0x1d0] sm:$0xff] }
 0x700   : > { %14915 = vmatprep.subr.bf16.mxu1 %v17841_v7  ;;  %v14924_v39 = vpack.c.bf16 %v12476_v47, %v12474_v44 }
 0x702   : > { %14013 = vmatmul.mubr.msk.f32.vlgmr.msra.gmra.mrb[10].mxu1 %vm6501_vm2, %v12457_v10 }
 0x703   : > { %14917 = vmatpush3.bf16.msra.mxu1 %v17841_v7  ;;  %14019 = vmatprep.mubr.msk.f32.mxu1 %vm6501_vm2, %v12456_v62  ;;  %v12481_v7 = vld [vmem:[%s19357_s5 + $0x1f8] sm:$0xff] }
 0x704   : > { %14919 = vmatprep.subr.bf16.mxu1 %v17858_v12  ;;  %v14926_v13 = vpack.c.bf16 %v12481_v7, %v12479_v35 }
 0x706   : > { %14020 = vmatmul.mubr.msk.f32.vlgmr.msra.gmra.mrb[12].mxu1 %vm6501_vm2, %v12457_v10 }
 0x707   : > { %14921 = vmatpush3.bf16.msra.mxu1 %v17858_v12  ;;  %14026 = vmatprep.mubr.msk.f32.mxu1 %vm6501_vm2, %v12456_v62  ;;  %v12485_v12 = vld [vmem:[%s19357_s5 + $0x218] sm:$0xff]  ;;  %v18424_v62 = vpop.f32.mrb[111].mxu0 }
 0x708   : > { %14923 = vmatprep.subr.bf16.mxu1 %v14922_v36  ;;  %v14930_v3 = vpack.c.bf16 %v12485_v12, %v12483_v22  ;;  %v12543_v36 = vld [vmem:[%s19357_s5 + $0x2d8] sm:$0xff]  ;;  %v18438_v44 = vpop.f32.mrb[112].mxu0  ;;  %v12545_v22 = vld [vmem:[%s19357_s5 + $0x2e8] sm:$0xff] }
 0x709   : > { %v18440_v35 = vpop.f32.mrb[113].mxu0  ;;  %v12547_v12 = vld [vmem:[%s19357_s5 + $0x2f8] sm:$0xff] }
 0x70a   : > { %14027 = vmatmul.mubr.msk.f32.vlgmr.msra.gmra.mrb[14].mxu1 %vm6501_vm2, %v12457_v10  ;;  %v12536_v10 = vld [vmem:[%s19357_s5 + $0x2a0] sm:$0xff]  ;;  %v14990_v28 = vpack.c.bf16 %v12547_v12, %v12545_v22  ;;  %v18469_v40 = vpop.f32.mrb[114].mxu0  ;;  %v12599_v22 = vld [vmem:[%s19357_s5 + $0x388] sm:$0xff]  ;;  %v12601_v12 = vld [vmem:[%s19357_s5 + $0x398] sm:$0xff] }
 0x70b   : > { %14925 = vmatpush1.bf16.msra.mxu1 %v14924_v39  ;;  %8943 = vmatprep.mubr.f32.mxu1 %v15743_v5  ;;  %v14984_v47 = vpack.c.bf16 %v12538_v32, %v12536_v10  ;;  %v14986_v39 = vpack.c.bf16 %v12543_v36, %v12541_v21  ;;  %v18472_v46 = vpop.f32.mrb[115].mxu0  ;;  %v12558_v10 = vld [vmem:[%s19357_s5 + $0x350] sm:$0xff]  ;;  %v12561_v21 = vld [vmem:[%s19357_s5 + $0x368] sm:$0xff]  ;;  %v12563_v36 = vld [vmem:[%s19357_s5 + $0x378] sm:$0xff]  ;;  %v15042_v43 = vpack.c.bf16 %v12601_v12, %v12599_v22 }
 0x70c   : > { %14927 = vmatprep.subr.bf16.mxu1 %v14926_v13  ;;  %v12540_v13 = vld [vmem:[%s19357_s5 + $0x2c0] sm:$0xff]  ;;  %v18501_v55 = vpop.f32.mrb[116].mxu0  ;;  %v12613_v22 = vld [vmem:[%s19357_s5 + $0x3f8] sm:$0xff] }
 0x70f   : > { %14929 = vmatpush1.bf16.msra.mxu1 %v14928_v52  ;;  %v14988_v52 = vpack.c.bf16 %v12542_v58, %v12540_v13  ;;  %v12560_v13 = vld [vmem:[%s19357_s5 + $0x360] sm:$0xff]  ;;  %v12562_v58 = vld [vmem:[%s19357_s5 + $0x370] sm:$0xff] }
 0x710   : > { %14931 = vmatprep.subr.bf16.mxu1 %v14930_v3 }
 0x713   : > { %14933 = vmatpush1.bf16.msra.mxu1 %v14932_v33  ;;  %v12549_v33 = vld [vmem:[%s19357_s5 + $0x308] sm:$0xff] }
 0x714   : > { %14935 = vmatprep.subr.bf16.mxu1 %v14934_v31  ;;  %v12551_v31 = vld [vmem:[%s19357_s5 + $0x318] sm:$0xff] }
 0x717   : > { %14937 = vmatpush1.bf16.msra.mxu1 %v14936_v56  ;;  %v14994_v56 = vpack.c.bf16 %v12551_v31, %v12549_v33 }
 0x718   : > { %14939 = vmatprep.subr.bf16.mxu1 %v14938_v50  ;;  %v12548_v50 = vld [vmem:[%s19357_s5 + $0x300] sm:$0xff] }
 0x71b   : > { %14941 = vmatpush1.bf16.msra.mxu1 %v14940_v63  ;;  %v14996_v63 = vpack.c.bf16 %v12550_v1, %v12548_v50 }
 0x71c   : > { %14943 = vmatprep.subr.bf16.mxu1 %v14942_v8 }
 0x71f   : > { %14945 = vmatpush1.bf16.msra.mxu1 %v14944_v14  ;;  %v12557_v14 = vld [vmem:[%s19357_s5 + $0x348] sm:$0xff] }
 0x720   : > { %14947 = vmatprep.subr.bf16.mxu1 %v14946_v23  ;;  %v12559_v23 = vld [vmem:[%s19357_s5 + $0x358] sm:$0xff] }
 0x721   : > { %v15002_v29 = vpack.c.bf16 %v12559_v23, %v12557_v14  ;;  %v10848_v14 = vld [vmem:[%s19359_s7 + $0x10] sm:$0xff] }
 0x723   : > { %14949 = vmatpush1.bf16.msra.mxu1 %v14948_v25  ;;  %v18504_v25 = vpop.f32.mrb[117].mxu0 }
 0x724   : > { %14983 = vmatprep.subr.bf16.mxu1 %v14982_v38  ;;  %v12556_v38 = vld [vmem:[%s19357_s5 + $0x340] sm:$0xff] }
 0x7c1   : > { %v13979_v7 = vpop.f32.mrb[0].mxu1 }
 0x7c2   : > { %v8268_v30 = vpop.f32.mrb[1].mxu1 }
 0x7c3   : > { %12502 = vmatmul.mubr.msk.f32.vlgmr.msra.gmra.mrb[224].mxu1 %vm7774_vm3, %v8268_v30 }
 0x7c4   : > { %8949 = vmatprep.mubr.f32.mxu1 %v15743_v5  ;;  %14985 = vmatpush1.bf16.msra.mxu1 %v14984_v47  ;;  %v15004_v47 = vpack.c.bf16 %v12558_v10, %v12556_v38  ;;  %v12602_v38 = vld [vmem:[%s19357_s5 + $0x3a0] sm:$0xff]  ;;  %v12604_v10 = vld [vmem:[%s19357_s5 + $0x3b0] sm:$0xff] }
 0x7c5   : > { %v13986_v3 = vpop.f32.mrb[2].mxu1  ;;  %14987 = vmatprep.subr.bf16.mxu1 %v14986_v39  ;;  %v15006_v39 = vpack.c.bf16 %v12563_v36, %v12561_v21  ;;  %v12609_v21 = vld [vmem:[%s19357_s5 + $0x3d8] sm:$0xff] }
 0x7c6   : > { %v8343_v20 = vpop.f32.mrb[3].mxu1 }
 0x7c7   : > { %12503 = vmatmul.mubr.msk.f32.gmra.mrb[226].mxu1 %vm7774_vm3, %v13979_v7 }
 0x7c8   : > { %8955 = vmatprep.mubr.f32.mxu1 %v15743_v5  ;;  %14989 = vmatpush1.bf16.msra.mxu1 %v14988_v52  ;;  %v18533_v52 = vpop.f32.mrb[118].mxu0 }
 0x7c9   : > { %v13993_v27 = vpop.f32.mrb[4].mxu1  ;;  %14991 = vmatprep.subr.bf16.mxu1 %v14990_v28  ;;  %v18536_v28 = vpop.f32.mrb[119].mxu0 }
 0x7ca   : > { %v8418_v18 = vpop.f32.mrb[5].mxu1 }
 0x7cb   : > { %12504 = vmatmul.mubr.msk.f32.gmra.mrb[228].mxu1 %vm7774_vm3, %v8343_v20 }
 0x7cc   : > { %8961 = vmatprep.mubr.f32.mxu1 %v15743_v5  ;;  %14993 = vmatpush1.bf16.msra.mxu1 %v14992_v59  ;;  %v18541_v59 = vpop.f32.mrb[120].mxu0 }
 0x7cd   : > { %v14000_v8 = vpop.f32.mrb[6].mxu1  ;;  %14995 = vmatprep.subr.bf16.mxu1 %v14994_v56 }
 0x7ce   : > { %v8493_v16 = vpop.f32.mrb[7].mxu1 }
 0x7cf   : > { %12505 = vmatmul.mubr.msk.f32.gmra.mrb[230].mxu1 %vm7774_vm3, %v13986_v3  ;;  %v15008_v3 = vpack.c.bf16 %v12562_v58, %v12560_v13  ;;  %v12608_v58 = vld [vmem:[%s19357_s5 + $0x3d0] sm:$0xff] }
 0x7d0   : > { %8967 = vmatprep.mubr.f32.mxu1 %v15743_v5  ;;  %14997 = vmatpush1.bf16.msra.mxu1 %v14996_v63  ;;  %v12598_v63 = vld [vmem:[%s19357_s5 + $0x380] sm:$0xff] }
 0x7d1   : > { %v14007_v17 = vpop.f32.mrb[8].mxu1  ;;  %14999 = vmatprep.subr.bf16.mxu1 %v14998_v0  ;;  %v12603_v0 = vld [vmem:[%s19357_s5 + $0x3a8] sm:$0xff] }
 0x7d2   : > { %v8568_v32 = vpop.f32.mrb[9].mxu1 }
 0x7d3   : > { %12506 = vmatmul.mubr.msk.f32.gmra.mrb[232].mxu1 %vm7774_vm3, %v8418_v18 }
 0x7d4   : > { %8973 = vmatprep.mubr.f32.mxu1 %v15743_v5  ;;  %15001 = vmatpush1.bf16.msra.mxu1 %v15000_v19 }
 0x7d5   : > { %v14014_v7 = vpop.f32.mrb[10].mxu1  ;;  %15003 = vmatprep.subr.bf16.mxu1 %v15002_v29  ;;  %v15046_v29 = vpack.c.bf16 %v12605_v34, %v12603_v0  ;;  %v10854_v0 = vld [vmem:[%s19359_s7 + $0x40] sm:$0xff]  ;;  %v10855_v34 = vld [vmem:[%s19359_s7 + $0x48] sm:$0xff] }
 0x7d6   : > { %v8643_v30 = vpop.f32.mrb[11].mxu1 }
 0x7d7   : > { %12507 = vmatmul.mubr.msk.f32.gmra.mrb[234].mxu1 %vm7774_vm3, %v13993_v27  ;;  %v18544_v27 = vpop.f32.mrb[121].mxu0 }
 0x7d8   : > { %8979 = vmatprep.mubr.f32.mxu1 %v15743_v5  ;;  %15005 = vmatpush1.bf16.msra.mxu1 %v15004_v47  ;;  %v18549_v56 = vpop.f32.mrb[122].mxu0  ;;  %v10850_v47 = vld [vmem:[%s19359_s7 + $0x20] sm:$0xff] }
 0x7d9   : > { %v14021_v4 = vpop.f32.mrb[12].mxu1  ;;  %15007 = vmatprep.subr.bf16.mxu1 %v15006_v39  ;;  %v18552_v50 = vpop.f32.mrb[123].mxu0  ;;  %v15048_v39 = vpack.c.bf16 %v12604_v10, %v12602_v38  ;;  %v10857_v38 = vld [vmem:[%s19359_s7 + $0x58] sm:$0xff] }
 0x7da   : > { %v8718_v20 = vpop.f32.mrb[13].mxu1  ;;  %v18557_v1 = vpop.f32.mrb[124].mxu0 }
 0x7db   : > { %12508 = vmatmul.mubr.msk.f32.gmra.mrb[236].mxu1 %vm7774_vm3, %v8493_v16  ;;  %v18560_v18 = vpop.f32.mrb[125].mxu0  ;;  %v10847_v16 = vld [vmem:[%s19359_s7 + $0x8] sm:$0xff] }
 0x7dc   : > { %8985 = vmatprep.mubr.f32.mxu1 %v15743_v5  ;;  %15009 = vmatpush1.bf16.msra.mxu1 %v15008_v3  ;;  %v18565_v60 = vpop.f32.mrb[126].mxu0  ;;  %v15071_v19 = vpack.c.bf16 %v10847_v16, %v10846_v26  ;;  %v10852_v3 = vld [vmem:[%s19359_s7 + $0x30] sm:$0xff] }
 0x7dd   : > { %v14028_v33 = vpop.f32.mrb[14].mxu1  ;;  %15043 = vmatprep.subr.bf16.mxu1 %v15042_v43  ;;  %v18568_v24 = vpop.f32.mrb[127].mxu0 }
 0x7de   : > { %v8793_v31 = vpop.f32.mrb[15].mxu1  ;;  %15072 = vmatpush1.bf16.msra.mxu0 %v15071_v19  ;;  %v12621_v19 = vld [vmem:[%s19357_s5 + $0x438] sm:$0xff] }
 0x7df   : > { %12509 = vmatmul.mubr.msk.f32.gmra.mrb[238].mxu1 %vm7774_vm3, %v14000_v8  ;;  %v12600_v8 = vld [vmem:[%s19357_s5 + $0x390] sm:$0xff]  ;;  %15073 = vmatprep.subr.bf16.mxu0 %v15744_v11 }
 0x7e0   : > { %8991 = vmatprep.mubr.f32.mxu1 %v15743_v5  ;;  %v15044_v23 = vpack.c.bf16 %v12600_v8, %v12598_v63  ;;  %v12617_v63 = vld [vmem:[%s19357_s5 + $0x418] sm:$0xff] }
 0x7e3   : > { %12510 = vmatmul.mubr.msk.f32.gmra.mrb[240].mxu1 %vm7774_vm3, %v8568_v32  ;;  %v12607_v32 = vld [vmem:[%s19357_s5 + $0x3c8] sm:$0xff] }
 0x7e4   : > { %8997 = vmatprep.mubr.f32.mxu1 %v15743_v5  ;;  %v15050_v13 = vpack.c.bf16 %v12609_v21, %v12607_v32  ;;  %v12620_v21 = vld [vmem:[%s19357_s5 + $0x430] sm:$0xff] }
 0x7e7   : > { %12511 = vmatmul.mubr.msk.f32.gmra.mrb[242].mxu1 %vm7774_vm3, %v14007_v17  ;;  %v10849_v17 = vld [vmem:[%s19359_s7 + $0x18] sm:$0xff] }
 0x7e8   : > { %9003 = vmatprep.mubr.f32.mxu1 %v15743_v5  ;;  %v15074_v36 = vpack.c.bf16 %v10849_v17, %v10848_v14  ;;  %v12616_v14 = vld [vmem:[%s19357_s5 + $0x410] sm:$0xff]  ;;  %v15083_v17 = vpack.c.bf16 %v10855_v34, %v10854_v0  ;;  %v12659_v0 = vld [vmem:[%s19359_s7 + $0xe8] sm:$0xff] }
 0x7ea   : > { %15075 = vmatpush1.bf16.msra.mxu0 %v15074_v36  ;;  %v12623_v36 = vld [vmem:[%s19357_s5 + $0x448] sm:$0xff] }
 0x7eb   : > { %12512 = vmatmul.mubr.msk.f32.gmra.mrb[244].mxu1 %vm7774_vm3, %v8643_v30  ;;  %v12611_v30 = vld [vmem:[%s19357_s5 + $0x3e8] sm:$0xff]  ;;  %15076 = vmatprep.subr.bf16.mxu0 %v15744_v11 }
 0x7ec   : > { %9009 = vmatprep.mubr.f32.mxu1 %v15743_v5 }
 0x7ef   : > { %12513 = vmatmul.mubr.msk.f32.gmra.mrb[246].mxu1 %vm7774_vm3, %v14014_v7  ;;  %v10851_v7 = vld [vmem:[%s19359_s7 + $0x28] sm:$0xff] }
 0x7f0   : > { %9015 = vmatprep.mubr.f32.mxu1 %v15743_v5  ;;  %v15077_v12 = vpack.c.bf16 %v10851_v7, %v10850_v47  ;;  %v12625_v47 = vld [vmem:[%s19357_s5 + $0x458] sm:$0xff] }
 0x7f2   : > { %15078 = vmatpush1.bf16.msra.mxu0 %v15077_v12  ;;  %v10860_v12 = vld [vmem:[%s19359_s7 + $0x70] sm:$0xff] }
 0x7f3   : > { %12514 = vmatmul.mubr.msk.f32.gmra.mrb[248].mxu1 %vm7774_vm3, %v8718_v20  ;;  %v15054_v20 = vpack.c.bf16 %v12613_v22, %v12611_v30  ;;  %15079 = vmatprep.subr.bf16.mxu0 %v15744_v11  ;;  %v12624_v30 = vld [vmem:[%s19357_s5 + $0x450] sm:$0xff] }
 0x7f4   : > { %9021 = vmatprep.mubr.f32.mxu1 %v15743_v5 }
 0x7f7   : > { %12515 = vmatmul.mubr.msk.f32.gmra.mrb[250].mxu1 %vm7774_vm3, %v14021_v4  ;;  %v10853_v4 = vld [vmem:[%s19359_s7 + $0x38] sm:$0xff] }
 0x7f8   : > { %9027 = vmatprep.mubr.f32.mxu1 %v15743_v5  ;;  %v15080_v8 = vpack.c.bf16 %v10853_v4, %v10852_v3  ;;  %v10861_v3 = vld [vmem:[%s19359_s7 + $0x78] sm:$0xff] }
 0x7fa   : > { %15081 = vmatpush1.bf16.msra.mxu0 %v15080_v8  ;;  %v12658_v8 = vld [vmem:[%s19359_s7 + $0xe0] sm:$0xff] }
 0x7fb   : > { %12516 = vmatmul.mubr.msk.f32.gmra.mrb[252].mxu1 %vm7774_vm3, %v8793_v31  ;;  %v12615_v31 = vld [vmem:[%s19357_s5 + $0x408] sm:$0xff]  ;;  %15082 = vmatprep.subr.bf16.mxu0 %v15744_v11 }
 0x7fc   : > { %9033 = vmatprep.mubr.f32.mxu1 %v15743_v5  ;;  %v15058_v16 = vpack.c.bf16 %v12617_v63, %v12615_v31 }
 0x7fe   : > { %15084 = vmatpush1.bf16.msra.mxu0 %v15083_v17 }
 0x7ff   : > { %12517 = vmatmul.mubr.msk.f32.gmra.mrb[254].mxu1 %vm7774_vm3, %v14028_v33  ;;  %v12612_v33 = vld [vmem:[%s19357_s5 + $0x3f0] sm:$0xff]  ;;  %15085 = vmatprep.subr.bf16.mxu0 %v15744_v11 }
 0x800   : > { %9822 = vmatprep.mubr.f32.mxu1 %v15743_v5 }
 0x803   : > { %12564 = vmatmul.mubr.msk.f32.vlgmr.msra.gmra.mrb[224].mxu1 %vm7774_vm3, %v18396_v2  ;;  %v12606_v2 = vld [vmem:[%s19357_s5 + $0x3c0] sm:$0xff] }
 0x804   : > { %9828 = vmatprep.mubr.f32.mxu1 %v15743_v5  ;;  %15045 = vmatpush1.bf16.msra.mxu1 %v15044_v23  ;;  %v15052_v43 = vpack.c.bf16 %v12608_v58, %v12606_v2  ;;  %v12619_v23 = vld [vmem:[%s19357_s5 + $0x428] sm:$0xff]  ;;  %v15066_v58 = vpack.c.bf16 %v12625_v47, %v12623_v36 }
 0x805   : > { %15047 = vmatprep.subr.bf16.mxu1 %v15046_v29  ;;  %v10856_v29 = vld [vmem:[%s19359_s7 + $0x50] sm:$0xff]  ;;  %v15062_v32 = vpack.c.bf16 %v12621_v19, %v12619_v23  ;;  %v12661_v19 = vld [vmem:[%s19359_s7 + $0xf8] sm:$0xff] }
 0x806   : > { %v15086_v7 = vpack.c.bf16 %v10857_v38, %v10856_v29  ;;  %v12660_v23 = vld [vmem:[%s19359_s7 + $0xf0] sm:$0xff] }
 0x807   : > { %12565 = vmatmul.mubr.msk.f32.gmra.mrb[226].mxu1 %vm7774_vm3, %v18394_v41  ;;  %v12610_v41 = vld [vmem:[%s19357_s5 + $0x3e0] sm:$0xff]  ;;  %v15116_v38 = vpack.c.bf16 %v12661_v19, %v12660_v23 }
 0x808   : > { %9834 = vmatprep.mubr.f32.mxu1 %v15743_v5  ;;  %15049 = vmatpush1.bf16.msra.mxu1 %v15048_v39  ;;  %v15056_v26 = vpack.c.bf16 %v12612_v33, %v12610_v41  ;;  %v10858_v39 = vld [vmem:[%s19359_s7 + $0x60] sm:$0xff]  ;;  %v12657_v41 = vld [vmem:[%s19359_s7 + $0xd8] sm:$0xff] }
 0x809   : > { %15051 = vmatprep.subr.bf16.mxu1 %v15050_v13  ;;  %v10859_v13 = vld [vmem:[%s19359_s7 + $0x68] sm:$0xff]  ;;  %15087 = vmatpush1.bf16.msra.mxu0 %v15086_v7  ;;  %v12685_v19 = vld [vmem:[%s19361_s9 + $0x80] sm:$0xff] }
 0x80a   : > { %v15089_v22 = vpack.c.bf16 %v10859_v13, %v10858_v39  ;;  %15088 = vmatprep.subr.bf16.mxu0 %v15744_v11  ;;  %v12664_v39 = vld [vmem:[%s19359_s7 + $0x110] sm:$0xff]  ;;  %v12665_v13 = vld [vmem:[%s19359_s7 + $0x118] sm:$0xff] }
 0x80b   : > { %12566 = vmatmul.mubr.msk.f32.gmra.mrb[228].mxu1 %vm7774_vm3, %v18400_v51  ;;  %v12614_v51 = vld [vmem:[%s19357_s5 + $0x400] sm:$0xff] }
 0x80c   : > { %9840 = vmatprep.mubr.f32.mxu1 %v15743_v5  ;;  %15053 = vmatpush1.bf16.msra.mxu1 %v15052_v43  ;;  %v15060_v10 = vpack.c.bf16 %v12616_v14, %v12614_v51  ;;  %v15092_v43 = vpack.c.bf16 %v10861_v3, %v10860_v12  ;;  %v15113_v14 = vpack.c.bf16 %v12659_v0, %v12658_v8  ;;  %v12694_v8 = vld [vmem:[%s19361_s9 + $0xb8] sm:$0xff] }
 0x80d   : > { %15055 = vmatprep.subr.bf16.mxu1 %v15054_v20  ;;  %15090 = vmatpush1.bf16.msra.mxu0 %v15089_v22  ;;  %v12656_v20 = vld [vmem:[%s19359_s7 + $0xd0] sm:$0xff]  ;;  %v12667_v22 = vld [vmem:[%s19359_s7 + $0x128] sm:$0xff] }
 0x80e   : > { %15091 = vmatprep.subr.bf16.mxu0 %v15744_v11  ;;  %v15110_v63 = vpack.c.bf16 %v12657_v41, %v12656_v20  ;;  %v12681_v41 = vld [vmem:[%s19361_s9 + $0x60] sm:$0xff] }
 0x80f   : > { %12567 = vmatmul.mubr.msk.f32.gmra.mrb[230].mxu1 %vm7774_vm3, %v18398_v48  ;;  %v12618_v48 = vld [vmem:[%s19357_s5 + $0x420] sm:$0xff] }
 0x810   : > { %9846 = vmatprep.mubr.f32.mxu1 %v15743_v5  ;;  %15057 = vmatpush1.bf16.msra.mxu1 %v15056_v26  ;;  %v15064_v2 = vpack.c.bf16 %v12620_v21, %v12618_v48 }
 0x811   : > { %15059 = vmatprep.subr.bf16.mxu1 %v15058_v16  ;;  %15093 = vmatpush1.bf16.msra.mxu0 %v15092_v43 }
 0x812   : > { %15094 = vmatprep.subr.bf16.mxu0 %v15744_v11 }
 0x813   : > { %12568 = vmatmul.mubr.msk.f32.gmra.mrb[232].mxu1 %vm7774_vm3, %v18404_v9  ;;  %v12622_v9 = vld [vmem:[%s19357_s5 + $0x440] sm:$0xff] }
 0x814   : > { %9852 = vmatprep.mubr.f32.mxu1 %v15743_v5  ;;  %15061 = vmatpush1.bf16.msra.mxu1 %v15060_v10  ;;  %v15068_v4 = vpack.c.bf16 %v12624_v30, %v12622_v9  ;;  %v12662_v10 = vld [vmem:[%s19359_s7 + $0x100] sm:$0xff]  ;;  %v15122_v9 = vpack.c.bf16 %v12665_v13, %v12664_v39 }
 0x815   : > { %15063 = vmatprep.subr.bf16.mxu1 %v15062_v32  ;;  %v12663_v32 = vld [vmem:[%s19359_s7 + $0x108] sm:$0xff]  ;;  %v12666_v30 = vld [vmem:[%s19359_s7 + $0x120] sm:$0xff] }
 0x816   : > { %v15119_v7 = vpack.c.bf16 %v12663_v32, %v12662_v10  ;;  %v12698_v10 = vld [vmem:[%s19361_s9 + $0xd8] sm:$0xff] }
 0x817   : > { %12569 = vmatmul.mubr.msk.f32.gmra.mrb[234].mxu1 %vm7774_vm3, %v18402_v15  ;;  %v10862_v15 = vld [vmem:[%s19359_s7 + $0x80] sm:$0xff] }
 0x818   : > { %9858 = vmatprep.mubr.f32.mxu1 %v15743_v5  ;;  %15065 = vmatpush1.bf16.msra.mxu1 %v15064_v2 }
 0x819   : > { %15067 = vmatprep.subr.bf16.mxu1 %v15066_v58 }
 0x81b   : > { %12570 = vmatmul.mubr.msk.f32.gmra.mrb[236].mxu1 %vm7774_vm3, %v18408_v57 }
 0x81c   : > { %9864 = vmatprep.mubr.f32.mxu1 %v15743_v5  ;;  %15069 = vmatpush1.bf16.msra.mxu1 %v15068_v4 }
 0x81d   : > { %15160 = vmatprep.subr.bf16.mxu1 %v15744_v11 }
 0x81f   : > { %12571 = vmatmul.mubr.msk.f32.gmra.mrb[238].mxu1 %vm7774_vm3, %v18406_v37  ;;  %v10863_v37 = vld [vmem:[%s19359_s7 + $0x88] sm:$0xff] }
 0x820   : > { %9870 = vmatprep.mubr.f32.mxu1 %v15743_v5  ;;  %v15095_v57 = vpack.c.bf16 %v10863_v37, %v10862_v15  ;;  %v15125_v15 = vpack.c.bf16 %v12667_v22, %v12666_v30  ;;  %v12668_v37 = vld [vmem:[%s19359_s7 + $0x130] sm:$0xff] }
 0x822   : > { %15096 = vmatpush1.bf16.msra.mxu0 %v15095_v57  ;;  %v12669_v57 = vld [vmem:[%s19359_s7 + $0x138] sm:$0xff] }
 0x823   : > { %12572 = vmatmul.mubr.msk.f32.gmra.mrb[240].mxu1 %vm7774_vm3, %v18412_v42  ;;  %15097 = vmatprep.subr.bf16.mxu0 %v15744_v11  ;;  %v10865_v42 = vld [vmem:[%s19359_s7 + $0x98] sm:$0xff] }
 0x824   : > { %9876 = vmatprep.mubr.f32.mxu1 %v15743_v5 }
 0x827   : > { %12573 = vmatmul.mubr.msk.f32.gmra.mrb[242].mxu1 %vm7774_vm3, %v18410_v61  ;;  %v10864_v61 = vld [vmem:[%s19359_s7 + $0x90] sm:$0xff] }
 0x828   : > { %9882 = vmatprep.mubr.f32.mxu1 %v15743_v5 }
 0x82b   : > { %12574 = vmatmul.mubr.msk.f32.gmra.mrb[244].mxu1 %vm7774_vm3, %v18416_v49 }
 0x82c   : > { %9888 = vmatprep.mubr.f32.mxu1 %v15743_v5 }
 0x82f   : > { %12575 = vmatmul.mubr.msk.f32.gmra.mrb[246].mxu1 %vm7774_vm3, %v18414_v6  ;;  %v15098_v6 = vpack.c.bf16 %v10865_v42, %v10864_v61 }
 0x830   : > { %9894 = vmatprep.mubr.f32.mxu1 %v15743_v5 }
 0x831   : > { %15099 = vmatpush1.bf16.msra.mxu0 %v15098_v6  ;;  %v15128_v6 = vpack.c.bf16 %v12669_v57, %v12668_v37 }
 0x832   : > { %15100 = vmatprep.subr.bf16.mxu0 %v15744_v11 }
 0x833   : > { %12576 = vmatmul.mubr.msk.f32.gmra.mrb[248].mxu1 %vm7774_vm3, %v18420_v53  ;;  %v12650_v53 = vld [vmem:[%s19359_s7 + $0xa0] sm:$0xff] }
 0x834   : > { %9900 = vmatprep.mubr.f32.mxu1 %v15743_v5 }
 0x837   : > { %12577 = vmatmul.mubr.msk.f32.gmra.mrb[250].mxu1 %vm7774_vm3, %v18418_v45 }
 0x838   : > { %9906 = vmatprep.mubr.f32.mxu1 %v15743_v5 }
 0x83b   : > { %12578 = vmatmul.mubr.msk.f32.gmra.mrb[252].mxu1 %vm7774_vm3, %v18424_v62 }
 0x83c   : > { %9912 = vmatprep.mubr.f32.mxu1 %v15743_v5 }
 0x83f   : > { %12579 = vmatmul.mubr.msk.f32.gmra.mrb[254].mxu1 %vm7774_vm3, %v18422_v54  ;;  %v12651_v54 = vld [vmem:[%s19359_s7 + $0xa8] sm:$0xff] }
 0x840   : > { %10701 = vmatprep.mubr.f32.mxu1 %v15743_v5 }
 0x843   : > { %12626 = vmatmul.mubr.msk.f32.vlgmr.msra.gmra.mrb[224].mxu1 %vm7774_vm3, %v18440_v35 }
 0x844   : > { %10707 = vmatprep.mubr.f32.mxu1 %v15743_v5 }
 0x847   : > { %12627 = vmatmul.mubr.msk.f32.gmra.mrb[226].mxu1 %vm7774_vm3, %v18438_v44 }
 0x848   : > { %10713 = vmatprep.mubr.f32.mxu1 %v15743_v5 }
 0x84b   : > { %12628 = vmatmul.mubr.msk.f32.gmra.mrb[228].mxu1 %vm7774_vm3, %v18472_v46  ;;  %v15101_v46 = vpack.c.bf16 %v12651_v54, %v12650_v53 }
 0x84c   : > { %10719 = vmatprep.mubr.f32.mxu1 %v15743_v5 }
 0x84f   : > { %12629 = vmatmul.mubr.msk.f32.gmra.mrb[230].mxu1 %vm7774_vm3, %v18469_v40 }
 0x850   : > { %10725 = vmatprep.mubr.f32.mxu1 %v15743_v5 }
 0x853   : > { %12630 = vmatmul.mubr.msk.f32.gmra.mrb[232].mxu1 %vm7774_vm3, %v18504_v25  ;;  %v12653_v25 = vld [vmem:[%s19359_s7 + $0xb8] sm:$0xff] }
 0x854   : > { %10731 = vmatprep.mubr.f32.mxu1 %v15743_v5 }
 0x857   : > { %12631 = vmatmul.mubr.msk.f32.gmra.mrb[234].mxu1 %vm7774_vm3, %v18501_v55  ;;  %v12652_v55 = vld [vmem:[%s19359_s7 + $0xb0] sm:$0xff] }
 0x858   : > { %10737 = vmatprep.mubr.f32.mxu1 %v15743_v5 }
 0x85b   : > { %12632 = vmatmul.mubr.msk.f32.gmra.mrb[236].mxu1 %vm7774_vm3, %v18536_v28 }
 0x85c   : > { %10743 = vmatprep.mubr.f32.mxu1 %v15743_v5 }
 0x85f   : > { %12633 = vmatmul.mubr.msk.f32.gmra.mrb[238].mxu1 %vm7774_vm3, %v18533_v52 }
 0x860   : > { %10749 = vmatprep.mubr.f32.mxu1 %v15743_v5 }
 0x863   : > { %12634 = vmatmul.mubr.msk.f32.gmra.mrb[240].mxu1 %vm7774_vm3, %v18544_v27  ;;  %v12654_v27 = vld [vmem:[%s19359_s7 + $0xc0] sm:$0xff] }
 0x864   : > { %10755 = vmatprep.mubr.f32.mxu1 %v15743_v5 }
 0x867   : > { %12635 = vmatmul.mubr.msk.f32.gmra.mrb[242].mxu1 %vm7774_vm3, %v18541_v59  ;;  %v15104_v59 = vpack.c.bf16 %v12653_v25, %v12652_v55 }
 0x868   : > { %10761 = vmatprep.mubr.f32.mxu1 %v15743_v5 }
 0x86b   : > { %12636 = vmatmul.mubr.msk.f32.gmra.mrb[244].mxu1 %vm7774_vm3, %v18552_v50 }
 0x86c   : > { %10767 = vmatprep.mubr.f32.mxu1 %v15743_v5 }
 0x86f   : > { %12637 = vmatmul.mubr.msk.f32.gmra.mrb[246].mxu1 %vm7774_vm3, %v18549_v56  ;;  %v12655_v56 = vld [vmem:[%s19359_s7 + $0xc8] sm:$0xff] }
 0x870   : > { %10773 = vmatprep.mubr.f32.mxu1 %v15743_v5 }
 0x873   : > { %12638 = vmatmul.mubr.msk.f32.gmra.mrb[248].mxu1 %vm7774_vm3, %v18560_v18 }
 0x874   : > { %10779 = vmatprep.mubr.f32.mxu1 %v15743_v5 }
 0x877   : > { %12639 = vmatmul.mubr.msk.f32.gmra.mrb[250].mxu1 %vm7774_vm3, %v18557_v1 }
 0x878   : > { %10785 = vmatprep.mubr.f32.mxu1 %v15743_v5 }
 0x87b   : > { %12640 = vmatmul.mubr.msk.f32.gmra.mrb[252].mxu1 %vm7774_vm3, %v18568_v24  ;;  %v15107_v24 = vpack.c.bf16 %v12655_v56, %v12654_v27 }
 0x87c   : > { %10791 = vmatprep.mubr.f32.mxu1 %v15743_v5 }
 0x87f   : > { %12641 = vmatmul.mubr.msk.f32.gmra.mrb[254].mxu1 %vm7774_vm3, %v18565_v60 }
 0x880   : > { %14207 = vmatprep.mubr.msk.f32.mxu1 %vm15745_vm4, %v15743_v5 }
 0x916   : > { %v10703_v49 = vpop.f32.mrb[224].mxu1 }
 0x917   : > { %v10705_v45 = vpop.f32.mrb[225].mxu1 }
 0x91a   : > { %v10709_v62 = vpop.f32.mrb[226].mxu1 }
 0x91b   : > { %v18824_v44 = vmax.f32 %v10703_v49, %v10709_v62  ;;  %v10711_v35 = vpop.f32.mrb[227].mxu1 }
 0x91c   : > { %v18826_v40 = vmax.f32 %v10705_v45, %v10711_v35 }
 0x91e   : > { %v10715_v52 = vpop.f32.mrb[228].mxu1  ;;  %12642 = vmatprep.mubr.msk.f32.mxu0 %vm534_vm0, %v18826_v40 }
 0x91f   : > { %v10717_v28 = vpop.f32.mrb[229].mxu1  ;;  %10955 = vmatmul.mubr.f32.vlgmr.msra.gmra.mrb[128].mxu0 %v18824_v44 }
 0x920   : > { %15102 = vmatpush1.bf16.msra.mxu0 %v15101_v46 }
 0x921   : > { %15103 = vmatprep.subr.bf16.mxu0 %v15744_v11 }
 0x922   : > { %v10721_v50 = vpop.f32.mrb[230].mxu1 }
 0x923   : > { %v18844_v1 = vmax.f32 %v10715_v52, %v10721_v50  ;;  %v10723_v18 = vpop.f32.mrb[231].mxu1 }
 0x924   : > { %v18846_v60 = vmax.f32 %v10717_v28, %v10723_v18  ;;  %15105 = vmatpush1.bf16.msra.mxu0 %v15104_v59 }
 0x925   : > { %15106 = vmatprep.subr.bf16.mxu0 %v15744_v11 }
 0x926   : > { %v10727_v33 = vpop.f32.mrb[232].mxu1  ;;  %12643 = vmatprep.mubr.msk.f32.mxu0 %vm534_vm0, %v18846_v60 }
 0x927   : > { %v10729_v31 = vpop.f32.mrb[233].mxu1  ;;  %10960 = vmatmul.mubr.f32.gmra.mrb[130].mxu0 %v18844_v1 }
 0x928   : > { %15108 = vmatpush1.bf16.msra.mxu0 %v15107_v24  ;;  %v12692_v24 = vld [vmem:[%s19361_s9 + $0xa8] sm:$0xff] }
 0x929   : > { %15109 = vmatprep.subr.bf16.mxu0 %v15744_v11 }
 0x92a   : > { %v10733_v34 = vpop.f32.mrb[234].mxu1 }
 0x92b   : > { %v18865_v26 = vmax.f32 %v10727_v33, %v10733_v34  ;;  %v10735_v16 = vpop.f32.mrb[235].mxu1  ;;  %v12682_v33 = vld [vmem:[%s19361_s9 + $0x68] sm:$0xff]  ;;  %v12683_v34 = vld [vmem:[%s19361_s9 + $0x70] sm:$0xff] }
 0x92c   : > { %v18867_v51 = vmax.f32 %v10729_v31, %v10735_v16  ;;  %15111 = vmatpush1.bf16.msra.mxu0 %v15110_v63  ;;  %v12693_v31 = vld [vmem:[%s19361_s9 + $0xb0] sm:$0xff]  ;;  %v15134_v63 = vpack.c.bf16 %v12682_v33, %v12681_v41  ;;  %v12695_v16 = vld [vmem:[%s19361_s9 + $0xc0] sm:$0xff] }
 0x92d   : > { %15112 = vmatprep.subr.bf16.mxu0 %v15744_v11  ;;  %v15164_v0 = vpack.c.bf16 %v12694_v8, %v12693_v31 }
 0x92e   : > { %v10739_v17 = vpop.f32.mrb[236].mxu1  ;;  %12644 = vmatprep.mubr.msk.f32.mxu0 %vm534_vm0, %v18867_v51 }
 0x92f   : > { %v10741_v29 = vpop.f32.mrb[237].mxu1  ;;  %10965 = vmatmul.mubr.f32.gmra.mrb[132].mxu0 %v18865_v26 }
 0x930   : > { %15114 = vmatpush1.bf16.msra.mxu0 %v15113_v14  ;;  %v12696_v14 = vld [vmem:[%s19361_s9 + $0xc8] sm:$0xff] }
 0x931   : > { %15115 = vmatprep.subr.bf16.mxu0 %v15744_v11  ;;  %v15167_v23 = vpack.c.bf16 %v12696_v14, %v12695_v16 }
 0x932   : > { %v10745_v48 = vpop.f32.mrb[238].mxu1 }
 0x933   : > { %v18886_v21 = vmax.f32 %v10739_v17, %v10745_v48  ;;  %v10747_v36 = vpop.f32.mrb[239].mxu1  ;;  %v12686_v17 = vld [vmem:[%s19361_s9 + $0x88] sm:$0xff]  ;;  %v12687_v48 = vld [vmem:[%s19361_s9 + $0x90] sm:$0xff] }
 0x934   : > { %v10837_v47 = vmax.f32 %v10741_v29, %v10747_v36  ;;  %15117 = vmatpush1.bf16.msra.mxu0 %v15116_v38  ;;  %v12697_v29 = vld [vmem:[%s19361_s9 + $0xd0] sm:$0xff]  ;;  %v15140_v38 = vpack.c.bf16 %v12686_v17, %v12685_v19  ;;  %v12699_v36 = vld [vmem:[%s19361_s9 + $0xe0] sm:$0xff] }
 0x935   : > { %15118 = vmatprep.subr.bf16.mxu0 %v15744_v11  ;;  %v15170_v32 = vpack.c.bf16 %v12698_v10, %v12697_v29 }
 0x936   : > { %v10751_v2 = vpop.f32.mrb[240].mxu1  ;;  %12645 = vmatprep.mubr.msk.f32.mxu0 %vm534_vm0, %v10837_v47 }
 0x937   : > { %v10753_v58 = vpop.f32.mrb[241].mxu1  ;;  %10970 = vmatmul.mubr.f32.gmra.mrb[134].mxu0 %v18886_v21 }
 0x938   : > { %15120 = vmatpush1.bf16.msra.mxu0 %v15119_v7  ;;  %v12700_v7 = vld [vmem:[%s19361_s9 + $0xe8] sm:$0xff] }
 0x939   : > { %15121 = vmatprep.subr.bf16.mxu0 %v15744_v11  ;;  %v15173_v39 = vpack.c.bf16 %v12700_v7, %v12699_v36 }
 0x93a   : > { %v10757_v12 = vpop.f32.mrb[242].mxu1 }
 0x93b   : > { %v10838_v3 = vmax.f32 %v10751_v2, %v10757_v12  ;;  %v10759_v4 = vpop.f32.mrb[243].mxu1 }
 0x93c   : > { %v10839_v43 = vmax.f32 %v10753_v58, %v10759_v4  ;;  %15123 = vmatpush1.bf16.msra.mxu0 %v15122_v9 }
 0x93d   : > { %15124 = vmatprep.subr.bf16.mxu0 %v15744_v11 }
 0x93e   : > { %v10763_v61 = vpop.f32.mrb[244].mxu1  ;;  %12646 = vmatprep.mubr.msk.f32.mxu0 %vm534_vm0, %v10839_v43 }
 0x93f   : > { %v10765_v42 = vpop.f32.mrb[245].mxu1  ;;  %10975 = vmatmul.mubr.f32.gmra.mrb[136].mxu0 %v10838_v3 }
 0x940   : > { %15126 = vmatpush1.bf16.msra.mxu0 %v15125_v15 }
 0x941   : > { %15127 = vmatprep.subr.bf16.mxu0 %v15744_v11 }
 0x942   : > { %v10769_v49 = vpop.f32.mrb[246].mxu1 }
 0x943   : > { %v10840_v45 = vmax.f32 %v10763_v61, %v10769_v49  ;;  %v10771_v53 = vpop.f32.mrb[247].mxu1 }
 0x944   : > { %v10841_v54 = vmax.f32 %v10765_v42, %v10771_v53  ;;  %15129 = vmatpush1.bf16.msra.mxu0 %v15128_v6 }
 0x945   : > { %15130 = vmatprep.subr.bf16.mxu0 %v15744_v11 }
 0x946   : > { %v10775_v62 = vpop.f32.mrb[248].mxu1  ;;  %12647 = vmatprep.mubr.msk.f32.mxu0 %vm534_vm0, %v10841_v54 }
 0x947   : > { %v10777_v35 = vpop.f32.mrb[249].mxu1  ;;  %10980 = vmatmul.mubr.f32.gmra.mrb[138].mxu0 %v10840_v45 }
 0x94a   : > { %v10781_v46 = vpop.f32.mrb[250].mxu1 }
 0x94b   : > { %v10842_v55 = vmax.f32 %v10775_v62, %v10781_v46  ;;  %v10783_v25 = vpop.f32.mrb[251].mxu1 }
 0x94c   : > { %v10843_v52 = vmax.f32 %v10777_v35, %v10783_v25 }
 0x94e   : > { %v10787_v28 = vpop.f32.mrb[252].mxu1  ;;  %12648 = vmatprep.mubr.msk.f32.mxu0 %vm534_vm0, %v10843_v52 }
 0x94f   : > { %v10789_v59 = vpop.f32.mrb[253].mxu1  ;;  %10985 = vmatmul.mubr.f32.gmra.mrb[140].mxu0 %v10842_v55 }
 0x952   : > { %v10793_v27 = vpop.f32.mrb[254].mxu1 }
 0x953   : > { %v10844_v56 = vmax.f32 %v10787_v28, %v10793_v27  ;;  %v10795_v50 = vpop.f32.mrb[255].mxu1 }
 0x954   : > { %v10845_v18 = vmax.f32 %v10789_v59, %v10795_v50 }
 0x956   : > { %12649 = vmatprep.mubr.msk.f32.mxu0 %vm534_vm0, %v10845_v18 }
 0x957   : > { %10990 = vmatmul.mubr.f32.gmra.mrb[142].mxu0 %v10844_v56 }
 0x958   : > { %12670 = vmatprep.mubr.msk.f32.mxu0 %vm534_vm0, %v18826_v40  ;;  %v12680_v40 = vld [vmem:[%s19361_s9 + $0x58] sm:$0xff] }
 0x95b   : > { %11081 = vmatmul.mubr.f32.vlgmr.msra.gmra.mrb[144].mxu0 %v18824_v44  ;;  %v12679_v44 = vld [vmem:[%s19361_s9 + $0x50] sm:$0xff] }
 0x95c   : > { %12671 = vmatprep.mubr.msk.f32.mxu0 %vm534_vm0, %v18846_v60  ;;  %v15131_v60 = vpack.c.bf16 %v12680_v40, %v12679_v44 }
 0x95e   : > { %15132 = vmatpush3.bf16.msra.mxu0 %v15131_v60 }
 0x95f   : > { %11086 = vmatmul.mubr.f32.gmra.mrb[146].mxu0 %v18844_v1  ;;  %v12691_v1 = vld [vmem:[%s19361_s9 + $0xa0] sm:$0xff]  ;;  %15133 = vmatprep.subr.bf16.mxu0 %v15744_v11 }
 0x960   : > { %12672 = vmatprep.mubr.msk.f32.mxu0 %vm534_vm0, %v18867_v51  ;;  %v15161_v20 = vpack.c.bf16 %v12692_v24, %v12691_v1 }
 0x962   : > { %15162 = vmatpush3.bf16.msra.mxu1 %v15161_v20  ;;  %15135 = vmatpush3.bf16.msra.mxu0 %v15134_v63 }
 0x963   : > { %11091 = vmatmul.mubr.f32.gmra.mrb[148].mxu0 %v18865_v26  ;;  %15163 = vmatprep.subr.bf16.mxu1 %v15744_v11  ;;  %v12684_v26 = vld [vmem:[%s19361_s9 + $0x78] sm:$0xff] }
 0x964   : > { %12673 = vmatprep.mubr.msk.f32.mxu0 %vm534_vm0, %v10837_v47  ;;  %15136 = vmatprep.subr.bf16.mxu0 %v15744_v11  ;;  %v15137_v51 = vpack.c.bf16 %v12684_v26, %v12683_v34 }
 0x966   : > { %15165 = vmatpush3.bf16.msra.mxu1 %v15164_v0  ;;  %15138 = vmatpush3.bf16.msra.mxu0 %v15137_v51 }
 0x967   : > { %11096 = vmatmul.mubr.f32.gmra.mrb[150].mxu0 %v18886_v21  ;;  %15166 = vmatprep.subr.bf16.mxu1 %v15744_v11  ;;  %v12688_v21 = vld [vmem:[%s19361_s9 + $0x98] sm:$0xff] }
 0x968   : > { %12674 = vmatprep.mubr.msk.f32.mxu0 %vm534_vm0, %v10839_v43  ;;  %15139 = vmatprep.subr.bf16.mxu0 %v15744_v11  ;;  %v15143_v47 = vpack.c.bf16 %v12688_v21, %v12687_v48 }
 0x96a   : > { %15168 = vmatpush3.bf16.msra.mxu1 %v15167_v23  ;;  %15141 = vmatpush3.bf16.msra.mxu0 %v15140_v38 }
 0x96b   : > { %11101 = vmatmul.mubr.f32.gmra.mrb[152].mxu0 %v10838_v3  ;;  %15169 = vmatprep.subr.bf16.mxu1 %v15744_v11 }
 0x96c   : > { %12675 = vmatprep.mubr.msk.f32.mxu0 %vm534_vm0, %v10841_v54  ;;  %15142 = vmatprep.subr.bf16.mxu0 %v15744_v11 }
 0x96e   : > { %15171 = vmatpush3.bf16.msra.mxu1 %v15170_v32  ;;  %15144 = vmatpush3.bf16.msra.mxu0 %v15143_v47 }
 0x96f   : > { %11106 = vmatmul.mubr.f32.gmra.mrb[154].mxu0 %v10840_v45  ;;  %15172 = vmatprep.subr.bf16.mxu1 %v15744_v11  ;;  %v19015_v45 = vld [vmem:[%s19360_s8] ss:$0 sm:$0xff] }
 0x970   : > { %12676 = vmatprep.mubr.msk.f32.mxu0 %vm534_vm0, %v10843_v52  ;;  %15145 = vmatprep.subr.bf16.mxu0 %v15744_v11 }
 0x972   : > { %15174 = vmatpush3.bf16.msra.mxu1 %v15173_v39 }
 0x973   : > { %11111 = vmatmul.mubr.f32.gmra.mrb[156].mxu0 %v10842_v55  ;;  %15190 = vmatprep.subr.bf16.mxu1 %v15744_v11 }
 0x974   : > { %12677 = vmatprep.mubr.msk.f32.mxu0 %vm534_vm0, %v10845_v18 }
 0x977   : > { %11116 = vmatmul.mubr.f32.gmra.mrb[158].mxu0 %v10844_v56 }
 0x978   : > { %14161 = vmatprep.mubr.msk.f32.mxu0 %vm15745_vm4, %v15743_v5 }
 0x9f2   : > { %v10956_v13 = vpop.f32.mrb[128].mxu0 }
 0x9f3   : > { %v10958_v2 = vpop.f32.mrb[129].mxu0 }
 0x9fa   : > { %v10961_v58 = vpop.f32.mrb[130].mxu0 }
 0x9fb   : > { %v10963_v9 = vpop.f32.mrb[131].mxu0 }
 0xa02   : > { %v10966_v30 = vpop.f32.mrb[132].mxu0 }
 0xa03   : > { %v10968_v22 = vpop.f32.mrb[133].mxu0 }
 0xa0a   : > { %v10971_v12 = vpop.f32.mrb[134].mxu0 }
 0xa0b   : > { %v10973_v3 = vpop.f32.mrb[135].mxu0 }
 0xa12   : > { %v10976_v4 = vpop.f32.mrb[136].mxu0 }
 0xa13   : > { %v10978_v43 = vpop.f32.mrb[137].mxu0 }
 0xa1a   : > { %v19006_v15 = vpop.f32.mrb[138].mxu0 }
 0xa1b   : > { %v10983_v37 = vpop.f32.mrb[139].mxu0 }
 0xa22   : > { %v19008_v57 = vpop.f32.mrb[140].mxu0 }
 0xa23   : > { %v10988_v61 = vpop.f32.mrb[141].mxu0 }
 0xa2a   : > { %v19010_v42 = vpop.f32.mrb[142].mxu0 }
 0xa2b   : > { %v10993_v6 = vpop.f32.mrb[143].mxu0 }
 0xa2e   : > { %v11082_v49 = vpop.f32.mrb[144].mxu0 }
 0xa2f   : > { %v11121_v53 = vmax.f32 %v10956_v13, %v11082_v49  ;;  %v11084_v54 = vpop.f32.mrb[145].mxu0 }
 0xa31   : > { %v11136_v62 = vadd.f32 %v19015_v45, %v11121_v53 }
 0xa32   : > { %v11087_v35 = vpop.f32.mrb[146].mxu0 }
 0xa33   : > { %v11122_v46 = vmax.f32 %v10961_v58, %v11087_v35  ;;  %v11089_v55 = vpop.f32.mrb[147].mxu0  ;;  %v11144_v25 = vmax.f32 %v11136_v62, 0.0 }
 0xa35   : > { %v11137_v52 = vadd.f32 %v19015_v45, %v11122_v46  ;;  %v11181_v56 = vrot.slane %v11144_v25, 1  ;;  %v11372_v18 = vrot.slane %v11144_v25, 2  ;;  %v11470_v44 = vrot.slane %v11144_v25, 3 }
 0xa36   : > { %v11092_v28 = vpop.f32.mrb[148].mxu0  ;;  %v11568_v33 = vrot.slane %v11144_v25, 4 }
 0xa37   : > { %v11123_v59 = vmax.f32 %v10966_v30, %v11092_v28  ;;  %v11094_v27 = vpop.f32.mrb[149].mxu0  ;;  %v11145_v50 = vmax.f32 %v11137_v52, 0.0 }
 0xa39   : > { %v11138_v40 = vadd.f32 %v19015_v45, %v11123_v59  ;;  %v11183_v1 = vsel %vm11182_vm5, %v11145_v50, %v11181_v56  ;;  %v11275_v60 = vrot.slane %v11145_v50, 7  ;;  %v11373_v24 = vrot.slane %v11145_v50, 1 }
 0xa3a   : > { %v11471_v20 = vrot.slane %v11145_v50, 2  ;;  %v11097_v41 = vpop.f32.mrb[150].mxu0  ;;  %v11569_v31 = vrot.slane %v11145_v50, 3 }
 0xa3b   : > { %v11146_v63 = vmax.f32 %v11138_v40, 0.0  ;;  %v11124_v8 = vmax.f32 %v10971_v12, %v11097_v41  ;;  %v11099_v0 = vpop.f32.mrb[151].mxu0  ;;  %v11374_v34 = vsel %vm11182_vm5, %v11373_v24, %v11372_v18  ;;  %v11276_v26 = vsel %vm11182_vm5, %v11275_v60, %v11144_v25 }
 0xa3c   : > { %v11472_v16 = vsel %vm11182_vm5, %v11471_v20, %v11470_v44  ;;  %v11570_v51 = vsel %vm11182_vm5, %v11569_v31, %v11568_v33 }
 0xa3d   : > { %v11184_v14 = vrot.slane %v11146_v63, 7  ;;  %v11277_v23 = vrot.slane %v11146_v63, 6  ;;  %v11375_v19 = vsel %vm11185_vm6, %v11146_v63, %v11374_v34  ;;  %v11473_v17 = vrot.slane %v11146_v63, 1 }
 0xa3e   : > { %v11571_v29 = vrot.slane %v11146_v63, 2  ;;  %v11139_v38 = vadd.f32 %v19015_v45, %v11124_v8  ;;  %v11102_v10 = vpop.f32.mrb[152].mxu0  ;;  %v11152_v63 = vld [vmem:[%s19361_s9] sm:$0xff] }
 0xa3f   : > { %v11125_v32 = vmax.f32 %v10976_v4, %v11102_v10  ;;  %v11104_v48 = vpop.f32.mrb[153].mxu0  ;;  %v11186_v21 = vsel %vm11185_vm6, %v11184_v14, %v11183_v1  ;;  %v11278_v36 = vsel %vm11185_vm6, %v11277_v23, %v11276_v26  ;;  %v11474_v39 = vsel %vm11185_vm6, %v11473_v17, %v11472_v16  ;;  %v11153_v14 = vld [vmem:[%s19361_s9 + $0x8] sm:$0xff]  ;;  %v12713_v23 = vld [vmem:[%s19361_s9 + $0x140] sm:$0xff] }
 0xa40   : > { %v11147_v47 = vmax.f32 %v11139_v38, 0.0  ;;  %v11572_v7 = vsel %vm11185_vm6, %v11571_v29, %v11570_v51 }
 0xa41   : > { %v11140_v13 = vadd.f32 %v19015_v45, %v11125_v32 }
 0xa42   : > { %v11187_v2 = vrot.slane %v11147_v47, 6  ;;  %v11279_v58 = vrot.slane %v11147_v47, 5  ;;  %v11376_v9 = vrot.slane %v11147_v47, 7  ;;  %v11573_v30 = vrot.slane %v11147_v47, 1  ;;  %v11107_v22 = vpop.f32.mrb[154].mxu0 }
 0xa43   : > { %v11148_v12 = vmax.f32 %v11140_v13, 0.0  ;;  %v11126_v3 = vmax.f32 %v19006_v15, %v11107_v22  ;;  %v11109_v4 = vpop.f32.mrb[155].mxu0  ;;  %v11475_v43 = vsel %vm11188_vm7, %v11147_v47, %v11474_v39  ;;  %v12715_v22 = vld [vmem:[%s19361_s9 + $0x150] sm:$0xff] }
 0xa44   : > { %v11377_v37 = vsel %vm11188_vm7, %v11376_v9, %v11375_v19  ;;  %v11574_v61 = vsel %vm11188_vm7, %v11573_v30, %v11572_v7  ;;  %v11189_v6 = vsel %vm11188_vm7, %v11187_v2, %v11186_v21  ;;  %v11280_v49 = vsel %vm11188_vm7, %v11279_v58, %v11278_v36  ;;  %v12714_v19 = vld [vmem:[%s19361_s9 + $0x148] sm:$0xff]  ;;  %v11154_v58 = vld [vmem:[%s19361_s9 + $0x10] sm:$0xff]  ;;  %v11155_v30 = vld [vmem:[%s19361_s9 + $0x18] sm:$0xff] }
 0xa45   : > { %v11190_v53 = vrot.slane %v11148_v12, 5  ;;  %v11281_v54 = vrot.slane %v11148_v12, 4  ;;  %v11378_v62 = vrot.slane %v11148_v12, 6  ;;  %v11476_v35 = vrot.slane %v11148_v12, 7 }
 0xa46   : > { %v11575_v46 = vsel %vm11191_vm8, %v11148_v12, %v11574_v61  ;;  %v11141_v55 = vadd.f32 %v19015_v45, %v11126_v3  ;;  %v11112_v15 = vpop.f32.mrb[156].mxu0  ;;  %v15146_v21 = vpack.c.bf16 %v11153_v14, %v11152_v63  ;;  %v15191_v36 = vpack.c.bf16 %v12714_v19, %v12713_v23  ;;  %v12716_v12 = vld [vmem:[%s19361_s9 + $0x158] sm:$0xff]  ;;  %v12706_v63 = vld [vmem:[%s19361_s9 + $0x110] sm:$0xff]  ;;  %v11664_v23 = vld [vmem:[%s19363_s11] sm:$0xff] }
 0xa47   : > { %v11379_v25 = vsel %vm11191_vm8, %v11378_v62, %v11377_v37  ;;  %v11127_v52 = vmax.f32 %v19008_v57, %v11112_v15  ;;  %v11114_v28 = vpop.f32.mrb[157].mxu0  ;;  %v11192_v59 = vsel %vm11191_vm8, %v11190_v53, %v11189_v6  ;;  %v11282_v27 = vsel %vm11191_vm8, %v11281_v54, %v11280_v49  ;;  %v11156_v54 = vld [vmem:[%s19361_s9 + $0x20] sm:$0xff]  ;;  %v11157_v62 = vld [vmem:[%s19361_s9 + $0x28] sm:$0xff] }
 0xa48   : > { %v11149_v56 = vmax.f32 %v11141_v55, 0.0  ;;  %v11477_v50 = vsel %vm11191_vm8, %v11476_v35, %v11475_v43  ;;  %v15149_v49 = vpack.c.bf16 %v11155_v30, %v11154_v58  ;;  %v15194_v53 = vpack.c.bf16 %v12716_v12, %v12715_v22  ;;  %v12717_v35 = vld [vmem:[%s19361_s9 + $0x160] sm:$0xff]  ;;  %v12719_v28 = vld [vmem:[%s19361_s9 + $0x170] sm:$0xff]  ;;  %v11665_v19 = vld [vmem:[%s19363_s11 + $0x8] sm:$0xff] }
 0xa49   : > { %v11142_v18 = vadd.f32 %v19015_v45, %v11127_v52  ;;  %v15152_v55 = vpack.c.bf16 %v11157_v62, %v11156_v54  ;;  %v11159_v52 = vld [vmem:[%s19361_s9 + $0x38] sm:$0xff]  ;;  %v11677_v30 = vld [vmem:[%s19363_s11 + $0x68] sm:$0xff]  ;;  %v11678_v12 = vld [vmem:[%s19363_s11 + $0x70] sm:$0xff] }
 0xa4a   : > { %v11193_v44 = vrot.slane %v11149_v56, 4  ;;  %v11380_v40 = vrot.slane %v11149_v56, 5  ;;  %v11576_v1 = vrot.slane %v11149_v56, 7  ;;  %v11117_v60 = vpop.f32.mrb[158].mxu0  ;;  %v11283_v24 = vrot.slane %v11149_v56, 3  ;;  %v11762_v54 = vld [vmem:[%s19365_s13 + $0x20] sm:$0xff] }
 0xa4b   : > { %v11150_v20 = vmax.f32 %v11142_v18, 0.0  ;;  %v11128_v57 = vmax.f32 %v19010_v42, %v11117_v60  ;;  %v11119_v41 = vpop.f32.mrb[159].mxu0  ;;  %v11478_v33 = vrot.slane %v11149_v56, 6  ;;  %v11161_v18 = vld [vmem:[%s19361_s9 + $0x48] sm:$0xff] }
 0xa4c   : > { %v11195_v31 = vsel %vm11194_vm9, %v11193_v44, %v11192_v59  ;;  %v11381_v8 = vsel %vm11194_vm9, %v11380_v40, %v11379_v25  ;;  %v11284_v0 = vsel %vm11194_vm9, %v11283_v24, %v11282_v27  ;;  %v11577_v34 = vsel %vm11194_vm9, %v11576_v1, %v11575_v46  ;;  %v12718_v46 = vld [vmem:[%s19361_s9 + $0x168] sm:$0xff]  ;;  %v11158_v25 = vld [vmem:[%s19361_s9 + $0x30] sm:$0xff]  ;;  %v12720_v59 = vld [vmem:[%s19361_s9 + $0x178] sm:$0xff] }
 0xa4d   : > { %v11382_v26 = vrot.slane %v11150_v20, 4  ;;  %v11578_v16 = vrot.slane %v11150_v20, 6  ;;  %v11143_v51 = vadd.f32 %v19015_v45, %v11128_v57  ;;  %v11196_v42 = vrot.slane %v11150_v20, 3  ;;  %v12721_v44 = vld [vmem:[%s19361_s9 + $0x180] sm:$0xff]  ;;  %v12722_v40 = vld [vmem:[%s19361_s9 + $0x188] sm:$0xff]  ;;  %v12702_v24 = vld [vmem:[%s19361_s9 + $0xf0] sm:$0xff] }
 0xa4e   : > { %v11285_v17 = vrot.slane %v11150_v20, 2  ;;  %v11479_v29 = vsel %vm11194_vm9, %v11478_v33, %v11477_v50  ;;  %v11480_v38 = vrot.slane %v11150_v20, 5  ;;  %v15197_v15 = vpack.c.bf16 %v12718_v46, %v12717_v35  ;;  %v11160_v50 = vld [vmem:[%s19361_s9 + $0x40] sm:$0xff]  ;;  %v12703_v20 = vld [vmem:[%s19361_s9 + $0xf8] sm:$0xff]  ;;  %v12705_v33 = vld [vmem:[%s19361_s9 + $0x108] sm:$0xff] }
 0xa4f   : > { %v11151_v10 = vmax.f32 %v11143_v51, 0.0  ;;  %v11198_v45 = vsel %vm11197_vm10, %v11196_v42, %v11195_v31  ;;  %v11383_v32 = vsel %vm11197_vm10, %v11382_v26, %v11381_v8  ;;  %v11579_v48 = vsel %vm11197_vm10, %v11578_v16, %v11577_v34  ;;  %v12704_v41 = vld [vmem:[%s19361_s9 + $0x100] sm:$0xff]  ;;  %v12707_v8 = vld [vmem:[%s19361_s9 + $0x118] sm:$0xff]  ;;  %v12709_v26 = vld [vmem:[%s19361_s9 + $0x128] sm:$0xff] }
 0xa50   : > { %v11286_v47 = vsel %vm11197_vm10, %v11285_v17, %v11284_v0  ;;  %v11481_v7 = vsel %vm11197_vm10, %v11480_v38, %v11479_v29  ;;  %v15155_v27 = vpack.c.bf16 %v11159_v52, %v11158_v25  ;;  %v15200_v56 = vpack.c.bf16 %v12720_v59, %v12719_v28  ;;  %v12708_v34 = vld [vmem:[%s19361_s9 + $0x120] sm:$0xff]  ;;  %v12710_v51 = vld [vmem:[%s19361_s9 + $0x130] sm:$0xff]  ;;  %v12711_v42 = vld [vmem:[%s19361_s9 + $0x138] sm:$0xff] }
 0xa51   : > { %v11384_v39 = vrot.slane %v11151_v10, 3  ;;  %v11580_v13 = vrot.slane %v11151_v10, 5  ;;  %v11199_v2 = vrot.slane %v11151_v10, 2  ;;  %v11287_v9 = vrot.slane %v11151_v10, 1  ;;  %v11666_v29 = vld [vmem:[%s19363_s11 + $0x10] sm:$0xff]  ;;  %v11668_v38 = vld [vmem:[%s19363_s11 + $0x20] sm:$0xff] }
 0xa52   : > { %v11482_v3 = vrot.slane %v11151_v10, 4  ;;  %v15158_v1 = vpack.c.bf16 %v11161_v18, %v11160_v50  ;;  %v15203_v60 = vpack.c.bf16 %v12722_v40, %v12721_v44  ;;  %v15176_v57 = vpack.c.bf16 %v12703_v20, %v12702_v24  ;;  %v11763_v62 = vld [vmem:[%s19365_s13 + $0x28] sm:$0xff]  ;;  %v11764_v46 = vld [vmem:[%s19365_s13 + $0x30] sm:$0xff]  ;;  %v11766_v25 = vld [vmem:[%s19365_s13 + $0x40] sm:$0xff] }
 0xa53   : > { %v11201_v4 = vsel %vm11200_vm11, %v11199_v2, %v11198_v45  ;;  %v11385_v43 = vsel %vm11200_vm11, %v11384_v39, %v11383_v32  ;;  %v11288_v37 = vsel %vm11200_vm11, %v11287_v9, %v11286_v47  ;;  %v11581_v61 = vsel %vm11200_vm11, %v11580_v13, %v11579_v48  ;;  %v11669_v45 = vld [vmem:[%s19363_s11 + $0x28] sm:$0xff]  ;;  %v11670_v48 = vld [vmem:[%s19363_s11 + $0x30] sm:$0xff]  ;;  %v11672_v47 = vld [vmem:[%s19363_s11 + $0x40] sm:$0xff] }
 0xa54   : > { %14162 = vmatmul.mubr.msk.f32.vlgmr.msra.gmra.mrb[160].mxu0 %vm11202_vm12, %v11201_v4  ;;  %14208 = vmatmul.mubr.msk.f32.vlgmr.msra.gmra.mrb[16].mxu1 %vm11202_vm12, %v11385_v43  ;;  %v19089_v6 = vsel %vm11200_vm11, %v11482_v3, %v11481_v7  ;;  %v15179_v31 = vpack.c.bf16 %v12705_v33, %v12704_v41  ;;  %v15182_v0 = vpack.c.bf16 %v12707_v8, %v12706_v63  ;;  %v11673_v7 = vld [vmem:[%s19363_s11 + $0x48] sm:$0xff]  ;;  %v11674_v13 = vld [vmem:[%s19363_s11 + $0x50] sm:$0xff]  ;;  %v11675_v2 = vld [vmem:[%s19363_s11 + $0x58] sm:$0xff] }
 0xa55   : > { %15147 = vmatpush3.bf16.msra.mxu0 %v15146_v21  ;;  %15192 = vmatpush3.bf16.msra.mxu1 %v15191_v36  ;;  %v15185_v16 = vpack.c.bf16 %v12709_v26, %v12708_v34  ;;  %v15188_v14 = vpack.c.bf16 %v12711_v42, %v12710_v51  ;;  %v15206_v17 = vpack.c.bf16 %v11665_v19, %v11664_v23  ;;  %v11671_v21 = vld [vmem:[%s19363_s11 + $0x38] sm:$0xff]  ;;  %v11676_v9 = vld [vmem:[%s19363_s11 + $0x60] sm:$0xff]  ;;  %v11767_v52 = vld [vmem:[%s19365_s13 + $0x48] sm:$0xff] }
 0xa56   : > { %15148 = vmatprep.subr.bf16.mxu0 %v15744_v11  ;;  %15193 = vmatprep.subr.bf16.mxu1 %v15744_v11  ;;  %v15212_v32 = vpack.c.bf16 %v11669_v45, %v11668_v38  ;;  %v15215_v36 = vpack.c.bf16 %v11671_v21, %v11670_v48  ;;  %v15218_v39 = vpack.c.bf16 %v11673_v7, %v11672_v47  ;;  %v11679_v3 = vld [vmem:[%s19363_s11 + $0x78] sm:$0xff]  ;;  %v11758_v43 = vld [vmem:[%s19365_s13] sm:$0xff]  ;;  %v11768_v59 = vld [vmem:[%s19365_s13 + $0x50] sm:$0xff] }
 0xa57   : > { %14184 = vmatprep.mubr.msk.f32.mxu0 %vm15745_vm4, %v15743_v5  ;;  %14253 = vmatprep.mubr.msk.f32.mxu1 %vm15745_vm4, %v15743_v5  ;;  %v15221_v58 = vpack.c.bf16 %v11675_v2, %v11674_v13  ;;  %v15224_v22 = vpack.c.bf16 %v11677_v30, %v11676_v9  ;;  %v15227_v4 = vpack.c.bf16 %v11679_v3, %v11678_v12  ;;  %v11770_v50 = vld [vmem:[%s19365_s13 + $0x60] sm:$0xff]  ;;  %v11771_v18 = vld [vmem:[%s19365_s13 + $0x68] sm:$0xff]  ;;  %v11772_v42 = vld [vmem:[%s19365_s13 + $0x70] sm:$0xff] }
 0xa58   : > { %v15236_v35 = vpack.c.bf16 %v11763_v62, %v11762_v54  ;;  %v15242_v28 = vpack.c.bf16 %v11767_v52, %v11766_v25  ;;  %v15248_v44 = vpack.c.bf16 %v11771_v18, %v11770_v50  ;;  %v12724_v26 = vld [vmem:[%s19362_s10] ss:$0 sm:$0xff] }
 0xa59   : > { %15150 = vmatpush3.bf16.msra.mxu0 %v15149_v49  ;;  %15195 = vmatpush3.bf16.msra.mxu1 %v15194_v53  ;;  %v11761_v49 = vld [vmem:[%s19365_s13 + $0x18] sm:$0xff]  ;;  %v12725_v19 = vld [vmem:[%s19364_s12] ss:$0 sm:$0xff] }
 0xa5a   : > { %15151 = vmatprep.subr.bf16.mxu0 %v15744_v11  ;;  %15196 = vmatprep.subr.bf16.mxu1 %v15744_v11 }
 0xa5d   : > { %15153 = vmatpush3.bf16.msra.mxu0 %v15152_v55  ;;  %15198 = vmatpush3.bf16.msra.mxu1 %v15197_v15  ;;  %v11765_v55 = vld [vmem:[%s19365_s13 + $0x38] sm:$0xff] }
 0xa5e   : > { %15154 = vmatprep.subr.bf16.mxu0 %v15744_v11  ;;  %15199 = vmatprep.subr.bf16.mxu1 %v15744_v11  ;;  %v15239_v15 = vpack.c.bf16 %v11765_v55, %v11764_v46 }
 0xa61   : > { %15156 = vmatpush3.bf16.msra.mxu0 %v15155_v27  ;;  %15201 = vmatpush3.bf16.msra.mxu1 %v15200_v56  ;;  %v11769_v27 = vld [vmem:[%s19365_s13 + $0x58] sm:$0xff] }
 0xa62   : > { %15157 = vmatprep.subr.bf16.mxu0 %v15744_v11  ;;  %15202 = vmatprep.subr.bf16.mxu1 %v15744_v11  ;;  %v15245_v56 = vpack.c.bf16 %v11769_v27, %v11768_v59 }
 0xa65   : > { %15159 = vmatpush3.bf16.msra.mxu0 %v15158_v1  ;;  %15204 = vmatpush3.bf16.msra.mxu1 %v15203_v60 }
 0xa66   : > { %15175 = vmatprep.subr.bf16.mxu0 %v15744_v11  ;;  %15229 = vmatprep.subr.bf16.mxu1 %v15744_v11 }
 0xa68   : > { %14185 = vmatmul.mubr.msk.f32.vlgmr.msra.gmra.mrb[162].mxu0 %vm11202_vm12, %v11288_v37  ;;  %14254 = vmatmul.mubr.msk.f32.vlgmr.msra.gmra.mrb[18].mxu1 %vm11202_vm12, %v11581_v61  ;;  %v11759_v37 = vld [vmem:[%s19365_s13 + $0x8] sm:$0xff]  ;;  %v11760_v61 = vld [vmem:[%s19365_s13 + $0x10] sm:$0xff] }
 0xa69   : > { %15177 = vmatpush3.bf16.msra.mxu0 %v15176_v57  ;;  %14230 = vmatprep.mubr.msk.f32.mxu0 %vm15745_vm4, %v15743_v5  ;;  %v15233_v53 = vpack.c.bf16 %v11761_v49, %v11760_v61 }
 0xa6a   : > { %15178 = vmatprep.subr.bf16.mxu0 %v15744_v11  ;;  %14323 = vmatprep.mubr.msk.f32.mxu1 %vm15745_vm4, %v15743_v5 }
 0xa6d   : > { %15180 = vmatpush3.bf16.msra.mxu0 %v15179_v31 }
 0xa6e   : > { %15181 = vmatprep.subr.bf16.mxu0 %v15744_v11 }
 0xa71   : > { %15183 = vmatpush3.bf16.msra.mxu0 %v15182_v0 }
 0xa72   : > { %15184 = vmatprep.subr.bf16.mxu0 %v15744_v11 }
 0xa75   : > { %15186 = vmatpush3.bf16.msra.mxu0 %v15185_v16 }
 0xa76   : > { %15187 = vmatprep.subr.bf16.mxu0 %v15744_v11 }
 0xa79   : > { %15189 = vmatpush3.bf16.msra.mxu0 %v15188_v14  ;;  %v11773_v14 = vld [vmem:[%s19365_s13 + $0x78] sm:$0xff] }
 0xa7a   : > { %15205 = vmatprep.subr.bf16.mxu0 %v15744_v11  ;;  %v15251_v23 = vpack.c.bf16 %v11773_v14, %v11772_v42 }
 0xa7c   : > { %14231 = vmatmul.mubr.msk.f32.vlgmr.msra.gmra.mrb[164].mxu0 %vm11202_vm12, %v19089_v6  ;;  %v15230_v6 = vpack.c.bf16 %v11759_v37, %v11758_v43 }
 0xa7d   : > { %14288 = vmatprep.mubr.msk.f32.mxu0 %vm15745_vm4, %v15743_v5  ;;  %15207 = vmatpush3.bf16.msra.mxu0 %v15206_v17  ;;  %v11667_v5 = vld [vmem:[%s19363_s11 + $0x18] sm:$0xff] }
 0xa7e   : > { %15208 = vmatprep.subr.bf16.mxu0 %v15744_v11  ;;  %v15209_v10 = vpack.c.bf16 %v11667_v5, %v11666_v29  ;;  %15231 = vmatpush3.bf16.msra.mxu1 %v15230_v6 }
 0xa7f   : > { %15232 = vmatprep.subr.bf16.mxu1 %v15744_v11 }
 0xa81   : > { %15210 = vmatpush3.bf16.msra.mxu0 %v15209_v10  ;;  %v12726_v10 = vld [vmem:[%s19366_s14] ss:$0 sm:$0xff] }
 0xa82   : > { %15211 = vmatprep.subr.bf16.mxu0 %v15744_v11  ;;  %15234 = vmatpush3.bf16.msra.mxu1 %v15233_v53 }
 0xa83   : > { %15235 = vmatprep.subr.bf16.mxu1 %v15744_v11 }
 0xa85   : > { %15213 = vmatpush3.bf16.msra.mxu0 %v15212_v32 }
 0xa86   : > { %15214 = vmatprep.subr.bf16.mxu0 %v15744_v11  ;;  %15237 = vmatpush3.bf16.msra.mxu1 %v15236_v35 }
 0xa87   : > { %15238 = vmatprep.subr.bf16.mxu1 %v15744_v11 }
 0xa89   : > { %15216 = vmatpush3.bf16.msra.mxu0 %v15215_v36 }
 0xa8a   : > { %15217 = vmatprep.subr.bf16.mxu0 %v15744_v11  ;;  %15240 = vmatpush3.bf16.msra.mxu1 %v15239_v15 }
 0xa8b   : > { %15241 = vmatprep.subr.bf16.mxu1 %v15744_v11 }
 0xa8d   : > { %15219 = vmatpush3.bf16.msra.mxu0 %v15218_v39 }
 0xa8e   : > { %15220 = vmatprep.subr.bf16.mxu0 %v15744_v11  ;;  %15243 = vmatpush3.bf16.msra.mxu1 %v15242_v28 }
 0xa8f   : > { %15244 = vmatprep.subr.bf16.mxu1 %v15744_v11 }
 0xa91   : > { %15222 = vmatpush3.bf16.msra.mxu0 %v15221_v58 }
 0xa92   : > { %15223 = vmatprep.subr.bf16.mxu0 %v15744_v11  ;;  %15246 = vmatpush3.bf16.msra.mxu1 %v15245_v56 }
 0xa93   : > { %15247 = vmatprep.subr.bf16.mxu1 %v15744_v11 }
 0xa95   : > { %15225 = vmatpush3.bf16.msra.mxu0 %v15224_v22 }
 0xa96   : > { %15226 = vmatprep.subr.bf16.mxu0 %v15744_v11  ;;  %15249 = vmatpush3.bf16.msra.mxu1 %v15248_v44 }
 0xa97   : > { %15250 = vmatprep.subr.bf16.mxu1 %v15744_v11 }
 0xa99   : > { %15228 = vmatpush3.bf16.msra.mxu0 %v15227_v4 }
 0xa9a   : > { %15252 = vmatpush3.bf16.msra.mxu1 %v15251_v23 }
 0xb27   : > { %v11271_v40 = vpop.f32.mrb[160].mxu0  ;;  %v11454_v1 = vpop.f32.mrb[16].mxu1 }
 0xb28   : > { %v14163_v60 = vpop.f32.mrb[161].mxu0  ;;  %v14209_v24 = vpop.f32.mrb[17].mxu1 }
 0xb3b   : > { %v11357_v20 = vpop.f32.mrb[162].mxu0  ;;  %v11650_v57 = vpop.f32.mrb[18].mxu1 }
 0xb3c   : > { %v11358_v41 = vadd.f32 %v11357_v20, %v11271_v40  ;;  %v14186_v33 = vpop.f32.mrb[163].mxu0  ;;  %v14255_v31 = vpop.f32.mrb[19].mxu1 }
 0xb3e   : > { %v11458_v63 = vadd.f32 %v11454_v1, %v11358_v41 }
 0xb4f   : > { %v11552_v8 = vpop.f32.mrb[164].mxu0 }
 0xb50   : > { %v11556_v0 = vadd.f32 %v11552_v8, %v11458_v63  ;;  %v14232_v34 = vpop.f32.mrb[165].mxu0 }
 0xb52   : > { %v11654_v16 = vadd.f32 %v11650_v57, %v11556_v0 }
 0xb54   : > { %v11662_v11 = vadd.f32 %v12724_v26, %v11654_v16 }
 0xb56   : > { %v11663_v51 = vmax.f32 %v11662_v11, 0.0 }
 0xb58   : > { %14289 = vmatmul.mubr.f32.vlgmr.msra.gmra.mrb[166].mxu0 %v11663_v51 }
 0xc2b   : > { %v11753_v17 = vpop.f32.mrb[166].mxu0 }
 0xc2c   : > { %v11754_v29 = vadd.f32 %v12725_v19, %v11753_v17  ;;  %v14290_v5 = vpop.f32.mrb[167].mxu0 }
 0xc2e   : > { %v11757_v38 = vmax.f32 %v11754_v29, 0.0 }
 0xc30   : > { %14324 = vmatmul.mubr.f32.vlgmr.msra.gmra.mrb[20].mxu1 %v11757_v38 }
 0xd03   : > { %v11847_v45 = vpop.f32.mrb[20].mxu1 }
 0xd04   : > { %v11848_v32 = vadd.f32 %v12726_v10, %v11847_v45  ;;  %v14325_v48 = vpop.f32.mrb[21].mxu1 }
 0xd06   : > { %11851 = vst [vmem:[%s490_s23] sm:$0xff] %v11848_v32 }
 0xd07   : > { %15692 = shalt.err (!%p15689_p3)
}
 0xd08   : > { %s15693_s24 = scalar_lea.hbm %s19310_s20, 128  ;;  %s15697_s26 = scalar_lea.hbm %s19367_s15, 256 }
 0xd09   : > { %p15694_p4 = scmp.ne.s32.totalorder %s19310_s20, %s15693_s24  ;;  %p15698_p9 = scmp.lt.u32.totalorder %s19310_s20, %s19367_s15 }
 0xd0a   : > { %p15699_p10 = scmp.lt.u32.totalorder %s15697_s26, %s15693_s24  ;;  %p15701_p12 = scmp.lt.u32.totalorder %s15693_s24, %s19310_s20 }
 0xd0b   : > { %p15695_p7 = pnand %p15694_p4, %p15865_p5 }
 0xd0c   : > { %p15700_p11 = por %p15699_p10, %p15698_p9 }
 0xd0d   : > { %p15696_p8 = pneg %p15695_p7 }
 0xd0e   : > { %p15702_p13 = por %p15701_p12, %p15700_p11 }
 0xd10   : > { %p15703_p0 = pnand %p15702_p13, %p15696_p8 }
 0xd12   : > { %15706 = shalt.err (!%p15703_p0)
}
 0xd13   : > { %15637 = dma.vmem_to_hbm [thread:$0]  (%p15865_p5), %s19312_s25, 128, %s19310_s20, %s11853_s1  }
 0xd14 PF: > { %p15643_p1 = scmp.ge.s32.totalorder %s15741_s21, 2  ;;  %s11878_s30 = sand.u32 1, %s15729_s18  }
 0xd15   : > { %s11879_s27 = scalar_lea.sflag [#allocation3], %s11878_s30 }
 0xd16   : > { %p15640_p2 = pnand %p15643_p1, %p15869_p6 }
 0xd18   : > { %15724 = dma.done.wait (!%p15640_p2), %s11879_s27, 128  }
 0xd19   : > { %15726 = vsyncadd (!%p15640_p2), %s11879_s27, 4294967168  ;;  %s19406_s21 = sld [smem:[#allocation6_spill]]  ;;  %s19407_s16 = sld [smem:[#allocation5_spill]] }
 0xd1a   : > { %s19408_s20 = sld [smem:[#allocation7_spill]]  ;;  %s19409_s18 = smov %s15733_s19 }
 0xd1f   : > { %p25_p3 = scmp.ge.s32.totalorder %s19406_s21, 4   ;;  %s19410_s19 = smov %s19407_s16 }
 0xd21   :  { %27 = sbr.rel (!%p25_p3) target bundleno = 6 (0x6), region = 137 }
 0xd28   :  { %11884 = vsyncpa [#allocation3], 1 }
 0xd29   :  { %11886 = vsyncpa [#allocation3 + $0x1], 1 }

</bundles_post_ra>
